<compile_context>
chip_gen: v6e
topology: v6e:2x2x1
jax: 0.10.0
libtpu: 0.0.40
codegen_flags: <defaults>
</compile_context>

<pallas_src>
import jax
import jax.numpy as jnp
from jax.experimental import pallas as pl
from jax.experimental.pallas import tpu as pltpu

EPS = 1e-5
LAYER_SIZES = [773, 1024, 512, 256, 64, 1]
IN_FEATURES = 773
PAD_IN = 896            # 7 * 128, lane-aligned padding of the input feature dim
MAX_BATCH_TILE = 512    # rows per grid step (multiple of 16)
SUBLANE = 16            # bf16 min sublane tile


def _mlp_kernel(x_ref,
                w1_ref, t1_ref,
                w2_ref, t2_ref,
                w3_ref, t3_ref,
                w4_ref, t4_ref,
                w5_ref, b5_ref,
                o_ref):
    """Fused ChessNet forward for one batch tile (eval-mode semantics)."""

    def hidden_layer(h_bf16, w_ref, t_ref):
        # Linear + BatchNorm1d folded into (W', t'); MXU bf16 matmul, f32 acc.
        z = jnp.dot(h_bf16, w_ref[...], preferred_element_type=jnp.float32)
        z = z + t_ref[...]
        # ReLU (Dropout is identity in eval mode); next layer consumes bf16.
        return jnp.maximum(z, 0.0).astype(jnp.bfloat16)

    h = x_ref[...]                               # (TB, 896) bf16, cast in wrapper
    h = hidden_layer(h, w1_ref, t1_ref)          # (TB, 1024)
    h = hidden_layer(h, w2_ref, t2_ref)          # (TB, 512)
    h = hidden_layer(h, w3_ref, t3_ref)          # (TB, 256)
    h = hidden_layer(h, w4_ref, t4_ref)          # (TB, 64)

    # Final Linear(64 -> 1): VPU multiply + lane reduction, then Tanh, stored
    # lane-dense as one (1, TB) row per grid step.
    z = jnp.sum(h.astype(jnp.float32) * w5_ref[...], axis=-1)      # (TB,)
    row = z.reshape(1, -1) + b5_ref[...]                           # (1, TB)
    o_ref[...] = jnp.tanh(row).reshape(1, 1, -1)                   # (1, 1, TB)


def init_params(key):
    """Parameters matching the PyTorch module's shapes (BN stats randomized to
    exercise the folding path; PyTorch defaults would be gamma=1, beta=mean=0,
    var=1)."""
    params = {}
    keys = jax.random.split(key, 26)
    ki = 0
    for li in range(5):
        fan_in, fan_out = LAYER_SIZES[li], LAYER_SIZES[li + 1]
        bound = 1.0 / float(jnp.sqrt(jnp.float32(fan_in)))
        params[f"w{li + 1}"] = jax.random.uniform(
            keys[ki], (fan_in, fan_out), jnp.float32, -bound, bound); ki += 1
        params[f"b{li + 1}"] = jax.random.uniform(
            keys[ki], (1, fan_out), jnp.float32, -bound, bound); ki += 1
        if li < 4:  # BatchNorm1d after the first four Linear layers
            params[f"gamma{li + 1}"] = jax.random.uniform(
                keys[ki], (1, fan_out), jnp.float32, 0.5, 1.5); ki += 1
            params[f"beta{li + 1}"] = 0.1 * jax.random.normal(
                keys[ki], (1, fan_out), jnp.float32); ki += 1
            params[f"mean{li + 1}"] = 0.1 * jax.random.normal(
                keys[ki], (1, fan_out), jnp.float32); ki += 1
            params[f"var{li + 1}"] = jax.random.uniform(
                keys[ki], (1, fan_out), jnp.float32, 0.5, 1.5); ki += 1
    return params


def prepare_params(params):
    """One-time prep: fold BN (running stats) + bias into weights, cast weights
    to bf16, zero-pad layer-1 rows 773 -> 896. Call once, reuse every forward."""
    prepared = {}
    for li in range(1, 5):
        w = params[f"w{li}"]
        b = params[f"b{li}"]
        scale = params[f"gamma{li}"] / jnp.sqrt(params[f"var{li}"] + EPS)  # (1, out)
        shift = params[f"beta{li}"] - params[f"mean{li}"] * scale          # (1, out)
        w_folded = w * scale                    # scale each output column
        t_folded = b * scale + shift
        if li == 1:
            w_folded = jnp.pad(w_folded, ((0, PAD_IN - IN_FEATURES), (0, 0)))
        prepared[f"w{li}"] = w_folded.astype(jnp.bfloat16)
        prepared[f"t{li}"] = t_folded.astype(jnp.float32)
    prepared["w5"] = params["w5"].reshape(1, LAYER_SIZES[4]).astype(jnp.float32)
    prepared["b5"] = params["b5"].reshape(1, 1).astype(jnp.float32)
    return prepared


def _round_up(v, m):
    return ((v + m - 1) // m) * m


@jax.jit
def chessnet_forward(x, prepared):
    """Runs the fused ChessNet forward pass with one batch-tiled pallas_call."""
    batch = x.shape[0]

    # Batch tile: multiple of 16 (bf16 sublane packing), capped at
    # MAX_BATCH_TILE, and split into >= 2 grid steps whenever the batch allows
    # so the "parallel" axis can shard across both TensorCores on v7x.
    rounded = _round_up(batch, SUBLANE)
    if rounded >= 2 * SUBLANE:
        tb = min(_round_up(rounded // 2, SUBLANE), MAX_BATCH_TILE)
    else:
        tb = rounded
    padded_batch = _round_up(batch, tb)
    num_tiles = padded_batch // tb

    # Single fused XLA op: cast to bf16 + pad batch remainder + pad 773 -> 896.
    # (Callers can avoid even this pass by supplying pre-padded bf16 features.)
    xp = jnp.pad(x.astype(jnp.bfloat16),
                 ((0, padded_batch - batch), (0, PAD_IN - IN_FEATURES)))

    weight_ops = [prepared["w1"], prepared["t1"],
                  prepared["w2"], prepared["t2"],
                  prepared["w3"], prepared["t3"],
                  prepared["w4"], prepared["t4"],
                  prepared["w5"], prepared["b5"]]

    x_spec = pl.BlockSpec((tb, PAD_IN), lambda i: (i, 0))
    # Constant index maps: weight blocks are DMA'd once and stay resident in
    # VMEM across grid steps (Pallas skips re-copies when block indices repeat).
    weight_specs = [pl.BlockSpec(op.shape, lambda i: (0, 0)) for op in weight_ops]
    # Lane-dense output: one (1, 1, tb) row block per grid step.
    out_spec = pl.BlockSpec((1, 1, tb), lambda i: (i, 0, 0))

    out = pl.pallas_call(
        _mlp_kernel,
        out_shape=jax.ShapeDtypeStruct((num_tiles, 1, tb), jnp.float32),
        grid=(num_tiles,),
        in_specs=[x_spec] + weight_specs,
        out_specs=out_spec,
        compiler_params=pltpu.CompilerParams(
            dimension_semantics=("parallel",),
            vmem_limit_bytes=32 * 1024 * 1024),
    )(xp, *weight_ops)

    # .squeeze(1) from the PyTorch forward, drop batch padding.
    return out.reshape(padded_batch)[:batch]


def reference_forward(x, params):
    """Pure-JAX f32 reference (eval-mode PyTorch semantics) for validation."""
    h = x.astype(jnp.float32)
    for li in range(1, 5):
        h = h @ params[f"w{li}"] + params[f"b{li}"]
        scale = params[f"gamma{li}"] / jnp.sqrt(params[f"var{li}"] + EPS)
        h = (h - params[f"mean{li}"]) * scale + params[f"beta{li}"]
        h = jnp.maximum(h, 0.0)
    z = h @ params["w5"] + params["b5"]
    return jnp.tanh(z)[:, 0]


if __name__ == "__main__":
    key = jax.random.PRNGKey(0)
    pkey, xkey = jax.random.split(key)
    params = init_params(pkey)
    prepared = prepare_params(params)   # fold/cast/pad once, reuse across calls

    batch = 32                          # -> tb=16, grid=(2,): exercises multi-step path
    x = jax.random.normal(xkey, (batch, IN_FEATURES), dtype=jnp.float32)

    out = jax.block_until_ready(chessnet_forward(x, prepared))
    ref = reference_forward(x, params)

    assert out.shape == (batch,), out.shape
    # bf16 matmuls vs f32 reference -> loosened tolerance (output is tanh-bounded).
    assert jnp.allclose(out, ref, atol=5e-2, rtol=5e-2), (out, ref)

    print("KERNEL_OK")
</pallas_src>

<mosaic_0001>
module attributes {stable_mosaic.version = 11 : i64} {
  func.func @_mlp_kernel(%arg0: i32, %arg1: memref<16x896xbf16, #tpu.memory_space<vmem>>, %arg2: memref<896x1024xbf16, #tpu.memory_space<vmem>>, %arg3: memref<1x1024xf32, #tpu.memory_space<vmem>>, %arg4: memref<1024x512xbf16, #tpu.memory_space<vmem>>, %arg5: memref<1x512xf32, #tpu.memory_space<vmem>>, %arg6: memref<512x256xbf16, #tpu.memory_space<vmem>>, %arg7: memref<1x256xf32, #tpu.memory_space<vmem>>, %arg8: memref<256x64xbf16, #tpu.memory_space<vmem>>, %arg9: memref<1x64xf32, #tpu.memory_space<vmem>>, %arg10: memref<1x64xf32, #tpu.memory_space<vmem>>, %arg11: memref<1x1xf32, #tpu.memory_space<vmem>>, %arg12: memref<1x1x16xf32, #tpu.memory_space<vmem>>) attributes {dimension_semantics = [#tpu.dimension_semantics<parallel>], iteration_bounds = array<i64: 2>, scalar_prefetch = 0 : i64, scratch_operands = 0 : i64, tpu.core_type = #tpu.core_type<tc>, window_params = [{transform_indices = @transform_0, window_bounds = array<i64: 16, 896>}, {pipeline_mode = #tpu.pipeline_mode<synchronous>, transform_indices = @transform_1, window_bounds = array<i64: 896, 1024>}, {pipeline_mode = #tpu.pipeline_mode<synchronous>, transform_indices = @transform_2, window_bounds = array<i64: 1, 1024>}, {pipeline_mode = #tpu.pipeline_mode<synchronous>, transform_indices = @transform_3, window_bounds = array<i64: 1024, 512>}, {pipeline_mode = #tpu.pipeline_mode<synchronous>, transform_indices = @transform_4, window_bounds = array<i64: 1, 512>}, {pipeline_mode = #tpu.pipeline_mode<synchronous>, transform_indices = @transform_5, window_bounds = array<i64: 512, 256>}, {pipeline_mode = #tpu.pipeline_mode<synchronous>, transform_indices = @transform_6, window_bounds = array<i64: 1, 256>}, {pipeline_mode = #tpu.pipeline_mode<synchronous>, transform_indices = @transform_7, window_bounds = array<i64: 256, 64>}, {pipeline_mode = #tpu.pipeline_mode<synchronous>, transform_indices = @transform_8, window_bounds = array<i64: 1, 64>}, {pipeline_mode = #tpu.pipeline_mode<synchronous>, transform_indices = @transform_9, window_bounds = array<i64: 1, 64>}, {pipeline_mode = #tpu.pipeline_mode<synchronous>, transform_indices = @transform_10, window_bounds = array<i64: 1, 1>}, {transform_indices = @transform_11, window_bounds = array<i64: 1, 1, 16>}]} {
    %c0 = arith.constant 0 : index
    %c0_0 = arith.constant 0 : index
    %0 = vector.load %arg1[%c0, %c0_0] : memref<16x896xbf16, #tpu.memory_space<vmem>>, vector<16x896xbf16>
    %c0_1 = arith.constant 0 : index
    %c0_2 = arith.constant 0 : index
    %1 = vector.load %arg2[%c0_1, %c0_2] : memref<896x1024xbf16, #tpu.memory_space<vmem>>, vector<896x1024xbf16>
    %cst = arith.constant dense<0.000000e+00> : vector<16x1024xf32>
    %2 = tpu.matmul %0, %1, %cst {dimension_numbers = #tpu.dot_dimension_numbers<[1], [0], [0], [1], [0, 0, 1, 1], [], []>} : vector<16x896xbf16>, vector<896x1024xbf16>, vector<16x1024xf32> -> vector<16x1024xf32>
    %c0_3 = arith.constant 0 : index
    %c0_4 = arith.constant 0 : index
    %3 = vector.load %arg3[%c0_3, %c0_4] : memref<1x1024xf32, #tpu.memory_space<vmem>>, vector<1x1024xf32>
    %4 = vector.broadcast %3 : vector<1x1024xf32> to vector<16x1024xf32>
    %5 = arith.addf %2, %4 : vector<16x1024xf32>
    %cst_5 = arith.constant 0.000000e+00 : f32
    %6 = vector.broadcast %cst_5 : f32 to vector<16x1024xf32>
    %7 = arith.maximumf %5, %6 : vector<16x1024xf32>
    %8 = arith.truncf %7 : vector<16x1024xf32> to vector<16x1024xbf16>
    %c0_6 = arith.constant 0 : index
    %c0_7 = arith.constant 0 : index
    %9 = vector.load %arg4[%c0_6, %c0_7] : memref<1024x512xbf16, #tpu.memory_space<vmem>>, vector<1024x512xbf16>
    %cst_8 = arith.constant dense<0.000000e+00> : vector<16x512xf32>
    %10 = tpu.matmul %8, %9, %cst_8 {dimension_numbers = #tpu.dot_dimension_numbers<[1], [0], [0], [1], [0, 0, 1, 1], [], []>} : vector<16x1024xbf16>, vector<1024x512xbf16>, vector<16x512xf32> -> vector<16x512xf32>
    %c0_9 = arith.constant 0 : index
    %c0_10 = arith.constant 0 : index
    %11 = vector.load %arg5[%c0_9, %c0_10] : memref<1x512xf32, #tpu.memory_space<vmem>>, vector<1x512xf32>
    %12 = vector.broadcast %11 : vector<1x512xf32> to vector<16x512xf32>
    %13 = arith.addf %10, %12 : vector<16x512xf32>
    %cst_11 = arith.constant 0.000000e+00 : f32
    %14 = vector.broadcast %cst_11 : f32 to vector<16x512xf32>
    %15 = arith.maximumf %13, %14 : vector<16x512xf32>
    %16 = arith.truncf %15 : vector<16x512xf32> to vector<16x512xbf16>
    %c0_12 = arith.constant 0 : index
    %c0_13 = arith.constant 0 : index
    %17 = vector.load %arg6[%c0_12, %c0_13] : memref<512x256xbf16, #tpu.memory_space<vmem>>, vector<512x256xbf16>
    %cst_14 = arith.constant dense<0.000000e+00> : vector<16x256xf32>
    %18 = tpu.matmul %16, %17, %cst_14 {dimension_numbers = #tpu.dot_dimension_numbers<[1], [0], [0], [1], [0, 0, 1, 1], [], []>} : vector<16x512xbf16>, vector<512x256xbf16>, vector<16x256xf32> -> vector<16x256xf32>
    %c0_15 = arith.constant 0 : index
    %c0_16 = arith.constant 0 : index
    %19 = vector.load %arg7[%c0_15, %c0_16] : memref<1x256xf32, #tpu.memory_space<vmem>>, vector<1x256xf32>
    %20 = vector.broadcast %19 : vector<1x256xf32> to vector<16x256xf32>
    %21 = arith.addf %18, %20 : vector<16x256xf32>
    %cst_17 = arith.constant 0.000000e+00 : f32
    %22 = vector.broadcast %cst_17 : f32 to vector<16x256xf32>
    %23 = arith.maximumf %21, %22 : vector<16x256xf32>
    %24 = arith.truncf %23 : vector<16x256xf32> to vector<16x256xbf16>
    %c0_18 = arith.constant 0 : index
    %c0_19 = arith.constant 0 : index
    %25 = vector.load %arg8[%c0_18, %c0_19] : memref<256x64xbf16, #tpu.memory_space<vmem>>, vector<256x64xbf16>
    %cst_20 = arith.constant dense<0.000000e+00> : vector<16x64xf32>
    %26 = tpu.matmul %24, %25, %cst_20 {dimension_numbers = #tpu.dot_dimension_numbers<[1], [0], [0], [1], [0, 0, 1, 1], [], []>} : vector<16x256xbf16>, vector<256x64xbf16>, vector<16x64xf32> -> vector<16x64xf32>
    %c0_21 = arith.constant 0 : index
    %c0_22 = arith.constant 0 : index
    %27 = vector.load %arg9[%c0_21, %c0_22] : memref<1x64xf32, #tpu.memory_space<vmem>>, vector<1x64xf32>
    %28 = vector.broadcast %27 : vector<1x64xf32> to vector<16x64xf32>
    %29 = arith.addf %26, %28 : vector<16x64xf32>
    %cst_23 = arith.constant 0.000000e+00 : f32
    %30 = vector.broadcast %cst_23 : f32 to vector<16x64xf32>
    %31 = arith.maximumf %29, %30 : vector<16x64xf32>
    %32 = arith.truncf %31 : vector<16x64xf32> to vector<16x64xbf16>
    %33 = arith.extf %32 : vector<16x64xbf16> to vector<16x64xf32>
    %c0_24 = arith.constant 0 : index
    %c0_25 = arith.constant 0 : index
    %34 = vector.load %arg10[%c0_24, %c0_25] : memref<1x64xf32, #tpu.memory_space<vmem>>, vector<1x64xf32>
    %35 = vector.broadcast %34 : vector<1x64xf32> to vector<16x64xf32>
    %36 = arith.mulf %33, %35 : vector<16x64xf32>
    %cst_26 = arith.constant dense<0.000000e+00> : vector<16xf32>
    %37 = vector.multi_reduction <add>, %36, %cst_26 [1] : vector<16x64xf32> to vector<16xf32>
    %38 = vector.shape_cast %37 : vector<16xf32> to vector<1x16xf32>
    %c0_27 = arith.constant 0 : index
    %c0_28 = arith.constant 0 : index
    %39 = vector.load %arg11[%c0_27, %c0_28] : memref<1x1xf32, #tpu.memory_space<vmem>>, vector<1x1xf32>
    %40 = vector.broadcast %39 : vector<1x1xf32> to vector<1x16xf32>
    %41 = arith.addf %38, %40 : vector<1x16xf32>
    %42 = math.tanh %41 : vector<1x16xf32>
    %43 = vector.shape_cast %42 : vector<1x16xf32> to vector<1x1x16xf32>
    %c0_29 = arith.constant 0 : index
    %c0_30 = arith.constant 0 : index
    %c0_31 = arith.constant 0 : index
    %44 = vector.load %arg12[%c0_29, %c0_30, %c0_31] : memref<1x1x16xf32, #tpu.memory_space<vmem>>, vector<1x1x16xf32>
    tpu.vector_store %arg12[%c0_29, %c0_30, %c0_31], %43 {strides = array<i32>} : memref<1x1x16xf32, #tpu.memory_space<vmem>>, vector<1x1x16xf32>,
    return
  }
  func.func @transform_0(%arg0: i32) -> (i32, i32) {
    %c0_i32 = arith.constant 0 : i32
    %c0_i32_0 = arith.constant 0 : i32
    return %arg0, %c0_i32 : i32, i32
  }
  func.func @transform_1(%arg0: i32) -> (i32, i32) {
    %c0_i32 = arith.constant 0 : i32
    %c0_i32_0 = arith.constant 0 : i32
    %c0_i32_1 = arith.constant 0 : i32
    return %c0_i32, %c0_i32_0 : i32, i32
  }
  func.func @transform_2(%arg0: i32) -> (i32, i32) {
    %c0_i32 = arith.constant 0 : i32
    %c0_i32_0 = arith.constant 0 : i32
    %c0_i32_1 = arith.constant 0 : i32
    return %c0_i32, %c0_i32_0 : i32, i32
  }
  func.func @transform_3(%arg0: i32) -> (i32, i32) {
    %c0_i32 = arith.constant 0 : i32
    %c0_i32_0 = arith.constant 0 : i32
    %c0_i32_1 = arith.constant 0 : i32
    return %c0_i32, %c0_i32_0 : i32, i32
  }
  func.func @transform_4(%arg0: i32) -> (i32, i32) {
    %c0_i32 = arith.constant 0 : i32
    %c0_i32_0 = arith.constant 0 : i32
    %c0_i32_1 = arith.constant 0 : i32
    return %c0_i32, %c0_i32_0 : i32, i32
  }
  func.func @transform_5(%arg0: i32) -> (i32, i32) {
    %c0_i32 = arith.constant 0 : i32
    %c0_i32_0 = arith.constant 0 : i32
    %c0_i32_1 = arith.constant 0 : i32
    return %c0_i32, %c0_i32_0 : i32, i32
  }
  func.func @transform_6(%arg0: i32) -> (i32, i32) {
    %c0_i32 = arith.constant 0 : i32
    %c0_i32_0 = arith.constant 0 : i32
    %c0_i32_1 = arith.constant 0 : i32
    return %c0_i32, %c0_i32_0 : i32, i32
  }
  func.func @transform_7(%arg0: i32) -> (i32, i32) {
    %c0_i32 = arith.constant 0 : i32
    %c0_i32_0 = arith.constant 0 : i32
    %c0_i32_1 = arith.constant 0 : i32
    return %c0_i32, %c0_i32_0 : i32, i32
  }
  func.func @transform_8(%arg0: i32) -> (i32, i32) {
    %c0_i32 = arith.constant 0 : i32
    %c0_i32_0 = arith.constant 0 : i32
    %c0_i32_1 = arith.constant 0 : i32
    return %c0_i32, %c0_i32_0 : i32, i32
  }
  func.func @transform_9(%arg0: i32) -> (i32, i32) {
    %c0_i32 = arith.constant 0 : i32
    %c0_i32_0 = arith.constant 0 : i32
    %c0_i32_1 = arith.constant 0 : i32
    return %c0_i32, %c0_i32_0 : i32, i32
  }
  func.func @transform_10(%arg0: i32) -> (i32, i32) {
    %c0_i32 = arith.constant 0 : i32
    %c0_i32_0 = arith.constant 0 : i32
    %c0_i32_1 = arith.constant 0 : i32
    return %c0_i32, %c0_i32_0 : i32, i32
  }
  func.func @transform_11(%arg0: i32) -> (i32, i32, i32) {
    %c0_i32 = arith.constant 0 : i32
    %c0_i32_0 = arith.constant 0 : i32
    %c0_i32_1 = arith.constant 0 : i32
    return %arg0, %c0_i32, %c0_i32_0 : i32, i32, i32
  }
}

</mosaic_0001>

<bundles_post_ra>
// kernel: chessnet_forward.1
= control target key start
LH: loop header
LB: loop body
LE: loop exit
PB: predicated region body
PF: predicated region fallthrough
CT: control target
= control target key end

     0   :  { %s8917_s0 = inlined_call_operand.vmem [shape: bf16[32,896], index: 0, kind: input, shape index: {}]   ;;  %s8918_s1 = inlined_call_operand.hbm [shape: bf16[896,1024], index: 1, kind: input, shape index: {}]   ;;  %s8919_s2 = inlined_call_operand.hbm [shape: f32[1,1024], index: 2, kind: input, shape index: {}]   ;;  %s8920_s3 = inlined_call_operand.hbm [shape: bf16[1024,512], index: 3, kind: input, shape index: {}]   ;;  %s8921_s4 = inlined_call_operand.hbm [shape: f32[1,512], index: 4, kind: input, shape index: {}]   ;;  %s8922_s5 = inlined_call_operand.hbm [shape: bf16[512,256], index: 5, kind: input, shape index: {}]   ;;  %s8923_s6 = inlined_call_operand.hbm [shape: f32[1,256], index: 6, kind: input, shape index: {}]   ;;  %s8924_s7 = inlined_call_operand.vmem [shape: bf16[256,64], index: 7, kind: input, shape index: {}]   ;;  %s8925_s8 = inlined_call_operand.hbm [shape: f32[1,64], index: 8, kind: input, shape index: {}]   ;;  %s8926_s9 = inlined_call_operand.hbm [shape: f32[1,64], index: 9, kind: input, shape index: {}]   ;;  %s8927_s10 = inlined_call_operand.<no memory space> [shape: f32[1,1], index: 10, kind: input, shape index: {}]   ;;  %s8928_s11 = inlined_call_operand.vmem [shape: f32[2,1,16], index: 11, kind: output, shape index: {}]  }
   0x1   :  { %v16_v0 = vstv %s8927_s10 }
   0x2   :  { %17 = vst [vmem:[#allocation2] sm:$0x1] %v16_v0 }
   0x3   :  { %18 = vsyncpa [#allocation4], 0 }
   0x4   :  { %19 = vsyncpa [#allocation6], 0 }
   0x5   :  { %20 = vsyncpa [#allocation9], 0 }
   0x6   :  { %21 = vsyncpa [#allocation12], 0 }
   0x7   :  { %22 = vsyncpa [#allocation15], 0  ;;  %s8515_s19 = smov 0  }
   0x8 LB: > { %s8437_s20 = smov [#allocation5]   ;;  %s8521_s22 = sadd.s32 4294967295, %s8435_s19   ;;  %s8435_s19 = sphi %s8515_s19, %s28_s19  }
   0x9   : > { %s321_s21 = sshll.u32 %s8437_s20, 4  ;;  %p6743_p0 = scmp.ge.s32.totalorder %s8435_s19, 1  ;;  %s322_s21 = int_to_ptr.vmem [resolvable:$true] %s321_s21 }
   0xa   : > { %p295_p1 = scmp.lt.s32.totalorder %s8435_s19, 3  ;;  %p8929_p2 = scmp.eq.s32.totalorder %s8521_s22, 0 }
   0xb   : > { %s8438_s23 = smov [#allocation8]   ;;  %s8439_s25 = smov [#allocation11]  }
   0xc   : > { %p8526_p3 = pnand %p6743_p0, %p295_p1  ;;  %s345_s24 = sshll.u32 %s8438_s23, 4  ;;  %s346_s24 = int_to_ptr.vmem [resolvable:$true] %s345_s24 }
   0xd   : > { %s369_s26 = sshll.u32 %s8439_s25, 4  ;;  %s8440_s28 = smov [#allocation3]   ;;  %s8538_s26 = int_to_ptr.vmem [resolvable:$true] %s369_s26 }
   0xe   : > { %s8931_s10 = scalar_select %p8526_p3, 1, 0 }
   0xf   : > { %p7614_p4 = pneg %p8526_p3  ;;  %s307_s29 = sshll.u32 %s8440_s28, 4  ;;  %s8540_s29 = int_to_ptr.vmem [resolvable:$true] %s307_s29 }
  0x10   : > { %s8212_s12 = scalar_lea.vmem %s322_s21, 128  ;;  %p8220_p10 = scmp.lt.s32.totalorder %s322_s21, %s322_s21 }
  0x11   : > { %p8534_p5 = pnand %p8929_p2, %p7614_p4  ;;  %p8213_p7 = scmp.ne.s32.totalorder %s322_s21, %s8212_s12 }
  0x12   : > { %p8221_p11 = scmp.lt.s32.totalorder %s8212_s12, %s8212_s12 }
  0x13   : > { %p8544_p6 = pneg %p8534_p5 }
  0x14   : > { %p8222_p12 = por %p8221_p11, %p8220_p10 }
  0x15   : > { %p8215_p8 = pnand %p8213_p7, %p8544_p6 }
  0x17   : > { %p8216_p9 = pneg %p8215_p8 }
  0x19   : > { %p8223_p13 = pnand %p8222_p12, %p8216_p9 }
  0x1b   : > { %8226 = shalt.err (!%p8223_p13)
}
  0x1c   : > { %7620 = dma.hbm_to_vmem [thread:$0]  (!%p8534_p5), %s8919_s2, 128, %s322_s21, [#allocation6]  }
  0x1d   : > { %s8238_s15 = scalar_lea.vmem %s346_s24, 64  ;;  %p8246_p2 = scmp.lt.s32.totalorder %s346_s24, %s346_s24 }
  0x1e   : > { %p8239_p0 = scmp.ne.s32.totalorder %s346_s24, %s8238_s15  ;;  %p8247_p7 = scmp.lt.s32.totalorder %s8238_s15, %s8238_s15 }
  0x20   : > { %p8241_p1 = pnand %p8239_p0, %p8544_p6  ;;  %p8248_p8 = por %p8247_p7, %p8246_p2 }
  0x22   : > { %p8242_p4 = pneg %p8241_p1 }
  0x24   : > { %p8249_p3 = pnand %p8248_p8, %p8242_p4 }
  0x26   : > { %8252 = shalt.err (!%p8249_p3)
}
  0x27   : > { %7626 = dma.hbm_to_vmem [thread:$0]  (!%p8534_p5), %s8921_s4, 64, %s346_s24, [#allocation9]  }
  0x28   : > { %s8264_s18 = scalar_lea.vmem %s8538_s26, 32  ;;  %p8272_p12 = scmp.lt.s32.totalorder %s8538_s26, %s8538_s26 }
  0x29   : > { %p8265_p9 = scmp.ne.s32.totalorder %s8538_s26, %s8264_s18  ;;  %p8273_p2 = scmp.lt.s32.totalorder %s8264_s18, %s8264_s18 }
  0x2b   : > { %p8267_p10 = pnand %p8265_p9, %p8544_p6  ;;  %p8274_p13 = por %p8273_p2, %p8272_p12 }
  0x2d   : > { %p8268_p11 = pneg %p8267_p10 }
  0x2f   : > { %p8275_p3 = pnand %p8274_p13, %p8268_p11 }
  0x31   : > { %8278 = shalt.err (!%p8275_p3)
}
  0x32   : > { %7632 = dma.hbm_to_vmem [thread:$0]  (!%p8534_p5), %s8923_s6, 32, %s8538_s26, [#allocation12]  }
  0x33   : > { %s8290_s23 = scalar_lea.vmem %s8540_s29, 57344  ;;  %p8298_p7 = scmp.lt.s32.totalorder %s8540_s29, %s8540_s29 }
  0x34   : > { %p8291_p0 = scmp.ne.s32.totalorder %s8540_s29, %s8290_s23  ;;  %p8299_p8 = scmp.lt.s32.totalorder %s8290_s23, %s8290_s23 }
  0x36   : > { %p8293_p1 = pnand %p8291_p0, %p8544_p6  ;;  %p8300_p9 = por %p8299_p8, %p8298_p7 }
  0x38   : > { %p8294_p4 = pneg %p8293_p1 }
  0x3a   : > { %p8301_p10 = pnand %p8300_p9, %p8294_p4 }
  0x3c   : > { %8304 = shalt.err (!%p8301_p10)
}
  0x3d   : > { %s8441_s24 = smov 512   ;;  %s8442_s25 = smov 32  }
  0x3e   : > { %7617 = dma.hbm_to_vmem [thread:$0]  (!%p8534_p5), %s8918_s1, 57344, %s8540_s29, [#allocation4], %s8441_s24, %s8441_s24, %s8442_s25  }
  0x3f   : > { %s8443_s26 = smov [#allocation7]  }
  0x40   : > { %s331_s13 = sshll.u32 %s8443_s26, 4  ;;  %s332_s13 = int_to_ptr.vmem [resolvable:$true] %s331_s13 }
  0x41   : > { %s8316_s14 = scalar_lea.vmem %s332_s13, 32768  ;;  %p8324_p13 = scmp.lt.s32.totalorder %s332_s13, %s332_s13 }
  0x42   : > { %p8317_p11 = scmp.ne.s32.totalorder %s332_s13, %s8316_s14  ;;  %p8325_p3 = scmp.lt.s32.totalorder %s8316_s14, %s8316_s14 }
  0x44   : > { %p8319_p12 = pnand %p8317_p11, %p8544_p6  ;;  %p8326_p0 = por %p8325_p3, %p8324_p13 }
  0x46   : > { %p8320_p2 = pneg %p8319_p12 }
  0x48   : > { %p8327_p1 = pnand %p8326_p0, %p8320_p2 }
  0x4a   : > { %8330 = shalt.err (!%p8327_p1)
}
  0x4b   : > { %s8444_s15 = smov 256   ;;  %s8445_s16 = smov 16  }
  0x4c   : > { %7623 = dma.hbm_to_vmem [thread:$0]  (!%p8534_p5), %s8920_s3, 32768, %s332_s13, [#allocation6], %s8444_s15, %s8444_s15, %s8445_s16  }
  0x4d   : > { %s8446_s18 = smov [#allocation10]  }
  0x4e   : > { %s355_s20 = sshll.u32 %s8446_s18, 4  ;;  %s356_s20 = int_to_ptr.vmem [resolvable:$true] %s355_s20 }
  0x4f   : > { %s8342_s21 = scalar_lea.vmem %s356_s20, 8192  ;;  %p8350_p9 = scmp.lt.s32.totalorder %s356_s20, %s356_s20 }
  0x50   : > { %p8343_p4 = scmp.ne.s32.totalorder %s356_s20, %s8342_s21  ;;  %p8351_p10 = scmp.lt.s32.totalorder %s8342_s21, %s8342_s21 }
  0x52   : > { %p8345_p7 = pnand %p8343_p4, %p8544_p6  ;;  %p8352_p11 = por %p8351_p10, %p8350_p9 }
  0x54   : > { %p8346_p8 = pneg %p8345_p7 }
  0x56   : > { %p8353_p12 = pnand %p8352_p11, %p8346_p8 }
  0x58   : > { %8356 = shalt.err (!%p8353_p12)
}
  0x59   : > { %s8447_s23 = smov 128   ;;  %s8448_s24 = smov 8  }
  0x5a   : > { %7629 = dma.hbm_to_vmem [thread:$0]  (!%p8534_p5), %s8922_s5, 8192, %s356_s20, [#allocation9], %s8447_s23, %s8447_s23, %s8448_s24  }
  0x5b   : > { %s8449_s12 = smov [#allocation13]   ;;  %s8450_s13 = smov [#allocation14]  }
  0x5c   : > { %s383_s26 = sshll.u32 %s8449_s12, 4  ;;  %s394_s14 = sshll.u32 %s8450_s13, 4  ;;  %s384_s26 = int_to_ptr.vmem [resolvable:$true] %s383_s26  ;;  %s395_s14 = int_to_ptr.vmem [resolvable:$true] %s394_s14 }
  0x5d   : > { %s8368_s15 = scalar_lea.vmem %s384_s26, 16  ;;  %s8375_s16 = scalar_lea.vmem %s384_s26, 32 }
  0x5e   : > { %p8369_p2 = scmp.ne.s32.totalorder %s384_s26, %s8368_s15  ;;  %p8376_p0 = scmp.lt.s32.totalorder %s384_s26, %s384_s26 }
  0x5f   : > { %p8377_p1 = scmp.lt.s32.totalorder %s8375_s16, %s8368_s15 }
  0x60   : > { %p8371_p13 = pnand %p8369_p2, %p8544_p6 }
  0x61   : > { %p8378_p4 = por %p8377_p1, %p8376_p0 }
  0x62   : > { %p8372_p3 = pneg %p8371_p13 }
  0x64   : > { %p8379_p7 = pnand %p8378_p4, %p8372_p3 }
  0x66   : > { %8382 = shalt.err (!%p8379_p7)
}
  0x67   : > { %7635 = dma.hbm_to_vmem [thread:$0]  (!%p8534_p5), %s8925_s8, 16, %s384_s26, [#allocation12]  }
  0x68   : > { %s8394_s18 = scalar_lea.vmem %s395_s14, 16  ;;  %s8401_s20 = scalar_lea.vmem %s395_s14, 32 }
  0x69   : > { %p8395_p8 = scmp.ne.s32.totalorder %s395_s14, %s8394_s18  ;;  %p8402_p11 = scmp.lt.s32.totalorder %s395_s14, %s395_s14 }
  0x6a   : > { %p8403_p12 = scmp.lt.s32.totalorder %s8401_s20, %s8394_s18 }
  0x6b   : > { %p8397_p9 = pnand %p8395_p8, %p8544_p6 }
  0x6c   : > { %p8404_p2 = por %p8403_p12, %p8402_p11 }
  0x6d   : > { %p8398_p10 = pneg %p8397_p9 }
  0x6f   : > { %p8405_p13 = pnand %p8404_p2, %p8398_p10 }
  0x71   : > { %8408 = shalt.err (!%p8405_p13)
}
  0x72   : > { %7638 = dma.hbm_to_vmem [thread:$0]  (!%p8534_p5), %s8926_s9, 16, %s395_s14, [#allocation15]  }
  0x73   : > { %p8934_p3 = scmp.ne.s32.totalorder %s8931_s10, 0 }
  0x74   : > { %p8935_p0 = scmp.eq.s32.totalorder (!%p8934_p3), %s8521_s22, 0 }
  0x75   : > { %420 = sbr.rel (%p8934_p3) target bundleno = 1714 (0x6b2), region = 64 }
  0x7a   : > { %8414 = dma.done.wait (%p8935_p0), [#allocation4], 57344   ;;  %p8936_p6 = pmov %p8935_p0 }
  0x7b   : > { %p8937_p1 = pmov %p8935_p0 }
  0x7c   : > { %8416 = vsyncadd (%p8936_p6), [#allocation4], 4294909952 }
  0x7d   : > { %8418 = dma.done.wait (%p8937_p1), [#allocation6], 32896   ;;  %p8938_p4 = pmov %p8935_p0 }
  0x7e   : > { %p8939_p7 = pmov %p8935_p0 }
  0x7f   : > { %8420 = vsyncadd (%p8938_p4), [#allocation6], 4294934400 }
  0x80   : > { %8422 = dma.done.wait (%p8939_p7), [#allocation9], 8256   ;;  %p8940_p5 = pmov %p8935_p0 }
  0x81   : > { %p8941_p8 = pmov %p8935_p0 }
  0x82   : > { %8424 = vsyncadd (%p8940_p5), [#allocation9], 4294959040 }
  0x83   : > { %8426 = dma.done.wait (%p8941_p8), [#allocation12], 48   ;;  %p8942_p9 = pmov %p8935_p0 }
  0x84   : > { %p8943_p10 = pmov %p8935_p0 }
  0x85   : > { %8428 = vsyncadd (%p8942_p9), [#allocation12], 4294967248 }
  0x86   : > { %8430 = dma.done.wait (%p8943_p10), [#allocation15], 16   ;;  %p8944_p11 = pmov %p8935_p0 }
  0x87   : > { %v8451_v1 = vmov 0   ;;  %v562_v2 = vld [vmem:[#allocation3 + $0x1c0] sm:$0xff]  ;;  %s6762_s10 = sshll.u32 %s8521_s22, 1  ;;  %vm6576_vm0 = vcmask 523264   ;;  %p494_p2 = scmp.lt.s32.totalorder %s8521_s22, 1  ;;  %vm6610_vm1 = vcmask 130112  }
  0x88   : > { %8432 = vsyncadd (%p8944_p11), [#allocation15], 4294967280  ;;  %7678 = vset.pattern.permute.xlu1 %v8451_v1  ;;  %7679 = vset.pattern.permute.xlu0 %v8451_v1  ;;  %v566_v3 = vld [vmem:[#allocation3 + $0x1e0] sm:$0xff]  ;;  %p488_p12 = scmp.lt.s32.totalorder %s6762_s10, 3  ;;  %vm6613_vm2 = vcmask 122880  }
  0x89   : > { %v690_v4 = vld [vmem:[#allocation3 + $0x5c0] sm:$0xff]  ;;  %v6828_v5 = vcombine.high %v562_v2, %v566_v3  ;;  %v6827_v7 = vcombine.low %v562_v2, %v566_v3  ;;  %s8948_s22 = smov (!%p494_p2, %s8521_s22), 1 }
  0x8a   : > { %v694_v6 = vld [vmem:[#allocation3 + $0x5e0] sm:$0xff]  ;;  %s8946_s10 = smov (!%p488_p12, %s6762_s10), 3  ;;  %s496_s24 = scalar_lea.vmem %s8928_s11, %s8948_s22 }
  0x8b   : > { %v554_v8 = vld [vmem:[#allocation3 + $0x180] sm:$0xff]  ;;  %v6956_v10 = vcombine.high %v690_v4, %v694_v6  ;;  %v6955_v11 = vcombine.low %v690_v4, %v694_v6  ;;  %3272 = vmatprep.subr.bf16.mxu0 %v6828_v5  ;;  %s7581_s27 = smul.u32 28, %s8946_s10 }
  0x8c   : > { %v558_v9 = vld [vmem:[#allocation3 + $0x1a0] sm:$0xff]  ;;  %3273 = vmatpush1.bf16.msra.mxu0 %v6827_v7 }
  0x8d   : > { %v6820_v12 = vcombine.high %v554_v8, %v558_v9  ;;  %v682_v13 = vld [vmem:[#allocation3 + $0x580] sm:$0xff]  ;;  %3315 = vmatprep.subr.bf16.mxu1 %v6956_v10  ;;  %v6819_v20 = vcombine.low %v554_v8, %v558_v9  ;;  %s8642_s25 = scalar_lea.vmem %s8917_s0, %s7581_s27 }
  0x8e   : > { %v686_v14 = vld [vmem:[#allocation3 + $0x5a0] sm:$0xff]  ;;  %3316 = vmatpush1.bf16.msra.mxu1 %v6955_v11 }
  0x8f   : > { %v546_v15 = vld [vmem:[#allocation3 + $0x140] sm:$0xff]  ;;  %v6948_v16 = vcombine.high %v682_v13, %v686_v14  ;;  %3274 = vmatprep.subr.bf16.mxu0 %v6820_v12  ;;  %v6947_v21 = vcombine.low %v682_v13, %v686_v14 }
  0x90   : > { %v550_v17 = vld [vmem:[#allocation3 + $0x160] sm:$0xff]  ;;  %3275 = vmatpush1.bf16.msra.mxu0 %v6819_v20 }
  0x91   : > { %v674_v18 = vld [vmem:[#allocation3 + $0x540] sm:$0xff]  ;;  %v6812_v22 = vcombine.high %v546_v15, %v550_v17  ;;  %3317 = vmatprep.subr.bf16.mxu1 %v6948_v16  ;;  %v6811_v28 = vcombine.low %v546_v15, %v550_v17 }
  0x92   : > { %v678_v19 = vld [vmem:[#allocation3 + $0x560] sm:$0xff]  ;;  %3318 = vmatpush1.bf16.msra.mxu1 %v6947_v21 }
  0x93   : > { %v6940_v23 = vcombine.high %v674_v18, %v678_v19  ;;  %v538_v24 = vld [vmem:[#allocation3 + $0x100] sm:$0xff]  ;;  %3276 = vmatprep.subr.bf16.mxu0 %v6812_v22  ;;  %v6939_v29 = vcombine.low %v674_v18, %v678_v19 }
  0x94   : > { %v542_v25 = vld [vmem:[#allocation3 + $0x120] sm:$0xff]  ;;  %3277 = vmatpush1.bf16.msra.mxu0 %v6811_v28 }
  0x95   : > { %v666_v26 = vld [vmem:[#allocation3 + $0x500] sm:$0xff]  ;;  %v6804_v30 = vcombine.high %v538_v24, %v542_v25  ;;  %3319 = vmatprep.subr.bf16.mxu1 %v6940_v23  ;;  %v6803_v36 = vcombine.low %v538_v24, %v542_v25 }
  0x96   : > { %v670_v27 = vld [vmem:[#allocation3 + $0x520] sm:$0xff]  ;;  %3320 = vmatpush1.bf16.msra.mxu1 %v6939_v29 }
  0x97   : > { %v6932_v31 = vcombine.high %v666_v26, %v670_v27  ;;  %v530_v32 = vld [vmem:[#allocation3 + $0xc0] sm:$0xff]  ;;  %3278 = vmatprep.subr.bf16.mxu0 %v6804_v30  ;;  %v6931_v37 = vcombine.low %v666_v26, %v670_v27 }
  0x98   : > { %v534_v33 = vld [vmem:[#allocation3 + $0xe0] sm:$0xff]  ;;  %3279 = vmatpush1.bf16.msra.mxu0 %v6803_v36 }
  0x99   : > { %v658_v34 = vld [vmem:[#allocation3 + $0x4c0] sm:$0xff]  ;;  %v6796_v38 = vcombine.high %v530_v32, %v534_v33  ;;  %3321 = vmatprep.subr.bf16.mxu1 %v6932_v31  ;;  %v6795_v44 = vcombine.low %v530_v32, %v534_v33 }
  0x9a   : > { %v662_v35 = vld [vmem:[#allocation3 + $0x4e0] sm:$0xff]  ;;  %3322 = vmatpush1.bf16.msra.mxu1 %v6931_v37 }
  0x9b   : > { %v6924_v39 = vcombine.high %v658_v34, %v662_v35  ;;  %v522_v40 = vld [vmem:[#allocation3 + $0x80] sm:$0xff]  ;;  %3280 = vmatprep.subr.bf16.mxu0 %v6796_v38  ;;  %v6923_v45 = vcombine.low %v658_v34, %v662_v35 }
  0x9c   : > { %v526_v41 = vld [vmem:[#allocation3 + $0xa0] sm:$0xff]  ;;  %3281 = vmatpush1.bf16.msra.mxu0 %v6795_v44 }
  0x9d   : > { %v650_v42 = vld [vmem:[#allocation3 + $0x480] sm:$0xff]  ;;  %v6788_v46 = vcombine.high %v522_v40, %v526_v41  ;;  %3323 = vmatprep.subr.bf16.mxu1 %v6924_v39  ;;  %v6787_v52 = vcombine.low %v522_v40, %v526_v41 }
  0x9e   : > { %v654_v43 = vld [vmem:[#allocation3 + $0x4a0] sm:$0xff]  ;;  %3324 = vmatpush1.bf16.msra.mxu1 %v6923_v45 }
  0x9f   : > { %v6916_v47 = vcombine.high %v650_v42, %v654_v43  ;;  %v514_v48 = vld [vmem:[#allocation3 + $0x40] sm:$0xff]  ;;  %3282 = vmatprep.subr.bf16.mxu0 %v6788_v46  ;;  %v6915_v54 = vcombine.low %v650_v42, %v654_v43 }
  0xa0   : > { %v518_v49 = vld [vmem:[#allocation3 + $0x60] sm:$0xff]  ;;  %3283 = vmatpush1.bf16.msra.mxu0 %v6787_v52 }
  0xa1   : > { %v642_v50 = vld [vmem:[#allocation3 + $0x440] sm:$0xff]  ;;  %v6780_v55 = vcombine.high %v514_v48, %v518_v49  ;;  %3325 = vmatprep.subr.bf16.mxu1 %v6916_v47  ;;  %v6779_v62 = vcombine.low %v514_v48, %v518_v49 }
  0xa2   : > { %v646_v51 = vld [vmem:[#allocation3 + $0x460] sm:$0xff]  ;;  %3326 = vmatpush1.bf16.msra.mxu1 %v6915_v54 }
  0xa3   : > { %v506_v53 = vld [vmem:[#allocation3] sm:$0xff]  ;;  %v6908_v57 = vcombine.high %v642_v50, %v646_v51  ;;  %3284 = vmatprep.subr.bf16.mxu0 %v6780_v55  ;;  %v6907_v63 = vcombine.low %v642_v50, %v646_v51 }
  0xa4   : > { %v510_v56 = vld [vmem:[#allocation3 + $0x20] sm:$0xff]  ;;  %3285 = vmatpush1.bf16.msra.mxu0 %v6779_v62 }
  0xa5   : > { %v8645_v58 = vld [vmem:[%s8642_s25 + $0x4] ss:$28 sps:$4 sm:$0xff]   ;;  %v8648_v61 = vld [vmem:[%s8642_s25 + $0xc] ss:$28 sps:$4 sm:$0xff]   ;;  %v6772_v0 = vcombine.high %v506_v53, %v510_v56  ;;  %3327 = vmatprep.subr.bf16.mxu1 %v6908_v57  ;;  %v6771_v7 = vcombine.low %v506_v53, %v510_v56 }
  0xa6   : > { %v634_v59 = vld [vmem:[#allocation3 + $0x400] sm:$0xff]  ;;  %3304 = vmatprep.mubr.bf16.mxu0 %v8645_v58  ;;  %3347 = vmatprep.mubr.bf16.mxu1 %v8648_v61 }
  0xa7   : > { %v638_v60 = vld [vmem:[#allocation3 + $0x420] sm:$0xff]  ;;  %3328 = vmatpush1.bf16.msra.mxu1 %v6907_v63  ;;  %3286 = vmatprep.subr.bf16.mxu0 %v6772_v0 }
  0xa8   : > { %v6900_v2 = vcombine.high %v634_v59, %v638_v60  ;;  %v626_v3 = vld [vmem:[#allocation3 + $0x3c0] sm:$0xff]  ;;  %v6899_v8 = vcombine.low %v634_v59, %v638_v60  ;;  %3287 = vmatpush1.bf16.msra.mxu0 %v6771_v7 }
  0xa9   : > { %v630_v4 = vld [vmem:[#allocation3 + $0x3e0] sm:$0xff] }
  0xaa   : > { %v754_v5 = vld [vmem:[#allocation3 + $0x7c0] sm:$0xff]  ;;  %v6892_v9 = vcombine.high %v626_v3, %v630_v4  ;;  %3329 = vmatprep.subr.bf16.mxu1 %v6900_v2  ;;  %v6891_v15 = vcombine.low %v626_v3, %v630_v4 }
  0xab   : > { %v758_v6 = vld [vmem:[#allocation3 + $0x7e0] sm:$0xff]  ;;  %3330 = vmatpush1.bf16.msra.mxu1 %v6899_v8 }
  0xac   : > { %v7020_v10 = vcombine.high %v754_v5, %v758_v6  ;;  %v618_v11 = vld [vmem:[#allocation3 + $0x380] sm:$0xff]  ;;  %3288 = vmatprep.subr.bf16.mxu0 %v6892_v9  ;;  %v7019_v16 = vcombine.low %v754_v5, %v758_v6 }
  0xad   : > { %v622_v12 = vld [vmem:[#allocation3 + $0x3a0] sm:$0xff]  ;;  %3289 = vmatpush2.bf16.msra.mxu0 %v6891_v15 }
  0xae   : > { %v746_v13 = vld [vmem:[#allocation3 + $0x780] sm:$0xff]  ;;  %v6884_v17 = vcombine.high %v618_v11, %v622_v12  ;;  %3331 = vmatprep.subr.bf16.mxu1 %v7020_v10  ;;  %v6883_v23 = vcombine.low %v618_v11, %v622_v12 }
  0xaf   : > { %v750_v14 = vld [vmem:[#allocation3 + $0x7a0] sm:$0xff]  ;;  %3332 = vmatpush2.bf16.msra.mxu1 %v7019_v16 }
  0xb0   : > { %v7012_v18 = vcombine.high %v746_v13, %v750_v14  ;;  %v610_v19 = vld [vmem:[#allocation3 + $0x340] sm:$0xff]  ;;  %3290 = vmatprep.subr.bf16.mxu0 %v6884_v17  ;;  %v7011_v24 = vcombine.low %v746_v13, %v750_v14 }
  0xb1   : > { %v614_v20 = vld [vmem:[#allocation3 + $0x360] sm:$0xff]  ;;  %3291 = vmatpush2.bf16.msra.mxu0 %v6883_v23 }
  0xb2   : > { %v738_v21 = vld [vmem:[#allocation3 + $0x740] sm:$0xff]  ;;  %v6876_v25 = vcombine.high %v610_v19, %v614_v20  ;;  %3333 = vmatprep.subr.bf16.mxu1 %v7012_v18  ;;  %v6875_v31 = vcombine.low %v610_v19, %v614_v20 }
  0xb3   : > { %v742_v22 = vld [vmem:[#allocation3 + $0x760] sm:$0xff]  ;;  %3334 = vmatpush2.bf16.msra.mxu1 %v7011_v24 }
  0xb4   : > { %v7004_v26 = vcombine.high %v738_v21, %v742_v22  ;;  %v602_v27 = vld [vmem:[#allocation3 + $0x300] sm:$0xff]  ;;  %3292 = vmatprep.subr.bf16.mxu0 %v6876_v25  ;;  %v7003_v32 = vcombine.low %v738_v21, %v742_v22 }
  0xb5   : > { %v606_v28 = vld [vmem:[#allocation3 + $0x320] sm:$0xff]  ;;  %3293 = vmatpush2.bf16.msra.mxu0 %v6875_v31 }
  0xb6   : > { %v730_v29 = vld [vmem:[#allocation3 + $0x700] sm:$0xff]  ;;  %v6868_v33 = vcombine.high %v602_v27, %v606_v28  ;;  %3335 = vmatprep.subr.bf16.mxu1 %v7004_v26  ;;  %v6867_v39 = vcombine.low %v602_v27, %v606_v28  ;;  %v8658_v28 = vld [vmem:[%s8642_s25 + $0x14] ss:$28 sps:$4 sm:$0xff]  }
  0xb7   : > { %v734_v30 = vld [vmem:[#allocation3 + $0x720] sm:$0xff]  ;;  %3336 = vmatpush2.bf16.msra.mxu1 %v7003_v32 }
  0xb8   : > { %v6996_v34 = vcombine.high %v730_v29, %v734_v30  ;;  %v594_v35 = vld [vmem:[#allocation3 + $0x2c0] sm:$0xff]  ;;  %3294 = vmatprep.subr.bf16.mxu0 %v6868_v33  ;;  %v6995_v40 = vcombine.low %v730_v29, %v734_v30 }
  0xb9   : > { %v598_v36 = vld [vmem:[#allocation3 + $0x2e0] sm:$0xff]  ;;  %3295 = vmatpush2.bf16.msra.mxu0 %v6867_v39 }
  0xba   : > { %v722_v37 = vld [vmem:[#allocation3 + $0x6c0] sm:$0xff]  ;;  %v6860_v41 = vcombine.high %v594_v35, %v598_v36  ;;  %3337 = vmatprep.subr.bf16.mxu1 %v6996_v34  ;;  %v6859_v47 = vcombine.low %v594_v35, %v598_v36 }
  0xbb   : > { %v726_v38 = vld [vmem:[#allocation3 + $0x6e0] sm:$0xff]  ;;  %3338 = vmatpush2.bf16.msra.mxu1 %v6995_v40 }
  0xbc   : > { %v586_v42 = vld [vmem:[#allocation3 + $0x280] sm:$0xff]  ;;  %v6988_v43 = vcombine.high %v722_v37, %v726_v38  ;;  %3296 = vmatprep.subr.bf16.mxu0 %v6860_v41  ;;  %v6987_v48 = vcombine.low %v722_v37, %v726_v38 }
  0xbd   : > { %v590_v44 = vld [vmem:[#allocation3 + $0x2a0] sm:$0xff]  ;;  %3297 = vmatpush2.bf16.msra.mxu0 %v6859_v47 }
  0xbe   : > { %v714_v45 = vld [vmem:[#allocation3 + $0x680] sm:$0xff]  ;;  %v6852_v49 = vcombine.high %v586_v42, %v590_v44  ;;  %3339 = vmatprep.subr.bf16.mxu1 %v6988_v43  ;;  %v6851_v55 = vcombine.low %v586_v42, %v590_v44 }
  0xbf   : > { %v718_v46 = vld [vmem:[#allocation3 + $0x6a0] sm:$0xff]  ;;  %3340 = vmatpush2.bf16.msra.mxu1 %v6987_v48 }
  0xc0   : > { %v6980_v50 = vcombine.high %v714_v45, %v718_v46  ;;  %v578_v51 = vld [vmem:[#allocation3 + $0x240] sm:$0xff]  ;;  %3298 = vmatprep.subr.bf16.mxu0 %v6852_v49  ;;  %v6979_v56 = vcombine.low %v714_v45, %v718_v46 }
  0xc1   : > { %v582_v52 = vld [vmem:[#allocation3 + $0x260] sm:$0xff]  ;;  %3299 = vmatpush2.bf16.msra.mxu0 %v6851_v55 }
  0xc2   : > { %v706_v53 = vld [vmem:[#allocation3 + $0x640] sm:$0xff]  ;;  %v6844_v57 = vcombine.high %v578_v51, %v582_v52  ;;  %3341 = vmatprep.subr.bf16.mxu1 %v6980_v50  ;;  %v6843_v2 = vcombine.low %v578_v51, %v582_v52 }
  0xc3   : > { %v710_v54 = vld [vmem:[#allocation3 + $0x660] sm:$0xff]  ;;  %3342 = vmatpush2.bf16.msra.mxu1 %v6979_v56 }
  0xc4   : > { %v6972_v59 = vcombine.high %v706_v53, %v710_v54  ;;  %v570_v60 = vld [vmem:[#allocation3 + $0x200] sm:$0xff]  ;;  %3300 = vmatprep.subr.bf16.mxu0 %v6844_v57  ;;  %v6971_v3 = vcombine.low %v706_v53, %v710_v54 }
  0xc5   : > { %v574_v62 = vld [vmem:[#allocation3 + $0x220] sm:$0xff]  ;;  %3301 = vmatpush2.bf16.msra.mxu0 %v6843_v2 }
  0xc6   : > { %v698_v63 = vld [vmem:[#allocation3 + $0x600] sm:$0xff]  ;;  %v6836_v4 = vcombine.high %v570_v60, %v574_v62  ;;  %3343 = vmatprep.subr.bf16.mxu1 %v6972_v59  ;;  %v6835_v10 = vcombine.low %v570_v60, %v574_v62 }
  0xc7   : > { %v702_v0 = vld [vmem:[#allocation3 + $0x620] sm:$0xff]  ;;  %3344 = vmatpush2.bf16.msra.mxu1 %v6971_v3 }
  0xc8   : > { %v6964_v5 = vcombine.high %v698_v63, %v702_v0  ;;  %v818_v6 = vld [vmem:[#allocation3 + $0x9c0] sm:$0xff]  ;;  %3302 = vmatprep.subr.bf16.mxu0 %v6836_v4  ;;  %v6963_v11 = vcombine.low %v698_v63, %v702_v0 }
  0xc9   : > { %v822_v7 = vld [vmem:[#allocation3 + $0x9e0] sm:$0xff]  ;;  %3303 = vmatpush2.bf16.msra.mxu0 %v6835_v10 }
  0xca   : > { %v946_v8 = vld [vmem:[#allocation3 + $0xdc0] sm:$0xff]  ;;  %v7084_v12 = vcombine.high %v818_v6, %v822_v7  ;;  %3345 = vmatprep.subr.bf16.mxu1 %v6964_v5  ;;  %v7083_v20 = vcombine.low %v818_v6, %v822_v7 }
  0xcb   : > { %v950_v9 = vld [vmem:[#allocation3 + $0xde0] sm:$0xff]  ;;  %3346 = vmatpush2.bf16.msra.mxu1 %v6963_v11 }
  0xcc   : > { %v7212_v13 = vcombine.high %v946_v8, %v950_v9  ;;  %v810_v14 = vld [vmem:[#allocation3 + $0x980] sm:$0xff]  ;;  %3358 = vmatprep.subr.bf16.mxu0 %v7084_v12  ;;  %v7211_v21 = vcombine.low %v946_v8, %v950_v9 }
  0xcd   : > { %v814_v15 = vld [vmem:[#allocation3 + $0x9a0] sm:$0xff] }
  0xce   : > { %v8653_v16 = vld [vmem:[%s8642_s25] ss:$28 sps:$4 sm:$0xff]   ;;  %v7685_v19 = vld [vmem:[%s8642_s25 + $0x8] ss:$28 sps:$4 sm:$0xff]   ;;  %v7076_v22 = vcombine.high %v810_v14, %v814_v15  ;;  %3401 = vmatprep.subr.bf16.mxu1 %v7212_v13  ;;  %v7075_v29 = vcombine.low %v810_v14, %v814_v15 }
  0xcf   : > { %v938_v17 = vld [vmem:[#allocation3 + $0xd80] sm:$0xff]  ;;  %3305 = vmatmul.mubr.bf16.vlgmr.msra.gmra.mxu0 %v8653_v16  ;;  %3348 = vmatmul.mubr.bf16.vlgmr.msra.gmra.mxu1 %v7685_v19  ;;  %v563_v13 = vld [vmem:[#allocation3 + $0x1c8] sm:$0xff] }
  0xd0   : > { %v942_v18 = vld [vmem:[#allocation3 + $0xda0] sm:$0xff]  ;;  %3359 = vmatpush1.bf16.msra.mxu0 %v7083_v20  ;;  %3402 = vmatpush1.bf16.msra.mxu1 %v7211_v21  ;;  %v567_v15 = vld [vmem:[#allocation3 + $0x1e8] sm:$0xff] }
  0xd1   : > { %v7204_v23 = vcombine.high %v938_v17, %v942_v18  ;;  %v802_v24 = vld [vmem:[#allocation3 + $0x940] sm:$0xff]  ;;  %3360 = vmatprep.subr.bf16.mxu0 %v7076_v22  ;;  %v7203_v30 = vcombine.low %v938_v17, %v942_v18  ;;  %3433 = vmatprep.mubr.bf16.mxu1 %v8451_v1  ;;  %v555_v22 = vld [vmem:[#allocation3 + $0x188] sm:$0xff] }
  0xd2   : > { %v806_v25 = vld [vmem:[#allocation3 + $0x960] sm:$0xff]  ;;  %3390 = vmatprep.mubr.bf16.mxu0 %v8658_v28 }
  0xd3   : > { %v930_v26 = vld [vmem:[#allocation3 + $0xd40] sm:$0xff]  ;;  %v7068_v31 = vcombine.high %v802_v24, %v806_v25  ;;  %3403 = vmatprep.subr.bf16.mxu1 %v7204_v23  ;;  %v7067_v37 = vcombine.low %v802_v24, %v806_v25  ;;  %v7686_v23 = vld [vmem:[%s8642_s25 + $0x18] ss:$28 sps:$4 sm:$0xff]   ;;  %v6830_v24 = vcombine.high %v563_v13, %v567_v15  ;;  %v559_v25 = vld [vmem:[#allocation3 + $0x1a8] sm:$0xff] }
  0xd4   : > { %v934_v27 = vld [vmem:[#allocation3 + $0xd60] sm:$0xff]  ;;  %3361 = vmatpush1.bf16.msra.mxu0 %v7075_v29  ;;  %3404 = vmatpush1.bf16.msra.mxu1 %v7203_v30 }
  0xd5   : > { %v7196_v32 = vcombine.high %v930_v26, %v934_v27  ;;  %v794_v33 = vld [vmem:[#allocation3 + $0x900] sm:$0xff]  ;;  %3362 = vmatprep.subr.bf16.mxu0 %v7068_v31  ;;  %v7195_v38 = vcombine.low %v930_v26, %v934_v27  ;;  %v6829_v27 = vcombine.low %v563_v13, %v567_v15 }
  0xd6   : > { %v798_v34 = vld [vmem:[#allocation3 + $0x920] sm:$0xff] }
  0xd7   : > { %v922_v35 = vld [vmem:[#allocation3 + $0xd00] sm:$0xff]  ;;  %v7060_v39 = vcombine.high %v794_v33, %v798_v34  ;;  %3405 = vmatprep.subr.bf16.mxu1 %v7196_v32  ;;  %v7059_v45 = vcombine.low %v794_v33, %v798_v34  ;;  %v547_v32 = vld [vmem:[#allocation3 + $0x148] sm:$0xff]  ;;  %v6822_v33 = vcombine.high %v555_v22, %v559_v25 }
  0xd8   : > { %v926_v36 = vld [vmem:[#allocation3 + $0xd20] sm:$0xff]  ;;  %3363 = vmatpush1.bf16.msra.mxu0 %v7067_v37  ;;  %3406 = vmatpush1.bf16.msra.mxu1 %v7195_v38  ;;  %v551_v34 = vld [vmem:[#allocation3 + $0x168] sm:$0xff] }
  0xd9   : > { %v786_v40 = vld [vmem:[#allocation3 + $0x8c0] sm:$0xff]  ;;  %v7188_v43 = vcombine.high %v922_v35, %v926_v36  ;;  %3364 = vmatprep.subr.bf16.mxu0 %v7060_v39  ;;  %v7187_v46 = vcombine.low %v922_v35, %v926_v36  ;;  %v6821_v36 = vcombine.low %v555_v22, %v559_v25 }
  0xda   : > { %v790_v41 = vld [vmem:[#allocation3 + $0x8e0] sm:$0xff] }
  0xdb   : > { %v914_v42 = vld [vmem:[#allocation3 + $0xcc0] sm:$0xff]  ;;  %v7052_v47 = vcombine.high %v786_v40, %v790_v41  ;;  %3407 = vmatprep.subr.bf16.mxu1 %v7188_v43  ;;  %v7051_v53 = vcombine.low %v786_v40, %v790_v41  ;;  %v539_v40 = vld [vmem:[#allocation3 + $0x108] sm:$0xff]  ;;  %v6814_v41 = vcombine.high %v547_v32, %v551_v34 }
  0xdc   : > { %v918_v44 = vld [vmem:[#allocation3 + $0xce0] sm:$0xff]  ;;  %3365 = vmatpush1.bf16.msra.mxu0 %v7059_v45  ;;  %3408 = vmatpush1.bf16.msra.mxu1 %v7187_v46 }
  0xdd   : > { %v778_v48 = vld [vmem:[#allocation3 + $0x880] sm:$0xff]  ;;  %v7180_v51 = vcombine.high %v914_v42, %v918_v44  ;;  %3366 = vmatprep.subr.bf16.mxu0 %v7052_v47  ;;  %v7179_v54 = vcombine.low %v914_v42, %v918_v44  ;;  %v543_v42 = vld [vmem:[#allocation3 + $0x128] sm:$0xff]  ;;  %v6813_v44 = vcombine.low %v547_v32, %v551_v34 }
  0xde   : > { %v782_v49 = vld [vmem:[#allocation3 + $0x8a0] sm:$0xff] }
  0xdf   : > { %v906_v50 = vld [vmem:[#allocation3 + $0xc80] sm:$0xff]  ;;  %v7044_v55 = vcombine.high %v778_v48, %v782_v49  ;;  %3409 = vmatprep.subr.bf16.mxu1 %v7180_v51  ;;  %v7043_v63 = vcombine.low %v778_v48, %v782_v49  ;;  %v531_v48 = vld [vmem:[#allocation3 + $0xc8] sm:$0xff]  ;;  %v6806_v49 = vcombine.high %v539_v40, %v543_v42 }
  0xe0   : > { %v910_v52 = vld [vmem:[#allocation3 + $0xca0] sm:$0xff]  ;;  %3367 = vmatpush1.bf16.msra.mxu0 %v7051_v53  ;;  %3410 = vmatpush1.bf16.msra.mxu1 %v7179_v54 }
  0xe1   : > { %v770_v56 = vld [vmem:[#allocation3 + $0x840] sm:$0xff]  ;;  %v7172_v60 = vcombine.high %v906_v50, %v910_v52  ;;  %3368 = vmatprep.subr.bf16.mxu0 %v7044_v55  ;;  %v7171_v0 = vcombine.low %v906_v50, %v910_v52  ;;  %v535_v50 = vld [vmem:[#allocation3 + $0xe8] sm:$0xff]  ;;  %v6805_v52 = vcombine.low %v539_v40, %v543_v42 }
  0xe2   : > { %v774_v57 = vld [vmem:[#allocation3 + $0x860] sm:$0xff]  ;;  %v523_v55 = vld [vmem:[#allocation3 + $0x88] sm:$0xff] }
  0xe3   : > { %v898_v59 = vld [vmem:[#allocation3 + $0xc40] sm:$0xff]  ;;  %v7036_v2 = vcombine.high %v770_v56, %v774_v57  ;;  %3411 = vmatprep.subr.bf16.mxu1 %v7172_v60  ;;  %v7035_v8 = vcombine.low %v770_v56, %v774_v57  ;;  %v6798_v56 = vcombine.high %v531_v48, %v535_v50  ;;  %v527_v57 = vld [vmem:[#allocation3 + $0xa8] sm:$0xff]  ;;  %v6797_v60 = vcombine.low %v531_v48, %v535_v50 }
  0xe4   : > { %v902_v62 = vld [vmem:[#allocation3 + $0xc60] sm:$0xff]  ;;  %3369 = vmatpush1.bf16.msra.mxu0 %v7043_v63  ;;  %3412 = vmatpush1.bf16.msra.mxu1 %v7171_v0 }
  0xe5   : > { %v762_v3 = vld [vmem:[#allocation3 + $0x800] sm:$0xff]  ;;  %v7164_v6 = vcombine.high %v898_v59, %v902_v62  ;;  %3370 = vmatprep.subr.bf16.mxu0 %v7036_v2  ;;  %v7163_v9 = vcombine.low %v898_v59, %v902_v62  ;;  %v515_v2 = vld [vmem:[#allocation3 + $0x48] sm:$0xff] }
  0xe6   : > { %v766_v4 = vld [vmem:[#allocation3 + $0x820] sm:$0xff] }
  0xe7   : > { %v890_v5 = vld [vmem:[#allocation3 + $0xc00] sm:$0xff]  ;;  %v7028_v10 = vcombine.high %v762_v3, %v766_v4  ;;  %3413 = vmatprep.subr.bf16.mxu1 %v7164_v6  ;;  %v7027_v17 = vcombine.low %v762_v3, %v766_v4  ;;  %v6790_v3 = vcombine.high %v523_v55, %v527_v57  ;;  %v519_v4 = vld [vmem:[#allocation3 + $0x68] sm:$0xff]  ;;  %v6789_v6 = vcombine.low %v523_v55, %v527_v57 }
  0xe8   : > { %v894_v7 = vld [vmem:[#allocation3 + $0xc20] sm:$0xff]  ;;  %3371 = vmatpush1.bf16.msra.mxu0 %v7035_v8  ;;  %3414 = vmatpush1.bf16.msra.mxu1 %v7163_v9  ;;  %v587_v57 = vld [vmem:[#allocation3 + $0x288] sm:$0xff] }
  0xe9   : > { %v882_v11 = vld [vmem:[#allocation3 + $0xbc0] sm:$0xff]  ;;  %v7156_v14 = vcombine.high %v890_v5, %v894_v7  ;;  %3372 = vmatprep.subr.bf16.mxu0 %v7028_v10  ;;  %v7155_v18 = vcombine.low %v890_v5, %v894_v7  ;;  %v507_v10 = vld [vmem:[#allocation3 + $0x8] sm:$0xff] }
  0xea   : > { %v886_v12 = vld [vmem:[#allocation3 + $0xbe0] sm:$0xff] }
  0xeb   : > { %v7148_v19 = vcombine.high %v882_v11, %v886_v12  ;;  %v874_v20 = vld [vmem:[#allocation3 + $0xb80] sm:$0xff]  ;;  %3415 = vmatprep.subr.bf16.mxu1 %v7156_v14  ;;  %v7147_v26 = vcombine.low %v882_v11, %v886_v12  ;;  %v6782_v11 = vcombine.high %v515_v2, %v519_v4  ;;  %v511_v12 = vld [vmem:[#allocation3 + $0x28] sm:$0xff]  ;;  %v6781_v14 = vcombine.low %v515_v2, %v519_v4 }
  0xec   : > { %v878_v21 = vld [vmem:[#allocation3 + $0xba0] sm:$0xff]  ;;  %3373 = vmatpush1.bf16.msra.mxu0 %v7027_v17  ;;  %3416 = vmatpush1.bf16.msra.mxu1 %v7155_v18  ;;  %v627_v17 = vld [vmem:[#allocation3 + $0x3c8] sm:$0xff] }
  0xed   : > { %3374 = vmatprep.subr.bf16.mxu0 %v7148_v19  ;;  %v7140_v29 = vcombine.high %v874_v20, %v878_v21  ;;  %v866_v30 = vld [vmem:[#allocation3 + $0xb40] sm:$0xff]  ;;  %3444 = vmatprep.subr.bf16.mxu1 %v6830_v24  ;;  %v7139_v35 = vcombine.low %v874_v20, %v878_v21  ;;  %v631_v18 = vld [vmem:[#allocation3 + $0x3e8] sm:$0xff]  ;;  %v6774_v20 = vcombine.high %v507_v10, %v511_v12 }
  0xee   : > { %v870_v31 = vld [vmem:[#allocation3 + $0xb60] sm:$0xff]  ;;  %v691_v19 = vld [vmem:[#allocation3 + $0x5c8] sm:$0xff] }
  0xef   : > { %3434 = vmatmul.mubr.bf16.vlgmr.msra.gmra.mxu1 %v7686_v23  ;;  %v7132_v37 = vcombine.high %v866_v30, %v870_v31  ;;  %v858_v38 = vld [vmem:[#allocation3 + $0xb00] sm:$0xff]  ;;  %v7131_v43 = vcombine.low %v866_v30, %v870_v31  ;;  %v695_v21 = vld [vmem:[#allocation3 + $0x5e8] sm:$0xff]  ;;  %v6773_v23 = vcombine.low %v507_v10, %v511_v12  ;;  %v6894_v30 = vcombine.high %v627_v17, %v631_v18 }
  0xf0   : > { %3375 = vmatpush2.bf16.msra.mxu0 %v7147_v26  ;;  %3445 = vmatpush1.bf16.msra.mxu1 %v6829_v27  ;;  %v862_v39 = vld [vmem:[#allocation3 + $0xb20] sm:$0xff]  ;;  %v7689_v24 = vld [vmem:[%s8642_s25 + $0x10] ss:$28 sps:$4 sm:$0xff]   ;;  %v6958_v25 = vcombine.high %v691_v19, %v695_v21  ;;  %v6957_v32 = vcombine.low %v691_v19, %v695_v21 }
  0xf1   : > { %3376 = vmatprep.subr.bf16.mxu0 %v7140_v29  ;;  %3446 = vmatprep.subr.bf16.mxu1 %v6822_v33  ;;  %v7124_v45 = vcombine.high %v858_v38, %v862_v39  ;;  %v850_v46 = vld [vmem:[#allocation3 + $0xac0] sm:$0xff]  ;;  %v7123_v51 = vcombine.low %v858_v38, %v862_v39  ;;  %v619_v26 = vld [vmem:[#allocation3 + $0x388] sm:$0xff]  ;;  %v6893_v33 = vcombine.low %v627_v17, %v631_v18 }
  0xf2   : > { %3476 = vmatprep.mubr.bf16.mxu1 %v8645_v58  ;;  %v854_v47 = vld [vmem:[#allocation3 + $0xae0] sm:$0xff]  ;;  %v623_v27 = vld [vmem:[#allocation3 + $0x3a8] sm:$0xff] }
  0xf3   : > { %v7116_v53 = vcombine.high %v850_v46, %v854_v47  ;;  %v842_v54 = vld [vmem:[#allocation3 + $0xa80] sm:$0xff]  ;;  %v7115_v59 = vcombine.low %v850_v46, %v854_v47  ;;  %v683_v29 = vld [vmem:[#allocation3 + $0x588] sm:$0xff] }
  0xf4   : > { %3377 = vmatpush2.bf16.msra.mxu0 %v7139_v35  ;;  %3447 = vmatpush1.bf16.msra.mxu1 %v6821_v36  ;;  %v846_v58 = vld [vmem:[#allocation3 + $0xaa0] sm:$0xff]  ;;  %v687_v31 = vld [vmem:[#allocation3 + $0x5a8] sm:$0xff] }
  0xf5   : > { %3378 = vmatprep.subr.bf16.mxu0 %v7132_v37  ;;  %3448 = vmatprep.subr.bf16.mxu1 %v6814_v41  ;;  %v7108_v62 = vcombine.high %v842_v54, %v846_v58  ;;  %v834_v63 = vld [vmem:[#allocation3 + $0xa40] sm:$0xff]  ;;  %v7107_v5 = vcombine.low %v842_v54, %v846_v58  ;;  %v6950_v34 = vcombine.high %v683_v29, %v687_v31  ;;  %v611_v35 = vld [vmem:[#allocation3 + $0x348] sm:$0xff] }
  0xf6   : > { %v838_v0 = vld [vmem:[#allocation3 + $0xa60] sm:$0xff]  ;;  %v615_v36 = vld [vmem:[#allocation3 + $0x368] sm:$0xff]  ;;  %v6886_v37 = vcombine.high %v619_v26, %v623_v27  ;;  %v6949_v40 = vcombine.low %v683_v29, %v687_v31  ;;  %v6885_v41 = vcombine.low %v619_v26, %v623_v27 }
  0xf7   : > { %v7100_v7 = vcombine.high %v834_v63, %v838_v0  ;;  %v826_v8 = vld [vmem:[#allocation3 + $0xa00] sm:$0xff]  ;;  %v7099_v13 = vcombine.low %v834_v63, %v838_v0  ;;  %v675_v38 = vld [vmem:[#allocation3 + $0x548] sm:$0xff]  ;;  %v6878_v46 = vcombine.high %v611_v35, %v615_v36 }
  0xf8   : > { %3379 = vmatpush2.bf16.msra.mxu0 %v7131_v43  ;;  %3449 = vmatpush1.bf16.msra.mxu1 %v6813_v44  ;;  %v830_v9 = vld [vmem:[#allocation3 + $0xa20] sm:$0xff]  ;;  %v679_v39 = vld [vmem:[#allocation3 + $0x568] sm:$0xff] }
  0xf9   : > { %3380 = vmatprep.subr.bf16.mxu0 %v7124_v45  ;;  %3450 = vmatprep.subr.bf16.mxu1 %v6806_v49  ;;  %v7092_v15 = vcombine.high %v826_v8, %v830_v9  ;;  %v7091_v22 = vcombine.low %v826_v8, %v830_v9  ;;  %v6942_v42 = vcombine.high %v675_v38, %v679_v39  ;;  %v603_v43 = vld [vmem:[#allocation3 + $0x308] sm:$0xff] }
  0xfa   : > { %v607_v44 = vld [vmem:[#allocation3 + $0x328] sm:$0xff]  ;;  %v6941_v48 = vcombine.low %v675_v38, %v679_v39  ;;  %v6877_v49 = vcombine.low %v611_v35, %v615_v36 }
  0xfb   : > { %v667_v45 = vld [vmem:[#allocation3 + $0x508] sm:$0xff]  ;;  %v6869_v55 = vcombine.low %v603_v43, %v607_v44 }
  0xfc   : > { %3381 = vmatpush2.bf16.msra.mxu0 %v7123_v51  ;;  %3451 = vmatpush1.bf16.msra.mxu1 %v6805_v52  ;;  %v671_v47 = vld [vmem:[#allocation3 + $0x528] sm:$0xff] }
  0xfd   : > { %3382 = vmatprep.subr.bf16.mxu0 %v7116_v53  ;;  %3452 = vmatprep.subr.bf16.mxu1 %v6798_v56  ;;  %v6934_v50 = vcombine.high %v667_v45, %v671_v47  ;;  %v595_v51 = vld [vmem:[#allocation3 + $0x2c8] sm:$0xff]  ;;  %v6933_v58 = vcombine.low %v667_v45, %v671_v47 }
  0xfe   : > { %v599_v52 = vld [vmem:[#allocation3 + $0x2e8] sm:$0xff] }
  0xff   : > { %v659_v53 = vld [vmem:[#allocation3 + $0x4c8] sm:$0xff]  ;;  %v6861_v2 = vcombine.low %v595_v51, %v599_v52 }
 0x100   : > { %3383 = vmatpush2.bf16.msra.mxu0 %v7115_v59  ;;  %3453 = vmatpush1.bf16.msra.mxu1 %v6797_v60  ;;  %v663_v54 = vld [vmem:[#allocation3 + $0x4e8] sm:$0xff] }
 0x101   : > { %3384 = vmatprep.subr.bf16.mxu0 %v7108_v62  ;;  %3454 = vmatprep.subr.bf16.mxu1 %v6790_v3  ;;  %v6926_v56 = vcombine.high %v659_v53, %v663_v54  ;;  %v591_v59 = vld [vmem:[#allocation3 + $0x2a8] sm:$0xff]  ;;  %v6862_v62 = vcombine.high %v595_v51, %v599_v52  ;;  %v6925_v0 = vcombine.low %v659_v53, %v663_v54 }
 0x102   : > { %v651_v60 = vld [vmem:[#allocation3 + $0x488] sm:$0xff]  ;;  %v6853_v10 = vcombine.low %v587_v57, %v591_v59 }
 0x103   : > { %v655_v63 = vld [vmem:[#allocation3 + $0x4a8] sm:$0xff] }
 0x104   : > { %3385 = vmatpush2.bf16.msra.mxu0 %v7107_v5  ;;  %3455 = vmatpush1.bf16.msra.mxu1 %v6789_v6  ;;  %v6918_v3 = vcombine.high %v651_v60, %v655_v63  ;;  %v579_v4 = vld [vmem:[#allocation3 + $0x248] sm:$0xff]  ;;  %v6917_v9 = vcombine.low %v651_v60, %v655_v63 }
 0x105   : > { %3386 = vmatprep.subr.bf16.mxu0 %v7100_v7  ;;  %3456 = vmatprep.subr.bf16.mxu1 %v6782_v11  ;;  %v583_v5 = vld [vmem:[#allocation3 + $0x268] sm:$0xff]  ;;  %v6854_v7 = vcombine.high %v587_v57, %v591_v59 }
 0x106   : > { %v643_v6 = vld [vmem:[#allocation3 + $0x448] sm:$0xff]  ;;  %v6845_v19 = vcombine.low %v579_v4, %v583_v5 }
 0x107   : > { %v647_v8 = vld [vmem:[#allocation3 + $0x468] sm:$0xff] }
 0x108   : > { %3387 = vmatpush2.bf16.msra.mxu0 %v7099_v13  ;;  %3457 = vmatpush1.bf16.msra.mxu1 %v6781_v14  ;;  %v6910_v11 = vcombine.high %v643_v6, %v647_v8  ;;  %v571_v12 = vld [vmem:[#allocation3 + $0x208] sm:$0xff]  ;;  %v6909_v18 = vcombine.low %v643_v6, %v647_v8 }
 0x109   : > { %3388 = vmatprep.subr.bf16.mxu0 %v7092_v15  ;;  %3458 = vmatprep.subr.bf16.mxu1 %v6774_v20  ;;  %v575_v13 = vld [vmem:[#allocation3 + $0x228] sm:$0xff]  ;;  %v6846_v15 = vcombine.high %v579_v4, %v583_v5 }
 0x10a   : > { %v635_v14 = vld [vmem:[#allocation3 + $0x408] sm:$0xff]  ;;  %v6837_v27 = vcombine.low %v571_v12, %v575_v13 }
 0x10b   : > { %v639_v17 = vld [vmem:[#allocation3 + $0x428] sm:$0xff] }
 0x10c   : > { %3389 = vmatpush2.bf16.msra.mxu0 %v7091_v22  ;;  %3459 = vmatpush1.bf16.msra.mxu1 %v6773_v23  ;;  %v6902_v20 = vcombine.high %v635_v14, %v639_v17  ;;  %v755_v21 = vld [vmem:[#allocation3 + $0x7c8] sm:$0xff]  ;;  %v6901_v26 = vcombine.low %v635_v14, %v639_v17 }
 0x10d   : > { %3487 = vmatprep.subr.bf16.mxu0 %v6958_v25  ;;  %3460 = vmatprep.subr.bf16.mxu1 %v6894_v30  ;;  %v759_v22 = vld [vmem:[#allocation3 + $0x7e8] sm:$0xff] }
 0x10e   : > { %v819_v23 = vld [vmem:[#allocation3 + $0x9c8] sm:$0xff]  ;;  %v7022_v29 = vcombine.high %v755_v21, %v759_v22  ;;  %v7021_v35 = vcombine.low %v755_v21, %v759_v22 }
 0x10f   : > { %3391 = vmatmul.mubr.bf16.vlgmr.msra.gmra.mxu0 %v7689_v24  ;;  %v6838_v24 = vcombine.high %v571_v12, %v575_v13  ;;  %v823_v25 = vld [vmem:[#allocation3 + $0x9e8] sm:$0xff] }
 0x110   : > { %3488 = vmatpush1.bf16.msra.mxu0 %v6957_v32  ;;  %3519 = vmatprep.mubr.bf16.mxu0 %v8648_v61  ;;  %v6870_v61 = vcombine.high %v603_v43, %v607_v44  ;;  %v747_v30 = vld [vmem:[#allocation3 + $0x788] sm:$0xff]  ;;  %v7085_v36 = vcombine.low %v819_v23, %v823_v25 }
 0x111   : > { %3461 = vmatpush2.bf16.msra.mxu1 %v6893_v33  ;;  %3489 = vmatprep.subr.bf16.mxu0 %v6950_v34  ;;  %v751_v31 = vld [vmem:[#allocation3 + $0x7a8] sm:$0xff]  ;;  %v7086_v33 = vcombine.high %v819_v23, %v823_v25 }
 0x112   : > { %3462 = vmatprep.subr.bf16.mxu1 %v6886_v37  ;;  %v811_v32 = vld [vmem:[#allocation3 + $0x988] sm:$0xff]  ;;  %v7014_v37 = vcombine.high %v747_v30, %v751_v31  ;;  %v7013_v43 = vcombine.low %v747_v30, %v751_v31 }
 0x113   : > { %v815_v34 = vld [vmem:[#allocation3 + $0x9a8] sm:$0xff] }
 0x114   : > { %3490 = vmatpush1.bf16.msra.mxu0 %v6949_v40  ;;  %v739_v38 = vld [vmem:[#allocation3 + $0x748] sm:$0xff]  ;;  %v7077_v44 = vcombine.low %v811_v32, %v815_v34 }
 0x115   : > { %3463 = vmatpush2.bf16.msra.mxu1 %v6885_v41  ;;  %3491 = vmatprep.subr.bf16.mxu0 %v6942_v42  ;;  %v743_v39 = vld [vmem:[#allocation3 + $0x768] sm:$0xff]  ;;  %v7078_v41 = vcombine.high %v811_v32, %v815_v34 }
 0x116   : > { %3464 = vmatprep.subr.bf16.mxu1 %v6878_v46  ;;  %v803_v40 = vld [vmem:[#allocation3 + $0x948] sm:$0xff]  ;;  %v7006_v45 = vcombine.high %v739_v38, %v743_v39  ;;  %v7005_v51 = vcombine.low %v739_v38, %v743_v39 }
 0x117   : > { %v807_v42 = vld [vmem:[#allocation3 + $0x968] sm:$0xff] }
 0x118   : > { %3492 = vmatpush1.bf16.msra.mxu0 %v6941_v48  ;;  %v731_v46 = vld [vmem:[#allocation3 + $0x708] sm:$0xff]  ;;  %v7069_v52 = vcombine.low %v803_v40, %v807_v42 }
 0x119   : > { %3465 = vmatpush2.bf16.msra.mxu1 %v6877_v49  ;;  %3493 = vmatprep.subr.bf16.mxu0 %v6934_v50  ;;  %v735_v47 = vld [vmem:[#allocation3 + $0x728] sm:$0xff]  ;;  %v7070_v49 = vcombine.high %v803_v40, %v807_v42 }
 0x11a   : > { %3466 = vmatprep.subr.bf16.mxu1 %v6870_v61  ;;  %v795_v48 = vld [vmem:[#allocation3 + $0x908] sm:$0xff] }
 0x11b   : > { %v799_v50 = vld [vmem:[#allocation3 + $0x928] sm:$0xff] }
 0x11c   : > { %3494 = vmatpush1.bf16.msra.mxu0 %v6933_v58  ;;  %v723_v53 = vld [vmem:[#allocation3 + $0x6c8] sm:$0xff]  ;;  %v7062_v58 = vcombine.high %v795_v48, %v799_v50  ;;  %v7061_v57 = vcombine.low %v795_v48, %v799_v50 }
 0x11d   : > { %3467 = vmatpush2.bf16.msra.mxu1 %v6869_v55  ;;  %3495 = vmatprep.subr.bf16.mxu0 %v6926_v56  ;;  %v727_v61 = vld [vmem:[#allocation3 + $0x6e8] sm:$0xff]  ;;  %v6997_v56 = vcombine.low %v731_v46, %v735_v47 }
 0x11e   : > { %3468 = vmatprep.subr.bf16.mxu1 %v6862_v62  ;;  %v787_v54 = vld [vmem:[#allocation3 + $0x8c8] sm:$0xff]  ;;  %v6990_v59 = vcombine.high %v723_v53, %v727_v61 }
 0x11f   : > { %v791_v55 = vld [vmem:[#allocation3 + $0x8e8] sm:$0xff] }
 0x120   : > { %3496 = vmatpush1.bf16.msra.mxu0 %v6925_v0  ;;  %v715_v60 = vld [vmem:[#allocation3 + $0x688] sm:$0xff]  ;;  %v7054_v63 = vcombine.high %v787_v54, %v791_v55 }
 0x121   : > { %3469 = vmatpush2.bf16.msra.mxu1 %v6861_v2  ;;  %3497 = vmatprep.subr.bf16.mxu0 %v6918_v3  ;;  %v779_v62 = vld [vmem:[#allocation3 + $0x888] sm:$0xff]  ;;  %v6989_v2 = vcombine.low %v723_v53, %v727_v61  ;;  %v7053_v3 = vcombine.low %v787_v54, %v791_v55 }
 0x122   : > { %3470 = vmatprep.subr.bf16.mxu1 %v6854_v7  ;;  %v783_v0 = vld [vmem:[#allocation3 + $0x8a8] sm:$0xff] }
 0x123   : > { %v707_v5 = vld [vmem:[#allocation3 + $0x648] sm:$0xff]  ;;  %v7046_v8 = vcombine.high %v779_v62, %v783_v0 }
 0x124   : > { %3498 = vmatpush1.bf16.msra.mxu0 %v6917_v9  ;;  %v711_v6 = vld [vmem:[#allocation3 + $0x668] sm:$0xff] }
 0x125   : > { %3471 = vmatpush2.bf16.msra.mxu1 %v6853_v10  ;;  %3499 = vmatprep.subr.bf16.mxu0 %v6910_v11  ;;  %v771_v7 = vld [vmem:[#allocation3 + $0x848] sm:$0xff]  ;;  %v7045_v11 = vcombine.low %v779_v62, %v783_v0  ;;  %v6974_v12 = vcombine.high %v707_v5, %v711_v6 }
 0x126   : > { %3472 = vmatprep.subr.bf16.mxu1 %v6846_v15  ;;  %v775_v9 = vld [vmem:[#allocation3 + $0x868] sm:$0xff] }
 0x127   : > { %v699_v13 = vld [vmem:[#allocation3 + $0x608] sm:$0xff]  ;;  %v7038_v17 = vcombine.high %v771_v7, %v775_v9 }
 0x128   : > { %3500 = vmatpush1.bf16.msra.mxu0 %v6909_v18  ;;  %v703_v14 = vld [vmem:[#allocation3 + $0x628] sm:$0xff] }
 0x129   : > { %3473 = vmatpush2.bf16.msra.mxu1 %v6845_v19  ;;  %3501 = vmatprep.subr.bf16.mxu0 %v6902_v20  ;;  %v763_v15 = vld [vmem:[#allocation3 + $0x808] sm:$0xff]  ;;  %v6973_v19 = vcombine.low %v707_v5, %v711_v6  ;;  %v7037_v20 = vcombine.low %v771_v7, %v775_v9  ;;  %v6966_v21 = vcombine.high %v699_v13, %v703_v14 }
 0x12a   : > { %3474 = vmatprep.subr.bf16.mxu1 %v6838_v24  ;;  %v767_v18 = vld [vmem:[#allocation3 + $0x828] sm:$0xff] }
 0x12b   : > { %v883_v22 = vld [vmem:[#allocation3 + $0xbc8] sm:$0xff]  ;;  %v7030_v25 = vcombine.high %v763_v15, %v767_v18 }
 0x12c   : > { %3502 = vmatpush1.bf16.msra.mxu0 %v6901_v26  ;;  %v887_v23 = vld [vmem:[#allocation3 + $0xbe8] sm:$0xff] }
 0x12d   : > { %3475 = vmatpush2.bf16.msra.mxu1 %v6837_v27  ;;  %3503 = vmatprep.subr.bf16.mxu0 %v7022_v29  ;;  %v947_v24 = vld [vmem:[#allocation3 + $0xdc8] sm:$0xff]  ;;  %v6965_v27 = vcombine.low %v699_v13, %v703_v14  ;;  %v7029_v29 = vcombine.low %v763_v15, %v767_v18  ;;  %v7150_v34 = vcombine.high %v883_v22, %v887_v23 }
 0x12e   : > { %3530 = vmatprep.subr.bf16.mxu1 %v7086_v33  ;;  %v951_v26 = vld [vmem:[#allocation3 + $0xde8] sm:$0xff] }
 0x12f   : > { %v7214_v30 = vcombine.high %v947_v24, %v951_v26  ;;  %v875_v31 = vld [vmem:[#allocation3 + $0xb88] sm:$0xff] }
 0x130   : > { %3477 = vmatmul.mubr.bf16.vlgmr.msra.gmra.mxu1 %v8653_v16  ;;  %3504 = vmatpush2.bf16.msra.mxu0 %v7021_v35  ;;  %v6998_v16 = vcombine.high %v731_v46, %v735_v47  ;;  %v879_v32 = vld [vmem:[#allocation3 + $0xba8] sm:$0xff] }
 0x131   : > { %3531 = vmatpush1.bf16.msra.mxu1 %v7085_v36  ;;  %3505 = vmatprep.subr.bf16.mxu0 %v7014_v37  ;;  %v939_v33 = vld [vmem:[#allocation3 + $0xd88] sm:$0xff]  ;;  %v7213_v36 = vcombine.low %v947_v24, %v951_v26  ;;  %v7149_v37 = vcombine.low %v883_v22, %v887_v23  ;;  %v7142_v42 = vcombine.high %v875_v31, %v879_v32  ;;  %v564_v24 = vld [vmem:[#allocation3 + $0x1d0] sm:$0xff] }
 0x132   : > { %3532 = vmatprep.subr.bf16.mxu1 %v7078_v41  ;;  %3562 = vmatprep.mubr.bf16.mxu1 %v8658_v28  ;;  %v719_v28 = vld [vmem:[#allocation3 + $0x6a8] sm:$0xff]  ;;  %v7141_v46 = vcombine.low %v875_v31, %v879_v32  ;;  %v692_v26 = vld [vmem:[#allocation3 + $0x5d0] sm:$0xff] }
 0x133   : > { %v6982_v4 = vcombine.high %v715_v60, %v719_v28  ;;  %v6981_v10 = vcombine.low %v715_v60, %v719_v28  ;;  %v943_v35 = vld [vmem:[#allocation3 + $0xda8] sm:$0xff] }
 0x134   : > { %3506 = vmatpush2.bf16.msra.mxu0 %v7013_v43  ;;  %v7206_v38 = vcombine.high %v939_v33, %v943_v35  ;;  %v867_v39 = vld [vmem:[#allocation3 + $0xb48] sm:$0xff] }
 0x135   : > { %3533 = vmatpush1.bf16.msra.mxu1 %v7077_v44  ;;  %3507 = vmatprep.subr.bf16.mxu0 %v7006_v45  ;;  %v871_v40 = vld [vmem:[#allocation3 + $0xb68] sm:$0xff]  ;;  %v7205_v45 = vcombine.low %v939_v33, %v943_v35  ;;  %v556_v33 = vld [vmem:[#allocation3 + $0x190] sm:$0xff] }
 0x136   : > { %3534 = vmatprep.subr.bf16.mxu1 %v7070_v49  ;;  %v931_v41 = vld [vmem:[#allocation3 + $0xd48] sm:$0xff]  ;;  %v7133_v53 = vcombine.low %v867_v39, %v871_v40  ;;  %v684_v35 = vld [vmem:[#allocation3 + $0x590] sm:$0xff] }
 0x137   : > { %v935_v43 = vld [vmem:[#allocation3 + $0xd68] sm:$0xff] }
 0x138   : > { %3508 = vmatpush2.bf16.msra.mxu0 %v7005_v51  ;;  %v8669_v44 = vld [vmem:[%s8642_s25 + $0x8] ss:$28 sps:$4 sm:$0xff]   ;;  %v7198_v47 = vcombine.high %v931_v41, %v935_v43  ;;  %v7134_v51 = vcombine.high %v867_v39, %v871_v40 }
 0x139   : > { %3535 = vmatpush1.bf16.msra.mxu1 %v7069_v52  ;;  %3509 = vmatprep.subr.bf16.mxu0 %v6998_v16  ;;  %v859_v48 = vld [vmem:[#allocation3 + $0xb08] sm:$0xff]  ;;  %v7197_v16 = vcombine.low %v931_v41, %v935_v43  ;;  %v548_v41 = vld [vmem:[#allocation3 + $0x150] sm:$0xff] }
 0x13a   : > { %3536 = vmatprep.subr.bf16.mxu1 %v7062_v58  ;;  %v863_v49 = vld [vmem:[#allocation3 + $0xb28] sm:$0xff]  ;;  %v676_v43 = vld [vmem:[#allocation3 + $0x550] sm:$0xff] }
 0x13b   : > { %v923_v50 = vld [vmem:[#allocation3 + $0xd08] sm:$0xff]  ;;  %v7125_v60 = vcombine.low %v859_v48, %v863_v49 }
 0x13c   : > { %3510 = vmatpush2.bf16.msra.mxu0 %v6997_v56  ;;  %v927_v52 = vld [vmem:[#allocation3 + $0xd28] sm:$0xff]  ;;  %v7126_v56 = vcombine.high %v859_v48, %v863_v49 }
 0x13d   : > { %3537 = vmatpush1.bf16.msra.mxu1 %v7061_v57  ;;  %3511 = vmatprep.subr.bf16.mxu0 %v6990_v59  ;;  %v7190_v61 = vcombine.high %v923_v50, %v927_v52  ;;  %v851_v54 = vld [vmem:[#allocation3 + $0xac8] sm:$0xff]  ;;  %v7189_v59 = vcombine.low %v923_v50, %v927_v52  ;;  %v540_v52 = vld [vmem:[#allocation3 + $0x110] sm:$0xff] }
 0x13e   : > { %3538 = vmatprep.subr.bf16.mxu1 %v7054_v63  ;;  %v855_v58 = vld [vmem:[#allocation3 + $0xae8] sm:$0xff] }
 0x13f   : > { %v915_v55 = vld [vmem:[#allocation3 + $0xcc8] sm:$0xff]  ;;  %v7117_v5 = vcombine.low %v851_v54, %v855_v58 }
 0x140   : > { %3512 = vmatpush2.bf16.msra.mxu0 %v6989_v2  ;;  %v919_v57 = vld [vmem:[#allocation3 + $0xce8] sm:$0xff]  ;;  %v7118_v2 = vcombine.high %v851_v54, %v855_v58  ;;  %v672_v54 = vld [vmem:[#allocation3 + $0x530] sm:$0xff]  ;;  %v8682_v58 = vld [vmem:[%s8642_s25 + $0x4] ss:$28 sps:$4 sm:$0xff]  }
 0x141   : > { %3539 = vmatpush1.bf16.msra.mxu1 %v7053_v3  ;;  %3513 = vmatprep.subr.bf16.mxu0 %v6982_v4  ;;  %v7182_v28 = vcombine.high %v915_v55, %v919_v57  ;;  %v843_v62 = vld [vmem:[#allocation3 + $0xa88] sm:$0xff]  ;;  %v7181_v4 = vcombine.low %v915_v55, %v919_v57 }
 0x142   : > { %3540 = vmatprep.subr.bf16.mxu1 %v7046_v8  ;;  %v847_v63 = vld [vmem:[#allocation3 + $0xaa8] sm:$0xff] }
 0x143   : > { %v907_v0 = vld [vmem:[#allocation3 + $0xc88] sm:$0xff]  ;;  %v7109_v13 = vcombine.low %v843_v62, %v847_v63 }
 0x144   : > { %3514 = vmatpush2.bf16.msra.mxu0 %v6981_v10  ;;  %v911_v3 = vld [vmem:[#allocation3 + $0xca8] sm:$0xff]  ;;  %v7110_v10 = vcombine.high %v843_v62, %v847_v63  ;;  %v660_v62 = vld [vmem:[#allocation3 + $0x4d0] sm:$0xff] }
 0x145   : > { %3541 = vmatpush1.bf16.msra.mxu1 %v7045_v11  ;;  %3515 = vmatprep.subr.bf16.mxu0 %v6974_v12  ;;  %v7174_v6 = vcombine.high %v907_v0, %v911_v3  ;;  %v835_v7 = vld [vmem:[#allocation3 + $0xa48] sm:$0xff]  ;;  %v7173_v12 = vcombine.low %v907_v0, %v911_v3  ;;  %v664_v0 = vld [vmem:[#allocation3 + $0x4f0] sm:$0xff] }
 0x146   : > { %3542 = vmatprep.subr.bf16.mxu1 %v7038_v17  ;;  %v839_v8 = vld [vmem:[#allocation3 + $0xa68] sm:$0xff] }
 0x147   : > { %v899_v9 = vld [vmem:[#allocation3 + $0xc48] sm:$0xff]  ;;  %v7101_v22 = vcombine.low %v835_v7, %v839_v8 }
 0x148   : > { %3516 = vmatpush2.bf16.msra.mxu0 %v6973_v19  ;;  %v903_v11 = vld [vmem:[#allocation3 + $0xc68] sm:$0xff]  ;;  %v7102_v19 = vcombine.high %v835_v7, %v839_v8  ;;  %v652_v7 = vld [vmem:[#allocation3 + $0x490] sm:$0xff]  ;;  %v6928_v8 = vcombine.high %v660_v62, %v664_v0 }
 0x149   : > { %3543 = vmatpush1.bf16.msra.mxu1 %v7037_v20  ;;  %3517 = vmatprep.subr.bf16.mxu0 %v6966_v21  ;;  %v7166_v14 = vcombine.high %v899_v9, %v903_v11  ;;  %v827_v15 = vld [vmem:[#allocation3 + $0xa08] sm:$0xff]  ;;  %v7165_v21 = vcombine.low %v899_v9, %v903_v11  ;;  %v656_v9 = vld [vmem:[#allocation3 + $0x4b0] sm:$0xff]  ;;  %v6927_v11 = vcombine.low %v660_v62, %v664_v0 }
 0x14a   : > { %3544 = vmatprep.subr.bf16.mxu1 %v7030_v25  ;;  %v831_v17 = vld [vmem:[#allocation3 + $0xa28] sm:$0xff]  ;;  %v568_v25 = vld [vmem:[#allocation3 + $0x1f0] sm:$0xff] }
 0x14b   : > { %v891_v18 = vld [vmem:[#allocation3 + $0xc08] sm:$0xff]  ;;  %v7093_v31 = vcombine.low %v827_v15, %v831_v17  ;;  %v6832_v32 = vcombine.high %v564_v24, %v568_v25 }
 0x14c   : > { %3518 = vmatpush2.bf16.msra.mxu0 %v6965_v27  ;;  %v895_v20 = vld [vmem:[#allocation3 + $0xc28] sm:$0xff]  ;;  %v7094_v27 = vcombine.high %v827_v15, %v831_v17  ;;  %v644_v15 = vld [vmem:[#allocation3 + $0x450] sm:$0xff]  ;;  %v6920_v17 = vcombine.high %v652_v7, %v656_v9 }
 0x14d   : > { %3545 = vmatpush1.bf16.msra.mxu1 %v7029_v29  ;;  %3573 = vmatprep.subr.bf16.mxu0 %v7214_v30  ;;  %v7158_v23 = vcombine.high %v891_v18, %v895_v20  ;;  %v696_v29 = vld [vmem:[#allocation3 + $0x5f0] sm:$0xff]  ;;  %v7157_v30 = vcombine.low %v891_v18, %v895_v20  ;;  %v8686_v55 = vld [vmem:[%s8642_s25 + $0xc] ss:$28 sps:$4 sm:$0xff]   ;;  %v956_v20 = vlaneseq }
 0x14e   : > { %3546 = vmatprep.subr.bf16.mxu1 %v7150_v34  ;;  %v560_v34 = vld [vmem:[#allocation3 + $0x1b0] sm:$0xff]  ;;  %v6959_v39 = vcombine.low %v692_v26, %v696_v29 }
 0x14f   : > { %3520 = vmatmul.mubr.bf16.vlgmr.msra.gmra.mxu0 %v8669_v44  ;;  %v6824_v40 = vcombine.high %v556_v33, %v560_v34  ;;  %v8678_v48 = vld [vmem:[%s8642_s25 + $0x10] ss:$28 sps:$4 sm:$0xff]   ;;  %v6823_v49 = vcombine.low %v556_v33, %v560_v34 }
 0x150   : > { %3574 = vmatpush1.bf16.msra.mxu0 %v7213_v36  ;;  %3605 = vmatprep.mubr.bf16.mxu0 %v8451_v1  ;;  %v6960_v36 = vcombine.high %v692_v26, %v696_v29  ;;  %v648_v18 = vld [vmem:[#allocation3 + $0x470] sm:$0xff] }
 0x151   : > { %3547 = vmatpush2.bf16.msra.mxu1 %v7149_v37  ;;  %3575 = vmatprep.subr.bf16.mxu0 %v7206_v38  ;;  %v688_v37 = vld [vmem:[#allocation3 + $0x5b0] sm:$0xff]  ;;  %v6831_v38 = vcombine.low %v564_v24, %v568_v25  ;;  %v6912_v26 = vcombine.high %v644_v15, %v648_v18 }
 0x152   : > { %3548 = vmatprep.subr.bf16.mxu1 %v7142_v42  ;;  %v552_v42 = vld [vmem:[#allocation3 + $0x170] sm:$0xff]  ;;  %v6951_v50 = vcombine.low %v684_v35, %v688_v37 }
 0x153   : > { %v512_v24 = vld [vmem:[#allocation3 + $0x30] sm:$0xff] }
 0x154   : > { %3576 = vmatpush1.bf16.msra.mxu0 %v7205_v45  ;;  %v6952_v45 = vcombine.high %v684_v35, %v688_v37  ;;  %v636_v25 = vld [vmem:[#allocation3 + $0x410] sm:$0xff] }
 0x155   : > { %3549 = vmatpush2.bf16.msra.mxu1 %v7141_v46  ;;  %3577 = vmatprep.subr.bf16.mxu0 %v7198_v47  ;;  %v680_v46 = vld [vmem:[#allocation3 + $0x570] sm:$0xff] }
 0x156   : > { %3550 = vmatprep.subr.bf16.mxu1 %v7134_v51  ;;  %v8674_v47 = vld [vmem:[%s8642_s25 + $0x18] ss:$28 sps:$4 sm:$0xff]   ;;  %v6816_v51 = vcombine.high %v548_v41, %v552_v42  ;;  %v6943_v57 = vcombine.low %v676_v43, %v680_v46 }
 0x157   : > { %v628_v34 = vld [vmem:[#allocation3 + $0x3d0] sm:$0xff] }
 0x158   : > { %3578 = vmatpush1.bf16.msra.mxu0 %v7197_v16  ;;  %v544_v16 = vld [vmem:[#allocation3 + $0x130] sm:$0xff] }
 0x159   : > { %3551 = vmatpush2.bf16.msra.mxu1 %v7133_v53  ;;  %3579 = vmatprep.subr.bf16.mxu0 %v7190_v61  ;;  %v668_v53 = vld [vmem:[#allocation3 + $0x510] sm:$0xff]  ;;  %v6944_v61 = vcombine.high %v676_v43, %v680_v46 }
 0x15a   : > { %3552 = vmatprep.subr.bf16.mxu1 %v7126_v56  ;;  %v6815_v56 = vcombine.low %v548_v41, %v552_v42  ;;  %v6936_v63 = vcombine.high %v668_v53, %v672_v54  ;;  %v6935_v3 = vcombine.low %v668_v53, %v672_v54  ;;  %v632_v35 = vld [vmem:[#allocation3 + $0x3f0] sm:$0xff]  ;;  %v8695_v41 = vld [vmem:[#allocation5] sm:$0xff] }
 0x15b   : > { %v760_v37 = vld [vmem:[#allocation3 + $0x7f0] sm:$0xff]  ;;  %v6896_v42 = vcombine.high %v628_v34, %v632_v35 }
 0x15c   : > { %3580 = vmatpush1.bf16.msra.mxu0 %v7189_v59  ;;  %v6808_v59 = vcombine.high %v540_v52, %v544_v16  ;;  %v624_v46 = vld [vmem:[#allocation3 + $0x3b0] sm:$0xff] }
 0x15d   : > { %3553 = vmatpush2.bf16.msra.mxu1 %v7125_v60  ;;  %3581 = vmatprep.subr.bf16.mxu0 %v7182_v28  ;;  %v532_v60 = vld [vmem:[#allocation3 + $0xd0] sm:$0xff] }
 0x15e   : > { %3554 = vmatprep.subr.bf16.mxu1 %v7118_v2  ;;  %v536_v28 = vld [vmem:[#allocation3 + $0xf0] sm:$0xff]  ;;  %v6807_v2 = vcombine.low %v540_v52, %v544_v16  ;;  %v6895_v52 = vcombine.low %v628_v34, %v632_v35 }
 0x15f   : > { %v612_v54 = vld [vmem:[#allocation3 + $0x350] sm:$0xff] }
 0x160   : > { %3582 = vmatpush1.bf16.msra.mxu0 %v7181_v4  ;;  %v6800_v4 = vcombine.high %v532_v60, %v536_v28  ;;  %v720_v34 = vld [vmem:[#allocation3 + $0x6b0] sm:$0xff] }
 0x161   : > { %3555 = vmatpush2.bf16.msra.mxu1 %v7117_v5  ;;  %3583 = vmatprep.subr.bf16.mxu0 %v7174_v6  ;;  %v524_v5 = vld [vmem:[#allocation3 + $0x90] sm:$0xff] }
 0x162   : > { %3556 = vmatprep.subr.bf16.mxu1 %v7110_v10  ;;  %v528_v6 = vld [vmem:[#allocation3 + $0xb0] sm:$0xff]  ;;  %v6799_v10 = vcombine.low %v532_v60, %v536_v28 }
 0x163   : > { %v744_v60 = vld [vmem:[#allocation3 + $0x770] sm:$0xff] }
 0x164   : > { %3584 = vmatpush1.bf16.msra.mxu0 %v7173_v12  ;;  %v6792_v12 = vcombine.high %v524_v5, %v528_v6 }
 0x165   : > { %3557 = vmatpush2.bf16.msra.mxu1 %v7109_v13  ;;  %3585 = vmatprep.subr.bf16.mxu0 %v7166_v14  ;;  %v516_v13 = vld [vmem:[#allocation3 + $0x50] sm:$0xff] }
 0x166   : > { %3558 = vmatprep.subr.bf16.mxu1 %v7102_v19  ;;  %v520_v14 = vld [vmem:[#allocation3 + $0x70] sm:$0xff]  ;;  %v6791_v19 = vcombine.low %v524_v5, %v528_v6 }
 0x167   : > { %v6783_v29 = vcombine.low %v516_v13, %v520_v14 }
 0x168   : > { %3586 = vmatpush1.bf16.msra.mxu0 %v7165_v21  ;;  %v6919_v21 = vcombine.low %v652_v7, %v656_v9  ;;  %v604_v7 = vld [vmem:[#allocation3 + $0x310] sm:$0xff] }
 0x169   : > { %3559 = vmatpush2.bf16.msra.mxu1 %v7101_v22  ;;  %3587 = vmatprep.subr.bf16.mxu0 %v7158_v23  ;;  %v6784_v22 = vcombine.high %v516_v13, %v520_v14  ;;  %v508_v23 = vld [vmem:[#allocation3 + $0x10] sm:$0xff] }
 0x16a   : > { %3560 = vmatprep.subr.bf16.mxu1 %v7094_v27  ;;  %v640_v27 = vld [vmem:[#allocation3 + $0x430] sm:$0xff] }
 0x16b   : > { %v6904_v33 = vcombine.high %v636_v25, %v640_v27 }
 0x16c   : > { %3588 = vmatpush1.bf16.msra.mxu0 %v7157_v30  ;;  %v8690_v30 = vshrl.u32 %v956_v20, 7 }
 0x16d   : > { %3561 = vmatpush2.bf16.msra.mxu1 %v7093_v31  ;;  %3616 = vmatprep.subr.bf16.mxu0 %v6832_v32  ;;  %v6911_v31 = vcombine.low %v644_v15, %v648_v18  ;;  %v6776_v32 = vcombine.high %v508_v23, %v512_v24 }
 0x16e   : > { %3659 = vmatprep.subr.bf16.mxu1 %v6960_v36  ;;  %v756_v36 = vld [vmem:[#allocation3 + $0x7d0] sm:$0xff] }
 0x16f   : > { %3606 = vmatmul.mubr.bf16.vlgmr.msra.gmra.mxu0 %v8674_v47  ;;  %v7024_v43 = vcombine.high %v756_v36, %v760_v37  ;;  %v7023_v16 = vcombine.low %v756_v36, %v760_v37 }
 0x170   : > { %3563 = vmatmul.mubr.bf16.vlgmr.msra.gmra.mxu1 %v8678_v48  ;;  %3617 = vmatpush1.bf16.msra.mxu0 %v6831_v38  ;;  %v6775_v38 = vcombine.low %v508_v23, %v512_v24  ;;  %v724_v23 = vld [vmem:[#allocation3 + $0x6d0] sm:$0xff] }
 0x171   : > { %3660 = vmatpush1.bf16.msra.mxu1 %v6959_v39  ;;  %3618 = vmatprep.subr.bf16.mxu0 %v6824_v40  ;;  %v8693_v39 = vsub.s32 0, %v8690_v30  ;;  %v6903_v40 = vcombine.low %v636_v25, %v640_v27  ;;  %v728_v24 = vld [vmem:[#allocation3 + $0x6f0] sm:$0xff] }
 0x172   : > { %3661 = vmatprep.subr.bf16.mxu1 %v6952_v45  ;;  %3648 = vmatprep.mubr.bf16.mxu0 %v8682_v58  ;;  %v620_v45 = vld [vmem:[#allocation3 + $0x390] sm:$0xff]  ;;  %v6991_v36 = vcombine.low %v724_v23, %v728_v24 }
 0x173   : > { %3691 = vmatprep.mubr.bf16.mxu1 %v8686_v55  ;;  %v6888_v53 = vcombine.high %v620_v45, %v624_v46 }
 0x174   : > { %3619 = vmatpush1.bf16.msra.mxu0 %v6823_v49  ;;  %v748_v49 = vld [vmem:[#allocation3 + $0x790] sm:$0xff] }
 0x175   : > { %3662 = vmatpush1.bf16.msra.mxu1 %v6951_v50  ;;  %3620 = vmatprep.subr.bf16.mxu0 %v6816_v51  ;;  %v752_v50 = vld [vmem:[#allocation3 + $0x7b0] sm:$0xff]  ;;  %v959_v51 = vrot.slane %v8695_v41, %v8693_v39 }
 0x176   : > { %3663 = vmatprep.subr.bf16.mxu1 %v6944_v61  ;;  %v7016_v61 = vcombine.high %v748_v49, %v752_v50 }
 0x178   : > { %3621 = vmatpush1.bf16.msra.mxu0 %v6815_v56  ;;  %v616_v56 = vld [vmem:[#allocation3 + $0x370] sm:$0xff] }
 0x179   : > { %3664 = vmatpush1.bf16.msra.mxu1 %v6943_v57  ;;  %3622 = vmatprep.subr.bf16.mxu0 %v6808_v59  ;;  %v740_v59 = vld [vmem:[#allocation3 + $0x750] sm:$0xff]  ;;  %v6879_v13 = vcombine.low %v612_v54, %v616_v56 }
 0x17a   : > { %3665 = vmatprep.subr.bf16.mxu1 %v6936_v63  ;;  %v6887_v63 = vcombine.low %v620_v45, %v624_v46  ;;  %v7008_v6 = vcombine.high %v740_v59, %v744_v60  ;;  %v7007_v15 = vcombine.low %v740_v59, %v744_v60  ;;  %v712_v45 = vld [vmem:[#allocation3 + $0x670] sm:$0xff] }
 0x17b   : > { %v820_v60 = vld [vmem:[#allocation3 + $0x9d0] sm:$0xff] }
 0x17c   : > { %3623 = vmatpush1.bf16.msra.mxu0 %v6807_v2  ;;  %v7015_v2 = vcombine.low %v748_v49, %v752_v50 }
 0x17d   : > { %3666 = vmatpush1.bf16.msra.mxu1 %v6935_v3  ;;  %3624 = vmatprep.subr.bf16.mxu0 %v6800_v4  ;;  %v6880_v3 = vcombine.high %v612_v54, %v616_v56 }
 0x17e   : > { %3667 = vmatprep.subr.bf16.mxu1 %v6928_v8  ;;  %v608_v8 = vld [vmem:[#allocation3 + $0x330] sm:$0xff] }
 0x17f   : > { %v6871_v25 = vcombine.low %v604_v7, %v608_v8 }
 0x180   : > { %3625 = vmatpush1.bf16.msra.mxu0 %v6799_v10  ;;  %v732_v10 = vld [vmem:[#allocation3 + $0x710] sm:$0xff] }
 0x181   : > { %3668 = vmatpush1.bf16.msra.mxu1 %v6927_v11  ;;  %3626 = vmatprep.subr.bf16.mxu0 %v6792_v12  ;;  %v736_v11 = vld [vmem:[#allocation3 + $0x730] sm:$0xff] }
 0x182   : > { %3669 = vmatprep.subr.bf16.mxu1 %v6920_v17  ;;  %v6872_v17 = vcombine.high %v604_v7, %v608_v8  ;;  %v812_v8 = vld [vmem:[#allocation3 + $0x990] sm:$0xff] }
 0x184   : > { %3627 = vmatpush1.bf16.msra.mxu0 %v6791_v19  ;;  %v7000_v19 = vcombine.high %v732_v10, %v736_v11 }
 0x185   : > { %3670 = vmatpush1.bf16.msra.mxu1 %v6919_v21  ;;  %3628 = vmatprep.subr.bf16.mxu0 %v6784_v22  ;;  %v596_v21 = vld [vmem:[#allocation3 + $0x2d0] sm:$0xff] }
 0x186   : > { %3671 = vmatprep.subr.bf16.mxu1 %v6912_v26  ;;  %v600_v22 = vld [vmem:[#allocation3 + $0x2f0] sm:$0xff]  ;;  %v6999_v26 = vcombine.low %v732_v10, %v736_v11 }
 0x187   : > { %v6864_v27 = vcombine.high %v596_v21, %v600_v22  ;;  %v6863_v35 = vcombine.low %v596_v21, %v600_v22  ;;  %v940_v10 = vld [vmem:[#allocation3 + $0xd90] sm:$0xff]  ;;  %v8708_v21 = vld [vmem:[%s8642_s25] ss:$28 sps:$4 sm:$0xff]  }
 0x188   : > { %3629 = vmatpush1.bf16.msra.mxu0 %v6783_v29  ;;  %v6992_v29 = vcombine.high %v724_v23, %v728_v24  ;;  %v944_v11 = vld [vmem:[#allocation3 + $0xdb0] sm:$0xff] }
 0x189   : > { %3672 = vmatpush1.bf16.msra.mxu1 %v6911_v31  ;;  %3630 = vmatprep.subr.bf16.mxu0 %v6776_v32  ;;  %v588_v31 = vld [vmem:[#allocation3 + $0x290] sm:$0xff] }
 0x18a   : > { %3673 = vmatprep.subr.bf16.mxu1 %v6904_v33  ;;  %v592_v32 = vld [vmem:[#allocation3 + $0x2b0] sm:$0xff] }
 0x18b   : > { %v716_v33 = vld [vmem:[#allocation3 + $0x690] sm:$0xff]  ;;  %v6856_v37 = vcombine.high %v588_v31, %v592_v32  ;;  %v6855_v46 = vcombine.low %v588_v31, %v592_v32 }
 0x18c   : > { %3631 = vmatpush1.bf16.msra.mxu0 %v6775_v38  ;;  %v6984_v38 = vcombine.high %v716_v33, %v720_v34  ;;  %v6983_v49 = vcombine.low %v716_v33, %v720_v34  ;;  %v932_v22 = vld [vmem:[#allocation3 + $0xd50] sm:$0xff] }
 0x18d   : > { %3674 = vmatpush1.bf16.msra.mxu1 %v6903_v40  ;;  %3632 = vmatprep.subr.bf16.mxu0 %v6896_v42  ;;  %v580_v40 = vld [vmem:[#allocation3 + $0x250] sm:$0xff] }
 0x18e   : > { %3675 = vmatprep.subr.bf16.mxu1 %v7024_v43  ;;  %v584_v42 = vld [vmem:[#allocation3 + $0x270] sm:$0xff] }
 0x18f   : > { %v3306_v57 = vpop.f32.mrf.mxu0  ;;  %v3349_v62 = vpop.f32.mrf.mxu1  ;;  %v708_v43 = vld [vmem:[#allocation3 + $0x650] sm:$0xff]  ;;  %v6848_v50 = vcombine.high %v580_v40, %v584_v42  ;;  %v6847_v54 = vcombine.low %v580_v40, %v584_v42 }
 0x190   : > { %v3307_v28 = vadd.f32 %v3306_v57, %v959_v51  ;;  %3633 = vmatpush2.bf16.msra.mxu0 %v6895_v52  ;;  %v572_v52 = vld [vmem:[#allocation3 + $0x210] sm:$0xff]  ;;  %v6975_v56 = vcombine.low %v708_v43, %v712_v45 }
 0x191   : > { %3676 = vmatpush2.bf16.msra.mxu1 %v7023_v16  ;;  %v8699_v0 = vpop.f32.mrf.mxu0  ;;  %3634 = vmatprep.subr.bf16.mxu0 %v6888_v53  ;;  %v8703_v5 = vpop.f32.mrf.mxu1  ;;  %v576_v16 = vld [vmem:[#allocation3 + $0x230] sm:$0xff] }
 0x192   : > { %v8701_v4 = vadd.f32 %v3349_v62, %v3307_v28  ;;  %3677 = vmatprep.subr.bf16.mxu1 %v7016_v61  ;;  %v700_v53 = vld [vmem:[#allocation3 + $0x610] sm:$0xff]  ;;  %v6840_v57 = vcombine.high %v572_v52, %v576_v16 }
 0x193   : > { %v3310_v9 = vpop.f32.mrf.mxu0  ;;  %v3353_v14 = vpop.f32.mrf.mxu1  ;;  %v704_v61 = vld [vmem:[#allocation3 + $0x630] sm:$0xff] }
 0x194   : > { %v3311_v12 = vadd.f32 %v3310_v9, %v959_v51  ;;  %3635 = vmatpush2.bf16.msra.mxu0 %v6887_v63  ;;  %v6976_v51 = vcombine.high %v708_v43, %v712_v45  ;;  %v6968_v59 = vcombine.high %v700_v53, %v704_v61  ;;  %v824_v28 = vld [vmem:[#allocation3 + $0x9f0] sm:$0xff] }
 0x195   : > { %3678 = vmatpush2.bf16.msra.mxu1 %v7015_v2  ;;  %3636 = vmatprep.subr.bf16.mxu0 %v6880_v3  ;;  %v948_v62 = vld [vmem:[#allocation3 + $0xdd0] sm:$0xff]  ;;  %v6839_v2 = vcombine.low %v572_v52, %v576_v16  ;;  %v6967_v3 = vcombine.low %v700_v53, %v704_v61 }
 0x196   : > { %v8705_v18 = vadd.f32 %v3353_v14, %v3311_v12  ;;  %3679 = vmatprep.subr.bf16.mxu1 %v7008_v6  ;;  %v952_v63 = vld [vmem:[#allocation3 + $0xdf0] sm:$0xff]  ;;  %v7088_v6 = vcombine.high %v820_v60, %v824_v28  ;;  %v7087_v12 = vcombine.low %v820_v60, %v824_v28 }
 0x197   : > { %v7216_v7 = vcombine.high %v948_v62, %v952_v63  ;;  %v816_v9 = vld [vmem:[#allocation3 + $0x9b0] sm:$0xff] }
 0x198   : > { %3637 = vmatpush2.bf16.msra.mxu0 %v6879_v13  ;;  %v7215_v13 = vcombine.low %v948_v62, %v952_v63  ;;  %v7080_v14 = vcombine.high %v812_v8, %v816_v9  ;;  %v936_v23 = vld [vmem:[#allocation3 + $0xd70] sm:$0xff]  ;;  %v7079_v24 = vcombine.low %v812_v8, %v816_v9 }
 0x199   : > { %3680 = vmatpush2.bf16.msra.mxu1 %v7007_v15  ;;  %3638 = vmatprep.subr.bf16.mxu0 %v6872_v17  ;;  %v7208_v15 = vcombine.high %v940_v10, %v944_v11  ;;  %v804_v17 = vld [vmem:[#allocation3 + $0x950] sm:$0xff] }
 0x19a   : > { %3681 = vmatprep.subr.bf16.mxu1 %v7000_v19  ;;  %v808_v19 = vld [vmem:[#allocation3 + $0x970] sm:$0xff] }
 0x19b   : > { %v800_v31 = vld [vmem:[#allocation3 + $0x930] sm:$0xff] }
 0x19c   : > { %3639 = vmatpush2.bf16.msra.mxu0 %v6871_v25  ;;  %v7207_v25 = vcombine.low %v940_v10, %v944_v11  ;;  %v924_v32 = vld [vmem:[#allocation3 + $0xd10] sm:$0xff] }
 0x19d   : > { %3682 = vmatpush2.bf16.msra.mxu1 %v6999_v26  ;;  %3640 = vmatprep.subr.bf16.mxu0 %v6864_v27  ;;  %v7072_v26 = vcombine.high %v804_v17, %v808_v19  ;;  %v7200_v27 = vcombine.high %v932_v22, %v936_v23  ;;  %v928_v33 = vld [vmem:[#allocation3 + $0xd30] sm:$0xff] }
 0x19e   : > { %3683 = vmatprep.subr.bf16.mxu1 %v6992_v29  ;;  %v796_v29 = vld [vmem:[#allocation3 + $0x910] sm:$0xff] }
 0x19f   : > { %v8714_v34 = vld [vmem:[%s8642_s25 + $0x14] ss:$28 sps:$4 sm:$0xff]   ;;  %v7063_v45 = vcombine.low %v796_v29, %v800_v31 }
 0x1a0   : > { %3641 = vmatpush2.bf16.msra.mxu0 %v6863_v35  ;;  %v7199_v35 = vcombine.low %v932_v22, %v936_v23  ;;  %v792_v40 = vld [vmem:[#allocation3 + $0x8f0] sm:$0xff]  ;;  %v569_v22 = vld [vmem:[#allocation3 + $0x1f8] sm:$0xff] }
 0x1a1   : > { %3684 = vmatpush2.bf16.msra.mxu1 %v6991_v36  ;;  %3642 = vmatprep.subr.bf16.mxu0 %v6856_v37  ;;  %v7064_v36 = vcombine.high %v796_v29, %v800_v31  ;;  %v7192_v37 = vcombine.high %v924_v32, %v928_v33  ;;  %v916_v42 = vld [vmem:[#allocation3 + $0xcd0] sm:$0xff]  ;;  %v8717_v31 = vpop.f32.mrf.mxu1 }
 0x1a2   : > { %3685 = vmatprep.subr.bf16.mxu1 %v6984_v38  ;;  %v788_v38 = vld [vmem:[#allocation3 + $0x8d0] sm:$0xff] }
 0x1a3   : > { %v920_v43 = vld [vmem:[#allocation3 + $0xcf0] sm:$0xff]  ;;  %v7055_v61 = vcombine.low %v788_v38, %v792_v40 }
 0x1a4   : > { %3643 = vmatpush2.bf16.msra.mxu0 %v6855_v46  ;;  %v7191_v46 = vcombine.low %v924_v32, %v928_v33  ;;  %v784_v52 = vld [vmem:[#allocation3 + $0x8b0] sm:$0xff]  ;;  %v557_v32 = vld [vmem:[#allocation3 + $0x198] sm:$0xff] }
 0x1a5   : > { %3686 = vmatpush2.bf16.msra.mxu1 %v6983_v49  ;;  %3644 = vmatprep.subr.bf16.mxu0 %v6848_v50  ;;  %v7056_v49 = vcombine.high %v788_v38, %v792_v40  ;;  %v7184_v50 = vcombine.high %v916_v42, %v920_v43  ;;  %v908_v16 = vld [vmem:[#allocation3 + $0xc90] sm:$0xff]  ;;  %v561_v33 = vld [vmem:[#allocation3 + $0x1b8] sm:$0xff] }
 0x1a6   : > { %3687 = vmatprep.subr.bf16.mxu1 %v6976_v51  ;;  %v780_v51 = vld [vmem:[#allocation3 + $0x890] sm:$0xff]  ;;  %v6826_v40 = vcombine.high %v557_v32, %v561_v33 }
 0x1a7   : > { %v912_v53 = vld [vmem:[#allocation3 + $0xcb0] sm:$0xff]  ;;  %v7047_v63 = vcombine.low %v780_v51, %v784_v52 }
 0x1a8   : > { %3645 = vmatpush2.bf16.msra.mxu0 %v6847_v54  ;;  %v7183_v54 = vcombine.low %v916_v42, %v920_v43  ;;  %v776_v60 = vld [vmem:[#allocation3 + $0x870] sm:$0xff] }
 0x1a9   : > { %3688 = vmatpush2.bf16.msra.mxu1 %v6975_v56  ;;  %3646 = vmatprep.subr.bf16.mxu0 %v6840_v57  ;;  %v7048_v56 = vcombine.high %v780_v51, %v784_v52  ;;  %v7176_v57 = vcombine.high %v908_v16, %v912_v53  ;;  %v900_v28 = vld [vmem:[#allocation3 + $0xc50] sm:$0xff] }
 0x1aa   : > { %3689 = vmatprep.subr.bf16.mxu1 %v6968_v59  ;;  %v772_v59 = vld [vmem:[#allocation3 + $0x850] sm:$0xff] }
 0x1ab   : > { %v904_v62 = vld [vmem:[#allocation3 + $0xc70] sm:$0xff]  ;;  %v7039_v11 = vcombine.low %v772_v59, %v776_v60 }
 0x1ac   : > { %3647 = vmatpush2.bf16.msra.mxu0 %v6839_v2  ;;  %v7175_v2 = vcombine.low %v908_v16, %v912_v53  ;;  %v768_v8 = vld [vmem:[#allocation3 + $0x830] sm:$0xff]  ;;  %v6825_v53 = vcombine.low %v557_v32, %v561_v33 }
 0x1ad   : > { %3690 = vmatpush2.bf16.msra.mxu1 %v6967_v3  ;;  %3702 = vmatprep.subr.bf16.mxu0 %v7088_v6  ;;  %v7040_v3 = vcombine.high %v772_v59, %v776_v60  ;;  %v7168_v6 = vcombine.high %v900_v28, %v904_v62  ;;  %v892_v9 = vld [vmem:[#allocation3 + $0xc10] sm:$0xff]  ;;  %v541_v60 = vld [vmem:[#allocation3 + $0x118] sm:$0xff] }
 0x1ae   : > { %3745 = vmatprep.subr.bf16.mxu1 %v7216_v7  ;;  %v764_v7 = vld [vmem:[#allocation3 + $0x810] sm:$0xff] }
 0x1af   : > { %3649 = vmatmul.mubr.bf16.vlgmr.msra.gmra.mxu0 %v8708_v21  ;;  %v896_v10 = vld [vmem:[#allocation3 + $0xc30] sm:$0xff]  ;;  %v7031_v23 = vcombine.low %v764_v7, %v768_v8 }
 0x1b0   : > { %3692 = vmatmul.mubr.bf16.vlgmr.msra.gmra.mxu1 %v8669_v44  ;;  %3703 = vmatpush1.bf16.msra.mxu0 %v7087_v12  ;;  %v7071_v44 = vcombine.low %v804_v17, %v808_v19  ;;  %v7167_v12 = vcombine.low %v900_v28, %v904_v62  ;;  %v888_v17 = vld [vmem:[#allocation3 + $0xbf0] sm:$0xff]  ;;  %v565_v19 = vld [vmem:[#allocation3 + $0x1d8] sm:$0xff] }
 0x1b1   : > { %3746 = vmatpush1.bf16.msra.mxu1 %v7215_v13  ;;  %3704 = vmatprep.subr.bf16.mxu0 %v7080_v14  ;;  %v7032_v13 = vcombine.high %v764_v7, %v768_v8  ;;  %v7160_v14 = vcombine.high %v892_v9, %v896_v10  ;;  %v880_v29 = vld [vmem:[#allocation3 + $0xbb0] sm:$0xff] }
 0x1b2   : > { %3747 = vmatprep.subr.bf16.mxu1 %v7208_v15  ;;  %3777 = vmatprep.mubr.bf16.mxu1 %v8451_v1  ;;  %v884_v15 = vld [vmem:[#allocation3 + $0xbd0] sm:$0xff] }
 0x1b3   : > { %3734 = vmatprep.mubr.bf16.mxu0 %v8714_v34  ;;  %v868_v42 = vld [vmem:[#allocation3 + $0xb50] sm:$0xff] }
 0x1b4   : > { %3705 = vmatpush1.bf16.msra.mxu0 %v7079_v24  ;;  %v7159_v24 = vcombine.low %v892_v9, %v896_v10  ;;  %v872_v43 = vld [vmem:[#allocation3 + $0xb70] sm:$0xff]  ;;  %v533_v10 = vld [vmem:[#allocation3 + $0xd8] sm:$0xff] }
 0x1b5   : > { %3748 = vmatpush1.bf16.msra.mxu1 %v7207_v25  ;;  %3706 = vmatprep.subr.bf16.mxu0 %v7072_v26  ;;  %v7152_v25 = vcombine.high %v884_v15, %v888_v17  ;;  %v6834_v26 = vcombine.high %v565_v19, %v569_v22  ;;  %v864_v59 = vld [vmem:[#allocation3 + $0xb30] sm:$0xff]  ;;  %v7135_v62 = vcombine.low %v868_v42, %v872_v43 }
 0x1b6   : > { %3749 = vmatprep.subr.bf16.mxu1 %v7200_v27  ;;  %v876_v27 = vld [vmem:[#allocation3 + $0xb90] sm:$0xff] }
 0x1b7   : > { %v7144_v38 = vcombine.high %v876_v27, %v880_v29  ;;  %v7143_v51 = vcombine.low %v876_v27, %v880_v29  ;;  %v852_v8 = vld [vmem:[#allocation3 + $0xad0] sm:$0xff] }
 0x1b8   : > { %3707 = vmatpush1.bf16.msra.mxu0 %v7071_v44  ;;  %v7151_v44 = vcombine.low %v884_v15, %v888_v17  ;;  %v856_v9 = vld [vmem:[#allocation3 + $0xaf0] sm:$0xff] }
 0x1b9   : > { %3750 = vmatpush1.bf16.msra.mxu1 %v7199_v35  ;;  %3708 = vmatprep.subr.bf16.mxu0 %v7064_v36  ;;  %v8719_v35 = vpop.f32.mrf.mxu0  ;;  %v3435_v36 = vpop.f32.mrf.mxu1  ;;  %v836_v32 = vld [vmem:[#allocation3 + $0xa50] sm:$0xff] }
 0x1ba   : > { %3751 = vmatprep.subr.bf16.mxu1 %v7192_v37  ;;  %v6833_v37 = vcombine.low %v565_v19, %v569_v22  ;;  %v844_v19 = vld [vmem:[#allocation3 + $0xa90] sm:$0xff] }
 0x1bb   : > { %v8723_v52 = vpop.f32.mrf.mxu1  ;;  %v848_v22 = vld [vmem:[#allocation3 + $0xab0] sm:$0xff] }
 0x1bc   : > { %3709 = vmatpush1.bf16.msra.mxu0 %v7063_v45  ;;  %v7112_v27 = vcombine.high %v844_v19, %v848_v22  ;;  %v840_v33 = vld [vmem:[#allocation3 + $0xa70] sm:$0xff] }
 0x1bd   : > { %3752 = vmatpush1.bf16.msra.mxu1 %v7191_v46  ;;  %3710 = vmatprep.subr.bf16.mxu0 %v7056_v49  ;;  %v549_v46 = vld [vmem:[#allocation3 + $0x158] sm:$0xff] }
 0x1be   : > { %3753 = vmatprep.subr.bf16.mxu1 %v7184_v50  ;;  %v553_v49 = vld [vmem:[#allocation3 + $0x178] sm:$0xff] }
 0x1c0   : > { %3711 = vmatpush1.bf16.msra.mxu0 %v7055_v61  ;;  %v7136_v61 = vcombine.high %v868_v42, %v872_v43  ;;  %v828_v43 = vld [vmem:[#allocation3 + $0xa10] sm:$0xff] }
 0x1c1   : > { %3754 = vmatpush1.bf16.msra.mxu1 %v7183_v54  ;;  %3712 = vmatprep.subr.bf16.mxu0 %v7048_v56  ;;  %v6818_v56 = vcombine.high %v549_v46, %v553_v49 }
 0x1c2   : > { %3755 = vmatprep.subr.bf16.mxu1 %v7176_v57  ;;  %v860_v57 = vld [vmem:[#allocation3 + $0xb10] sm:$0xff] }
 0x1c4   : > { %3713 = vmatpush1.bf16.msra.mxu0 %v7047_v63  ;;  %v3439_v63 = vpop.f32.mrf.mxu1 }
 0x1c5   : > { %3756 = vmatpush1.bf16.msra.mxu1 %v7175_v2  ;;  %3714 = vmatprep.subr.bf16.mxu0 %v7040_v3  ;;  %v6817_v2 = vcombine.low %v549_v46, %v553_v49  ;;  %v7128_v3 = vcombine.high %v860_v57, %v864_v59  ;;  %v509_v46 = vld [vmem:[#allocation3 + $0x18] sm:$0xff] }
 0x1c6   : > { %3757 = vmatprep.subr.bf16.mxu1 %v7168_v6  ;;  %v513_v49 = vld [vmem:[#allocation3 + $0x38] sm:$0xff] }
 0x1c8   : > { %3715 = vmatpush1.bf16.msra.mxu0 %v7039_v11  ;;  %v537_v11 = vld [vmem:[#allocation3 + $0xf8] sm:$0xff] }
 0x1c9   : > { %3758 = vmatpush1.bf16.msra.mxu1 %v7167_v12  ;;  %3716 = vmatprep.subr.bf16.mxu0 %v7032_v13  ;;  %v7127_v13 = vcombine.low %v860_v57, %v864_v59  ;;  %v6802_v17 = vcombine.high %v533_v10, %v537_v11  ;;  %v629_v57 = vld [vmem:[#allocation3 + $0x3d8] sm:$0xff] }
 0x1ca   : > { %3759 = vmatprep.subr.bf16.mxu1 %v7160_v14  ;;  %v7120_v14 = vcombine.high %v852_v8, %v856_v9  ;;  %v633_v59 = vld [vmem:[#allocation3 + $0x3f8] sm:$0xff] }
 0x1cc   : > { %3717 = vmatpush1.bf16.msra.mxu0 %v7031_v23  ;;  %v525_v23 = vld [vmem:[#allocation3 + $0x98] sm:$0xff] }
 0x1cd   : > { %3760 = vmatpush1.bf16.msra.mxu1 %v7159_v24  ;;  %3718 = vmatprep.subr.bf16.mxu0 %v7152_v25  ;;  %v529_v24 = vld [vmem:[#allocation3 + $0xb8] sm:$0xff]  ;;  %v7119_v25 = vcombine.low %v852_v8, %v856_v9 }
 0x1ce   : > { %3788 = vmatprep.subr.bf16.mxu1 %v6834_v26  ;;  %v6801_v26 = vcombine.low %v533_v10, %v537_v11  ;;  %v6794_v29 = vcombine.high %v525_v23, %v529_v24  ;;  %v677_v10 = vld [vmem:[#allocation3 + $0x558] sm:$0xff] }
 0x1cf   : > { %v3392_v45 = vpop.f32.mrf.mxu0  ;;  %v681_v11 = vld [vmem:[#allocation3 + $0x578] sm:$0xff] }
 0x1d0   : > { %v3393_v50 = vadd.f32 %v3392_v45, %v8701_v4  ;;  %3778 = vmatmul.mubr.bf16.vlgmr.msra.gmra.mxu1 %v8674_v47  ;;  %3719 = vmatpush2.bf16.msra.mxu0 %v7151_v44  ;;  %v545_v47 = vld [vmem:[#allocation3 + $0x138] sm:$0xff]  ;;  %v832_v45 = vld [vmem:[#allocation3 + $0xa30] sm:$0xff] }
 0x1d1   : > { %3789 = vmatpush1.bf16.msra.mxu1 %v6833_v37  ;;  %v8725_v16 = vpop.f32.mrf.mxu0  ;;  %3720 = vmatprep.subr.bf16.mxu0 %v7144_v38  ;;  %v6810_v7 = vcombine.high %v541_v60, %v545_v47  ;;  %v517_v44 = vld [vmem:[#allocation3 + $0x58] sm:$0xff]  ;;  %v7111_v37 = vcombine.low %v844_v19, %v848_v22  ;;  %v6793_v38 = vcombine.low %v525_v23, %v529_v24 }
 0x1d2   : > { %v3436_v54 = vadd.f32 %v3435_v36, %v3393_v50  ;;  %3790 = vmatprep.subr.bf16.mxu1 %v6826_v40  ;;  %3820 = vmatprep.mubr.bf16.mxu1 %v8682_v58  ;;  %v521_v36 = vld [vmem:[#allocation3 + $0x78] sm:$0xff]  ;;  %v7104_v40 = vcombine.high %v836_v32, %v840_v33  ;;  %v7103_v50 = vcombine.low %v836_v32, %v840_v33 }
 0x1d3   : > { %v3396_v4 = vpop.f32.mrf.mxu0  ;;  %v6786_v42 = vcombine.high %v517_v44, %v521_v36  ;;  %v669_v19 = vld [vmem:[#allocation3 + $0x518] sm:$0xff] }
 0x1d4   : > { %v3397_v28 = vadd.f32 %v3396_v4, %v8705_v18  ;;  %3721 = vmatpush2.bf16.msra.mxu0 %v7143_v51  ;;  %v3960_v58 = vmax.f32 %v3436_v54, 0.0  ;;  %v6809_v18 = vcombine.low %v541_v60, %v545_v47  ;;  %v6785_v51 = vcombine.low %v517_v44, %v521_v36  ;;  %v693_v54 = vld [vmem:[#allocation3 + $0x5d8] sm:$0xff] }
 0x1d5   : > { %3791 = vmatpush1.bf16.msra.mxu1 %v6825_v53  ;;  %3722 = vmatprep.subr.bf16.mxu0 %v7136_v61  ;;  %v7096_v53 = vcombine.high %v828_v43, %v832_v45  ;;  %v6778_v61 = vcombine.high %v509_v46, %v513_v49  ;;  %v7095_v4 = vcombine.low %v828_v43, %v832_v45  ;;  %v673_v22 = vld [vmem:[#allocation3 + $0x538] sm:$0xff] }
 0x1d6   : > { %v3440_v6 = vadd.f32 %v3439_v63, %v3397_v28  ;;  %3792 = vmatprep.subr.bf16.mxu1 %v6818_v56  ;;  %v697_v56 = vld [vmem:[#allocation3 + $0x5f8] sm:$0xff]  ;;  %v6777_v60 = vcombine.low %v509_v46, %v513_v49  ;;  %v6898_v28 = vcombine.high %v629_v57, %v633_v59  ;;  %v6937_v44 = vcombine.low %v669_v19, %v673_v22 }
 0x1d7   : > { %v6962_v47 = vcombine.high %v693_v54, %v697_v56  ;;  %v689_v63 = vld [vmem:[#allocation3 + $0x5b8] sm:$0xff] }
 0x1d8   : > { %v3968_v12 = vmax.f32 %v3440_v6, 0.0  ;;  %3723 = vmatpush2.bf16.msra.mxu0 %v7135_v62  ;;  %v685_v62 = vld [vmem:[#allocation3 + $0x598] sm:$0xff]  ;;  %v6961_v6 = vcombine.low %v693_v54, %v697_v56 }
 0x1d9   : > { %3793 = vmatpush1.bf16.msra.mxu1 %v6817_v2  ;;  %3724 = vmatprep.subr.bf16.mxu0 %v7128_v3  ;;  %v621_v2 = vld [vmem:[#allocation3 + $0x398] sm:$0xff]  ;;  %v6954_v8 = vcombine.high %v685_v62, %v689_v63 }
 0x1da   : > { %v8729_v15 = vpack.c.bf16 %v3968_v12, %v3960_v58  ;;  %3794 = vmatprep.subr.bf16.mxu1 %v6810_v7  ;;  %v625_v3 = vld [vmem:[#allocation3 + $0x3b8] sm:$0xff]  ;;  %v6897_v7 = vcombine.low %v629_v57, %v633_v59 }
 0x1db   : > { %v6890_v9 = vcombine.high %v621_v2, %v625_v3  ;;  %v613_v58 = vld [vmem:[#allocation3 + $0x358] sm:$0xff] }
 0x1dc   : > { %3725 = vmatpush2.bf16.msra.mxu0 %v7127_v13  ;;  %v617_v12 = vld [vmem:[#allocation3 + $0x378] sm:$0xff]  ;;  %v6953_v13 = vcombine.low %v685_v62, %v689_v63 }
 0x1dd   : > { %3795 = vmatpush1.bf16.msra.mxu1 %v6809_v18  ;;  %3726 = vmatprep.subr.bf16.mxu0 %v7120_v14  ;;  %v6889_v18 = vcombine.low %v621_v2, %v625_v3  ;;  %v6946_v14 = vcombine.high %v677_v10, %v681_v11  ;;  %v605_v23 = vld [vmem:[#allocation3 + $0x318] sm:$0xff]  ;;  %v8733_v3 = vpop.f32.mrf.mxu1 }
 0x1de   : > { %3796 = vmatprep.subr.bf16.mxu1 %v6802_v17  ;;  %v6882_v17 = vcombine.high %v613_v58, %v617_v12  ;;  %v609_v24 = vld [vmem:[#allocation3 + $0x338] sm:$0xff] }
 0x1df   : > { %v597_v32 = vld [vmem:[#allocation3 + $0x2d8] sm:$0xff]  ;;  %v6873_v36 = vcombine.low %v605_v23, %v609_v24 }
 0x1e0   : > { %3727 = vmatpush2.bf16.msra.mxu0 %v7119_v25  ;;  %v6945_v25 = vcombine.low %v677_v10, %v681_v11  ;;  %v601_v33 = vld [vmem:[#allocation3 + $0x2f8] sm:$0xff] }
 0x1e1   : > { %3797 = vmatpush1.bf16.msra.mxu1 %v6801_v26  ;;  %3728 = vmatprep.subr.bf16.mxu0 %v7112_v27  ;;  %v6938_v26 = vcombine.high %v669_v19, %v673_v22  ;;  %v6874_v27 = vcombine.high %v605_v23, %v609_v24  ;;  %v589_v43 = vld [vmem:[#allocation3 + $0x298] sm:$0xff]  ;;  %v6865_v49 = vcombine.low %v597_v32, %v601_v33 }
 0x1e2   : > { %3798 = vmatprep.subr.bf16.mxu1 %v6794_v29  ;;  %v661_v29 = vld [vmem:[#allocation3 + $0x4d8] sm:$0xff] }
 0x1e3   : > { %v593_v45 = vld [vmem:[#allocation3 + $0x2b8] sm:$0xff] }
 0x1e4   : > { %3729 = vmatpush2.bf16.msra.mxu0 %v7111_v37  ;;  %v581_v54 = vld [vmem:[#allocation3 + $0x258] sm:$0xff]  ;;  %v6857_v59 = vcombine.low %v589_v43, %v593_v45 }
 0x1e5   : > { %3799 = vmatpush1.bf16.msra.mxu1 %v6793_v38  ;;  %3730 = vmatprep.subr.bf16.mxu0 %v7104_v40  ;;  %v6866_v38 = vcombine.high %v597_v32, %v601_v33  ;;  %v653_v40 = vld [vmem:[#allocation3 + $0x498] sm:$0xff] }
 0x1e6   : > { %3800 = vmatprep.subr.bf16.mxu1 %v6786_v42  ;;  %v657_v42 = vld [vmem:[#allocation3 + $0x4b8] sm:$0xff] }
 0x1e7   : > { %v585_v56 = vld [vmem:[#allocation3 + $0x278] sm:$0xff]  ;;  %v6921_v57 = vcombine.low %v653_v40, %v657_v42 }
 0x1e8   : > { %3731 = vmatpush2.bf16.msra.mxu0 %v7103_v50  ;;  %v6922_v50 = vcombine.high %v653_v40, %v657_v42  ;;  %v573_v62 = vld [vmem:[#allocation3 + $0x218] sm:$0xff] }
 0x1e9   : > { %3801 = vmatpush1.bf16.msra.mxu1 %v6785_v51  ;;  %3732 = vmatprep.subr.bf16.mxu0 %v7096_v53  ;;  %v6858_v51 = vcombine.high %v589_v43, %v593_v45  ;;  %v645_v53 = vld [vmem:[#allocation3 + $0x458] sm:$0xff] }
 0x1ea   : > { %3802 = vmatprep.subr.bf16.mxu1 %v6778_v61  ;;  %v649_v61 = vld [vmem:[#allocation3 + $0x478] sm:$0xff] }
 0x1eb   : > { %v577_v63 = vld [vmem:[#allocation3 + $0x238] sm:$0xff]  ;;  %v6913_v2 = vcombine.low %v645_v53, %v649_v61 }
 0x1ec   : > { %3733 = vmatpush2.bf16.msra.mxu0 %v7095_v4  ;;  %v6914_v4 = vcombine.high %v645_v53, %v649_v61  ;;  %v757_v10 = vld [vmem:[#allocation3 + $0x7d8] sm:$0xff] }
 0x1ed   : > { %3803 = vmatpush1.bf16.msra.mxu1 %v6777_v60  ;;  %3831 = vmatprep.subr.bf16.mxu0 %v6962_v47  ;;  %v6850_v60 = vcombine.high %v581_v54, %v585_v56  ;;  %v637_v47 = vld [vmem:[#allocation3 + $0x418] sm:$0xff] }
 0x1ee   : > { %3804 = vmatprep.subr.bf16.mxu1 %v6898_v28  ;;  %v641_v28 = vld [vmem:[#allocation3 + $0x438] sm:$0xff] }
 0x1ef   : > { %3735 = vmatmul.mubr.bf16.vlgmr.msra.gmra.mxu0 %v8678_v48  ;;  %v6881_v48 = vcombine.low %v613_v58, %v617_v12  ;;  %v761_v11 = vld [vmem:[#allocation3 + $0x7f8] sm:$0xff] }
 0x1f0   : > { %3832 = vmatpush1.bf16.msra.mxu0 %v6961_v6  ;;  %3863 = vmatprep.mubr.bf16.mxu0 %v8686_v55  ;;  %v665_v55 = vld [vmem:[#allocation3 + $0x4f8] sm:$0xff]  ;;  %v6849_v6 = vcombine.low %v581_v54, %v585_v56  ;;  %v3478_v58 = vpop.f32.mrf.mxu1 }
 0x1f1   : > { %3805 = vmatpush2.bf16.msra.mxu1 %v6897_v7  ;;  %3833 = vmatprep.subr.bf16.mxu0 %v6954_v8  ;;  %v6930_v37 = vcombine.high %v661_v29, %v665_v55  ;;  %v6929_v46 = vcombine.low %v661_v29, %v665_v55  ;;  %v6906_v7 = vcombine.high %v637_v47, %v641_v28  ;;  %v966_v8 = vsub.s32 2, %v8690_v30  ;;  %v821_v12 = vld [vmem:[#allocation3 + $0x9d8] sm:$0xff]  ;;  %v8741_v29 = vpop.f32.mrf.mxu0 }
 0x1f2   : > { %3806 = vmatprep.subr.bf16.mxu1 %v6890_v9  ;;  %v6842_v9 = vcombine.high %v573_v62, %v577_v63  ;;  %v749_v23 = vld [vmem:[#allocation3 + $0x798] sm:$0xff] }
 0x1f3   : > { %v967_v19 = vrot.slane %v8695_v41, %v966_v8  ;;  %v753_v24 = vld [vmem:[#allocation3 + $0x7b8] sm:$0xff] }
 0x1f4   : > { %3834 = vmatpush1.bf16.msra.mxu0 %v6953_v13  ;;  %v825_v13 = vld [vmem:[#allocation3 + $0x9f8] sm:$0xff]  ;;  %v7018_v32 = vcombine.high %v749_v23, %v753_v24  ;;  %v7017_v45 = vcombine.low %v749_v23, %v753_v24 }
 0x1f5   : > { %3807 = vmatpush2.bf16.msra.mxu1 %v6889_v18  ;;  %3835 = vmatprep.subr.bf16.mxu0 %v6946_v14  ;;  %v6905_v18 = vcombine.low %v637_v47, %v641_v28  ;;  %v6841_v14 = vcombine.low %v573_v62, %v577_v63  ;;  %v7090_v22 = vcombine.high %v821_v12, %v825_v13  ;;  %v741_v41 = vld [vmem:[#allocation3 + $0x758] sm:$0xff] }
 0x1f6   : > { %3808 = vmatprep.subr.bf16.mxu1 %v6882_v17  ;;  %v7026_v17 = vcombine.high %v757_v10, %v761_v11  ;;  %v7089_v55 = vcombine.low %v821_v12, %v825_v13  ;;  %v3479_v33 = vadd.f32 %v3478_v58, %v967_v19  ;;  %v805_v40 = vld [vmem:[#allocation3 + $0x958] sm:$0xff] }
 0x1f7   : > { %v809_v42 = vld [vmem:[#allocation3 + $0x978] sm:$0xff] }
 0x1f8   : > { %3836 = vmatpush1.bf16.msra.mxu0 %v6945_v25  ;;  %v8739_v25 = vpop.f32.mrf.mxu1  ;;  %v7074_v53 = vcombine.high %v805_v40, %v809_v42  ;;  %v733_v61 = vld [vmem:[#allocation3 + $0x718] sm:$0xff] }
 0x1f9   : > { %3809 = vmatpush2.bf16.msra.mxu1 %v6881_v48  ;;  %3837 = vmatprep.subr.bf16.mxu0 %v6938_v26  ;;  %v813_v48 = vld [vmem:[#allocation3 + $0x998] sm:$0xff] }
 0x1fa   : > { %3810 = vmatprep.subr.bf16.mxu1 %v6874_v27  ;;  %v817_v26 = vld [vmem:[#allocation3 + $0x9b8] sm:$0xff]  ;;  %v7025_v27 = vcombine.low %v757_v10, %v761_v11 }
 0x1fb   : > { %v737_v54 = vld [vmem:[#allocation3 + $0x738] sm:$0xff] }
 0x1fc   : > { %3838 = vmatpush1.bf16.msra.mxu0 %v6937_v44  ;;  %v7082_v44 = vcombine.high %v813_v48, %v817_v26  ;;  %v7002_v47 = vcombine.high %v733_v61, %v737_v54  ;;  %v725_v62 = vld [vmem:[#allocation3 + $0x6d8] sm:$0xff] }
 0x1fd   : > { %3811 = vmatpush2.bf16.msra.mxu1 %v6873_v36  ;;  %3839 = vmatprep.subr.bf16.mxu0 %v6930_v37  ;;  %v745_v36 = vld [vmem:[#allocation3 + $0x778] sm:$0xff]  ;;  %v3482_v37 = vpop.f32.mrf.mxu1 }
 0x1fe   : > { %3812 = vmatprep.subr.bf16.mxu1 %v6866_v38  ;;  %v729_v63 = vld [vmem:[#allocation3 + $0x6f8] sm:$0xff] }
 0x1ff   : > { %v717_v11 = vld [vmem:[#allocation3 + $0x698] sm:$0xff] }
 0x200   : > { %3840 = vmatpush1.bf16.msra.mxu0 %v6929_v46  ;;  %v721_v58 = vld [vmem:[#allocation3 + $0x6b8] sm:$0xff] }
 0x201   : > { %3813 = vmatpush2.bf16.msra.mxu1 %v6865_v49  ;;  %3841 = vmatprep.subr.bf16.mxu0 %v6922_v50  ;;  %v7081_v49 = vcombine.low %v813_v48, %v817_v26  ;;  %v7010_v50 = vcombine.high %v741_v41, %v745_v36  ;;  %v781_v12 = vld [vmem:[#allocation3 + $0x898] sm:$0xff]  ;;  %v6985_v26 = vcombine.low %v717_v11, %v721_v58 }
 0x202   : > { %3814 = vmatprep.subr.bf16.mxu1 %v6858_v51  ;;  %v3483_v51 = vadd.f32 %v3482_v37, %v967_v19  ;;  %v785_v13 = vld [vmem:[#allocation3 + $0x8b8] sm:$0xff] }
 0x203   : > { %v7050_v19 = vcombine.high %v781_v12, %v785_v13  ;;  %v713_v23 = vld [vmem:[#allocation3 + $0x678] sm:$0xff] }
 0x204   : > { %3842 = vmatpush1.bf16.msra.mxu0 %v6921_v57  ;;  %v797_v57 = vld [vmem:[#allocation3 + $0x918] sm:$0xff] }
 0x205   : > { %3815 = vmatpush2.bf16.msra.mxu1 %v6857_v59  ;;  %3843 = vmatprep.subr.bf16.mxu0 %v6914_v4  ;;  %v801_v59 = vld [vmem:[#allocation3 + $0x938] sm:$0xff] }
 0x206   : > { %3816 = vmatprep.subr.bf16.mxu1 %v6850_v60  ;;  %v7073_v60 = vcombine.low %v805_v40, %v809_v42  ;;  %v7066_v28 = vcombine.high %v797_v57, %v801_v59  ;;  %v773_v24 = vld [vmem:[#allocation3 + $0x858] sm:$0xff] }
 0x207   : > { %v777_v48 = vld [vmem:[#allocation3 + $0x878] sm:$0xff] }
 0x208   : > { %3844 = vmatpush1.bf16.msra.mxu0 %v6913_v2  ;;  %v789_v2 = vld [vmem:[#allocation3 + $0x8d8] sm:$0xff] }
 0x209   : > { %3817 = vmatpush2.bf16.msra.mxu1 %v6849_v6  ;;  %3845 = vmatprep.subr.bf16.mxu0 %v6906_v7  ;;  %v793_v6 = vld [vmem:[#allocation3 + $0x8f8] sm:$0xff]  ;;  %v7001_v7 = vcombine.low %v733_v61, %v737_v54 }
 0x20a   : > { %3818 = vmatprep.subr.bf16.mxu1 %v6842_v9  ;;  %v6994_v9 = vcombine.high %v725_v62, %v729_v63  ;;  %v7058_v10 = vcombine.high %v789_v2, %v793_v6 }
 0x20c   : > { %3846 = vmatpush1.bf16.msra.mxu0 %v6905_v18  ;;  %v6993_v18 = vcombine.low %v725_v62, %v729_v63 }
 0x20d   : > { %3819 = vmatpush2.bf16.msra.mxu1 %v6841_v14  ;;  %3847 = vmatprep.subr.bf16.mxu0 %v7026_v17  ;;  %v7057_v14 = vcombine.low %v789_v2, %v793_v6  ;;  %v6986_v17 = vcombine.high %v717_v11, %v721_v58  ;;  %v8753_v2 = vpop.f32.mrf.mxu1  ;;  %v869_v11 = vld [vmem:[#allocation3 + $0xb58] sm:$0xff] }
 0x20e   : > { %3874 = vmatprep.subr.bf16.mxu1 %v7090_v22  ;;  %v709_v22 = vld [vmem:[#allocation3 + $0x658] sm:$0xff] }
 0x20f   : > { %v3521_v38 = vpop.f32.mrf.mxu0  ;;  %v6977_v37 = vcombine.low %v709_v22, %v713_v23  ;;  %v873_v58 = vld [vmem:[#allocation3 + $0xb78] sm:$0xff] }
 0x210   : > { %v8743_v43 = vadd.f32 %v3521_v38, %v3479_v33  ;;  %3821 = vmatmul.mubr.bf16.vlgmr.msra.gmra.mxu1 %v8708_v21  ;;  %3848 = vmatpush2.bf16.msra.mxu0 %v7025_v27  ;;  %v7009_v21 = vcombine.low %v741_v41, %v745_v36  ;;  %v7049_v27 = vcombine.low %v781_v12, %v785_v13  ;;  %v701_v33 = vld [vmem:[#allocation3 + $0x618] sm:$0xff] }
 0x211   : > { %3875 = vmatpush1.bf16.msra.mxu1 %v7089_v55  ;;  %v8746_v46 = vpop.f32.mrf.mxu0  ;;  %3849 = vmatprep.subr.bf16.mxu0 %v7018_v32  ;;  %v6978_v55 = vcombine.high %v709_v22, %v713_v23  ;;  %v7042_v32 = vcombine.high %v773_v24, %v777_v48  ;;  %v765_v41 = vld [vmem:[#allocation3 + $0x818] sm:$0xff]  ;;  %v7041_v38 = vcombine.low %v773_v24, %v777_v48 }
 0x212   : > { %3876 = vmatprep.subr.bf16.mxu1 %v7082_v44  ;;  %3906 = vmatprep.mubr.bf16.mxu1 %v8714_v34  ;;  %v7065_v34 = vcombine.low %v797_v57, %v801_v59  ;;  %v705_v44 = vld [vmem:[#allocation3 + $0x638] sm:$0xff]  ;;  %v7138_v23 = vcombine.high %v869_v11, %v873_v58 }
 0x213   : > { %v3525_v56 = vpop.f32.mrf.mxu0  ;;  %v769_v36 = vld [vmem:[#allocation3 + $0x838] sm:$0xff]  ;;  %v6970_v40 = vcombine.high %v701_v33, %v705_v44 }
 0x214   : > { %v8749_v4 = vadd.f32 %v3525_v56, %v3483_v51  ;;  %3850 = vmatpush2.bf16.msra.mxu0 %v7017_v45  ;;  %v7034_v42 = vcombine.high %v765_v41, %v769_v36  ;;  %v949_v45 = vld [vmem:[#allocation3 + $0xdd8] sm:$0xff]  ;;  %v7033_v61 = vcombine.low %v765_v41, %v769_v36 }
 0x215   : > { %3877 = vmatpush1.bf16.msra.mxu1 %v7081_v49  ;;  %3851 = vmatprep.subr.bf16.mxu0 %v7010_v50  ;;  %v953_v49 = vld [vmem:[#allocation3 + $0xdf8] sm:$0xff] }
 0x216   : > { %3878 = vmatprep.subr.bf16.mxu1 %v7074_v53  ;;  %v885_v50 = vld [vmem:[#allocation3 + $0xbd8] sm:$0xff]  ;;  %v6969_v53 = vcombine.low %v701_v33, %v705_v44  ;;  %v7218_v54 = vcombine.high %v949_v45, %v953_v49  ;;  %v7137_v33 = vcombine.low %v869_v11, %v873_v58 }
 0x217   : > { %v889_v51 = vld [vmem:[#allocation3 + $0xbf8] sm:$0xff] }
 0x218   : > { %3852 = vmatpush2.bf16.msra.mxu0 %v7009_v21  ;;  %v7154_v56 = vcombine.high %v885_v50, %v889_v51  ;;  %v941_v57 = vld [vmem:[#allocation3 + $0xd98] sm:$0xff]  ;;  %v7153_v62 = vcombine.low %v885_v50, %v889_v51 }
 0x219   : > { %3879 = vmatpush1.bf16.msra.mxu1 %v7073_v60  ;;  %3853 = vmatprep.subr.bf16.mxu0 %v7002_v47  ;;  %v945_v59 = vld [vmem:[#allocation3 + $0xdb8] sm:$0xff]  ;;  %v7217_v47 = vcombine.low %v949_v45, %v953_v49 }
 0x21a   : > { %3880 = vmatprep.subr.bf16.mxu1 %v7066_v28  ;;  %v877_v21 = vld [vmem:[#allocation3 + $0xb98] sm:$0xff]  ;;  %v8751_v28 = vpop.f32.mrf.mxu0  ;;  %v7210_v63 = vcombine.high %v941_v57, %v945_v59  ;;  %v7209_v13 = vcombine.low %v941_v57, %v945_v59 }
 0x21b   : > { %v881_v60 = vld [vmem:[#allocation3 + $0xbb8] sm:$0xff] }
 0x21c   : > { %3854 = vmatpush2.bf16.msra.mxu0 %v7001_v7  ;;  %v7146_v6 = vcombine.high %v877_v21, %v881_v60  ;;  %v933_v7 = vld [vmem:[#allocation3 + $0xd58] sm:$0xff] }
 0x21d   : > { %3881 = vmatpush1.bf16.msra.mxu1 %v7065_v34  ;;  %3855 = vmatprep.subr.bf16.mxu0 %v6994_v9  ;;  %v937_v34 = vld [vmem:[#allocation3 + $0xd78] sm:$0xff] }
 0x21e   : > { %3882 = vmatprep.subr.bf16.mxu1 %v7058_v10  ;;  %v8197_v10 = vld [vmem:[%s8642_s25 + $0x8] ss:$28 sps:$4 sm:$0xff]   ;;  %v925_v24 = vld [vmem:[#allocation3 + $0xd18] sm:$0xff] }
 0x21f   : > { %v929_v48 = vld [vmem:[#allocation3 + $0xd38] sm:$0xff] }
 0x220   : > { %3856 = vmatpush2.bf16.msra.mxu0 %v6993_v18  ;;  %v7194_v44 = vcombine.high %v925_v24, %v929_v48  ;;  %v853_v45 = vld [vmem:[#allocation3 + $0xad8] sm:$0xff]  ;;  %v7193_v50 = vcombine.low %v925_v24, %v929_v48 }
 0x221   : > { %3883 = vmatpush1.bf16.msra.mxu1 %v7057_v14  ;;  %3857 = vmatprep.subr.bf16.mxu0 %v6986_v17  ;;  %v7145_v14 = vcombine.low %v877_v21, %v881_v60  ;;  %v7202_v17 = vcombine.high %v933_v7, %v937_v34  ;;  %v857_v49 = vld [vmem:[#allocation3 + $0xaf8] sm:$0xff]  ;;  %v8767_v21 = vld [vmem:[#allocation5] sm:$0xff] }
 0x222   : > { %3884 = vmatprep.subr.bf16.mxu1 %v7050_v19  ;;  %v909_v57 = vld [vmem:[#allocation3 + $0xc98] sm:$0xff] }
 0x223   : > { %v913_v59 = vld [vmem:[#allocation3 + $0xcb8] sm:$0xff] }
 0x224   : > { %3858 = vmatpush2.bf16.msra.mxu0 %v6985_v26  ;;  %v901_v58 = vld [vmem:[#allocation3 + $0xc58] sm:$0xff] }
 0x225   : > { %3885 = vmatpush1.bf16.msra.mxu1 %v7049_v27  ;;  %3859 = vmatprep.subr.bf16.mxu0 %v6978_v55  ;;  %v861_v27 = vld [vmem:[#allocation3 + $0xb18] sm:$0xff] }
 0x226   : > { %3886 = vmatprep.subr.bf16.mxu1 %v7042_v32  ;;  %v865_v55 = vld [vmem:[#allocation3 + $0xb38] sm:$0xff] }
 0x227   : > { %v7130_v36 = vcombine.high %v861_v27, %v865_v55 }
 0x228   : > { %3860 = vmatpush2.bf16.msra.mxu0 %v6977_v37  ;;  %v917_v37 = vld [vmem:[#allocation3 + $0xcd8] sm:$0xff] }
 0x229   : > { %3887 = vmatpush1.bf16.msra.mxu1 %v7041_v38  ;;  %3861 = vmatprep.subr.bf16.mxu0 %v6970_v40  ;;  %v921_v38 = vld [vmem:[#allocation3 + $0xcf8] sm:$0xff]  ;;  %v8764_v40 = vsub.s32 1, %v8690_v30 }
 0x22a   : > { %3888 = vmatprep.subr.bf16.mxu1 %v7034_v42 }
 0x22b   : > { %v963_v60 = vrot.slane %v8767_v21, %v8764_v40 }
 0x22c   : > { %3862 = vmatpush2.bf16.msra.mxu0 %v6969_v53 }
 0x22d   : > { %3889 = vmatpush1.bf16.msra.mxu1 %v7033_v61  ;;  %3917 = vmatprep.subr.bf16.mxu0 %v7218_v54  ;;  %v7186_v61 = vcombine.high %v917_v37, %v921_v38  ;;  %v970_v54 = vsub.s32 3, %v8690_v30 }
 0x22e   : > { %3890 = vmatprep.subr.bf16.mxu1 %v7154_v56  ;;  %v7122_v56 = vcombine.high %v853_v45, %v857_v49 }
 0x22f   : > { %v3607_v9 = vpop.f32.mrf.mxu0  ;;  %3864 = vmatmul.mubr.bf16.vlgmr.msra.gmra.mxu0 %v8197_v10  ;;  %v971_v10 = vrot.slane %v8767_v21, %v970_v54 }
 0x230   : > { %v3564_v12 = vpop.f32.mrf.mxu1  ;;  %3918 = vmatpush1.bf16.msra.mxu0 %v7217_v47  ;;  %3949 = vmatprep.mubr.bf16.mxu0 %v8451_v1  ;;  %v7201_v1 = vcombine.low %v933_v7, %v937_v34  ;;  %v3313_v7 = vadd.f32 %v8719_v35, %v963_v60  ;;  %v7121_v34 = vcombine.low %v853_v45, %v857_v49 }
 0x231   : > { %v3565_v18 = vadd.f32 %v3564_v12, %v8743_v43  ;;  %3891 = vmatpush2.bf16.msra.mxu1 %v7153_v62  ;;  %3919 = vmatprep.subr.bf16.mxu0 %v7210_v63  ;;  %v8760_v22 = vpop.f32.mrf.mxu0  ;;  %v845_v62 = vld [vmem:[#allocation3 + $0xa98] sm:$0xff]  ;;  %v7177_v35 = vcombine.low %v909_v57, %v913_v59 }
 0x232   : > { %v8758_v19 = vpop.f32.mrf.mxu1  ;;  %3892 = vmatprep.subr.bf16.mxu1 %v7146_v6  ;;  %v849_v63 = vld [vmem:[#allocation3 + $0xab8] sm:$0xff]  ;;  %v7185_v6 = vcombine.low %v917_v37, %v921_v38 }
 0x233   : > { %v3608_v26 = vadd.f32 %v3607_v9, %v3565_v18  ;;  %v3611_v41 = vpop.f32.mrf.mxu0  ;;  %v7178_v9 = vcombine.high %v909_v57, %v913_v59  ;;  %v7114_v11 = vcombine.high %v845_v62, %v849_v63  ;;  %v905_v12 = vld [vmem:[#allocation3 + $0xc78] sm:$0xff]  ;;  %v7113_v48 = vcombine.low %v845_v62, %v849_v63  ;;  %v8200_v63 = vld [vmem:[%s8642_s25 + $0x10] ss:$28 sps:$4 sm:$0xff]  }
 0x234   : > { %v3568_v32 = vpop.f32.mrf.mxu1  ;;  %3920 = vmatpush1.bf16.msra.mxu0 %v7209_v13  ;;  %v3309_v13 = vadd.f32 %v8699_v0, %v963_v60  ;;  %v837_v18 = vld [vmem:[#allocation3 + $0xa58] sm:$0xff] }
 0x235   : > { %v3569_v43 = vadd.f32 %v3568_v32, %v8749_v4  ;;  %3893 = vmatpush2.bf16.msra.mxu1 %v7145_v14  ;;  %3921 = vmatprep.subr.bf16.mxu0 %v7202_v17  ;;  %v3962_v51 = vmax.f32 %v3608_v26, 0.0  ;;  %v7129_v4 = vcombine.low %v861_v27, %v865_v55  ;;  %v841_v14 = vld [vmem:[#allocation3 + $0xa78] sm:$0xff]  ;;  %v3485_v17 = vadd.f32 %v8753_v2, %v971_v10 }
 0x236   : > { %3894 = vmatprep.subr.bf16.mxu1 %v7138_v23  ;;  %v3356_v23 = vadd.f32 %v8717_v31, %v3313_v7  ;;  %v3570_v24 = vpop.f32.mrf.mxu1  ;;  %v7170_v26 = vcombine.high %v901_v58, %v905_v12  ;;  %v3481_v27 = vadd.f32 %v8739_v25, %v971_v10  ;;  %v7106_v32 = vcombine.high %v837_v18, %v841_v14  ;;  %v893_v0 = vld [vmem:[#allocation3 + $0xc18] sm:$0xff] }
 0x237   : > { %v3612_v42 = vadd.f32 %v3611_v41, %v3569_v43  ;;  %v3528_v55 = vadd.f32 %v8751_v28, %v3485_v17  ;;  %v3352_v43 = vadd.f32 %v8703_v5, %v3309_v13  ;;  %v7105_v25 = vcombine.low %v837_v18, %v841_v14  ;;  %v8199_v59 = vld [vmem:[%s8642_s25 + $0x18] ss:$28 sps:$4 sm:$0xff]   ;;  %v7701_v62 = vld [vmem:[#allocation7 + $0x2c4] ss:$16 sps:$4 sm:$0xff]  }
 0x238   : > { %3922 = vmatpush1.bf16.msra.mxu0 %v7201_v1  ;;  %v897_v1 = vld [vmem:[#allocation3 + $0xc38] sm:$0xff]  ;;  %v3399_v2 = vadd.f32 %v8741_v29, %v3356_v23  ;;  %v3524_v31 = vadd.f32 %v8746_v46, %v3481_v27  ;;  %v3613_v29 = vpop.f32.mrf.mxu0 }
 0x239   : > { %v3970_v53 = vmax.f32 %v3612_v42, 0.0  ;;  %3895 = vmatpush2.bf16.msra.mxu1 %v7137_v33  ;;  %3923 = vmatprep.subr.bf16.mxu0 %v7194_v44  ;;  %v829_v33 = vld [vmem:[#allocation3 + $0xa18] sm:$0xff]  ;;  %v3571_v41 = vadd.f32 %v3570_v24, %v3528_v55  ;;  %v3395_v37 = vadd.f32 %v8725_v16, %v3352_v43  ;;  %v7162_v28 = vcombine.high %v893_v0, %v897_v1 }
 0x23a   : > { %3896 = vmatprep.subr.bf16.mxu1 %v7130_v36  ;;  %v833_v44 = vld [vmem:[#allocation3 + $0xa38] sm:$0xff]  ;;  %v7169_v36 = vcombine.low %v901_v58, %v905_v12  ;;  %v3567_v38 = vadd.f32 %v8758_v19, %v3524_v31  ;;  %v3442_v5 = vadd.f32 %v8733_v3, %v3399_v2  ;;  %v7161_v49 = vcombine.low %v893_v0, %v897_v1 }
 0x23b   : > { %v8771_v47 = vpack.c.bf16 %v3970_v53, %v3962_v51  ;;  %v7098_v42 = vcombine.high %v829_v33, %v833_v44  ;;  %v3614_v45 = vadd.f32 %v3613_v29, %v3571_v41  ;;  %v3438_v46 = vadd.f32 %v8723_v52, %v3395_v37  ;;  %v7692_v16 = vld [vmem:[#allocation7 + $0xe4] ss:$16 sps:$4 sm:$0xff]   ;;  %v7690_v3 = vld [vmem:[#allocation7 + $0xe0] ss:$16 sps:$4 sm:$0xff]  }
 0x23c   : > { %3924 = vmatpush1.bf16.msra.mxu0 %v7193_v50  ;;  %v7097_v50 = vcombine.low %v829_v33, %v833_v44  ;;  %v3610_v51 = vadd.f32 %v8760_v22, %v3567_v38  ;;  %v7695_v53 = vld [vmem:[#allocation7 + $0x2e4] ss:$16 sps:$4 sm:$0xff]   ;;  %v3969_v19 = vmax.f32 %v3442_v5, 0.0  ;;  %v7699_v7 = vld [vmem:[#allocation7 + $0x2c0] ss:$16 sps:$4 sm:$0xff]  }
 0x23d   : > { %3897 = vmatpush2.bf16.msra.mxu1 %v7129_v4  ;;  %3925 = vmatprep.subr.bf16.mxu0 %v7186_v61  ;;  %v3971_v4 = vmax.f32 %v3614_v45, 0.0  ;;  %v3961_v61 = vmax.f32 %v3438_v46, 0.0  ;;  %v7698_v52 = vld [vmem:[#allocation7 + $0xc4] ss:$16 sps:$4 sm:$0xff]   ;;  %v7702_v10 = vld [vmem:[#allocation7 + $0xa0] ss:$16 sps:$4 sm:$0xff]  }
 0x23e   : > { %3898 = vmatprep.subr.bf16.mxu1 %v7122_v56  ;;  %v7693_v56 = vld [vmem:[#allocation7 + $0x2e0] ss:$16 sps:$4 sm:$0xff]   ;;  %v3963_v57 = vmax.f32 %v3610_v51, 0.0  ;;  %v7710_v58 = vld [vmem:[#allocation7 + $0x84] ss:$16 sps:$4 sm:$0xff]  }
 0x23f   : > { %v8791_v60 = vpack.c.bf16 %v3969_v19, %v3961_v61  ;;  %v7713_v12 = vld [vmem:[#allocation7 + $0x284] ss:$16 sps:$4 sm:$0xff]   ;;  %v7708_v13 = vld [vmem:[#allocation7 + $0x80] ss:$16 sps:$4 sm:$0xff]  }
 0x240   : > { %3926 = vmatpush1.bf16.msra.mxu0 %v7185_v6  ;;  %v8793_v22 = vpack.c.bf16 %v3971_v4, %v3963_v57  ;;  %v7696_v6 = vld [vmem:[#allocation7 + $0xc0] ss:$16 sps:$4 sm:$0xff]   ;;  %v7716_v14 = vld [vmem:[#allocation7 + $0x64] ss:$16 sps:$4 sm:$0xff]  }
 0x241   : > { %3899 = vmatpush2.bf16.msra.mxu1 %v7121_v34  ;;  %3927 = vmatprep.subr.bf16.mxu0 %v7178_v9  ;;  %v7704_v34 = vld [vmem:[#allocation7 + $0xa4] ss:$16 sps:$4 sm:$0xff]   ;;  %v7711_v18 = vld [vmem:[#allocation7 + $0x280] ss:$16 sps:$4 sm:$0xff]  }
 0x242   : > { %3900 = vmatprep.subr.bf16.mxu1 %v7114_v11  ;;  %v7707_v9 = vld [vmem:[#allocation7 + $0x2a4] ss:$16 sps:$4 sm:$0xff]   ;;  %v7705_v11 = vld [vmem:[#allocation7 + $0x2a0] ss:$16 sps:$4 sm:$0xff]  }
 0x243   : > { %v7719_v17 = vld [vmem:[#allocation7 + $0x264] ss:$16 sps:$4 sm:$0xff]   ;;  %v7717_v23 = vld [vmem:[#allocation7 + $0x260] ss:$16 sps:$4 sm:$0xff]  }
 0x244   : > { %3928 = vmatpush1.bf16.msra.mxu0 %v7177_v35  ;;  %v7714_v35 = vld [vmem:[#allocation7 + $0x60] ss:$16 sps:$4 sm:$0xff]   ;;  %v7722_v24 = vld [vmem:[#allocation7 + $0x44] ss:$16 sps:$4 sm:$0xff]  }
 0x245   : > { %3901 = vmatpush2.bf16.msra.mxu1 %v7113_v48  ;;  %3929 = vmatprep.subr.bf16.mxu0 %v7170_v26  ;;  %v7725_v48 = vld [vmem:[#allocation7 + $0x244] ss:$16 sps:$4 sm:$0xff]   ;;  %v7720_v26 = vld [vmem:[#allocation7 + $0x40] ss:$16 sps:$4 sm:$0xff]  }
 0x246   : > { %3902 = vmatprep.subr.bf16.mxu1 %v7106_v32  ;;  %v7723_v27 = vld [vmem:[#allocation7 + $0x240] ss:$16 sps:$4 sm:$0xff]   ;;  %v7728_v55 = vld [vmem:[#allocation7 + $0x24] ss:$16 sps:$4 sm:$0xff]  }
 0x247   : > { %v7731_v32 = vld [vmem:[#allocation7 + $0x224] ss:$16 sps:$4 sm:$0xff]   ;;  %v7726_v0 = vld [vmem:[#allocation7 + $0x20] ss:$16 sps:$4 sm:$0xff]  }
 0x248   : > { %3930 = vmatpush1.bf16.msra.mxu0 %v7169_v36  ;;  %v7729_v1 = vld [vmem:[#allocation7 + $0x220] ss:$16 sps:$4 sm:$0xff]   ;;  %v7734_v43 = vld [vmem:[#allocation7 + $0x4] ss:$16 sps:$4 sm:$0xff]  }
 0x249   : > { %3903 = vmatpush2.bf16.msra.mxu1 %v7105_v25  ;;  %3931 = vmatprep.subr.bf16.mxu0 %v7162_v28  ;;  %v7737_v2 = vld [vmem:[#allocation7 + $0x204] ss:$16 sps:$4 sm:$0xff]   ;;  %v7732_v33 = vld [vmem:[#allocation7] ss:$16 sps:$4 sm:$0xff]  }
 0x24a   : > { %3904 = vmatprep.subr.bf16.mxu1 %v7098_v42  ;;  %v7735_v44 = vld [vmem:[#allocation7 + $0x200] ss:$16 sps:$4 sm:$0xff]   ;;  %v7740_v31 = vld [vmem:[#allocation7 + $0x1e4] ss:$16 sps:$4 sm:$0xff]  }
 0x24b   : > { %v7743_v41 = vld [vmem:[#allocation7 + $0x3e4] ss:$16 sps:$4 sm:$0xff]   ;;  %v7738_v36 = vld [vmem:[#allocation7 + $0x1e0] ss:$16 sps:$4 sm:$0xff]  }
 0x24c   : > { %3932 = vmatpush1.bf16.msra.mxu0 %v7161_v49  ;;  %v7741_v37 = vld [vmem:[#allocation7 + $0x3e0] ss:$16 sps:$4 sm:$0xff]   ;;  %v7746_v25 = vld [vmem:[#allocation7 + $0x1c4] ss:$16 sps:$4 sm:$0xff]  }
 0x24d   : > { %3905 = vmatpush2.bf16.msra.mxu1 %v7097_v50  ;;  %5542 = vmatprep.subr.bf16.mxu0 %v7692_v16  ;;  %v7749_v28 = vld [vmem:[#allocation7 + $0x3c4] ss:$16 sps:$4 sm:$0xff]   ;;  %v7744_v38 = vld [vmem:[#allocation7 + $0x1c0] ss:$16 sps:$4 sm:$0xff]  }
 0x24e   : > { %5585 = vmatprep.subr.bf16.mxu1 %v7695_v53  ;;  %v7747_v42 = vld [vmem:[#allocation7 + $0x3c0] ss:$16 sps:$4 sm:$0xff]   ;;  %v7752_v5 = vld [vmem:[#allocation7 + $0x1a4] ss:$16 sps:$4 sm:$0xff]  }
 0x24f   : > { %3950 = vmatmul.mubr.bf16.vlgmr.msra.gmra.mxu0 %v8199_v59  ;;  %v7755_v29 = vld [vmem:[#allocation7 + $0x3a4] ss:$16 sps:$4 sm:$0xff]   ;;  %v7750_v45 = vld [vmem:[#allocation7 + $0x1a0] ss:$16 sps:$4 sm:$0xff]  }
 0x250   : > { %3907 = vmatmul.mubr.bf16.vlgmr.msra.gmra.mxu1 %v8200_v63  ;;  %5543 = vmatpush1.bf16.msra.mxu0 %v7690_v3  ;;  %v7753_v49 = vld [vmem:[#allocation7 + $0x3a0] ss:$16 sps:$4 sm:$0xff]   ;;  %v7758_v46 = vld [vmem:[#allocation7 + $0x184] ss:$16 sps:$4 sm:$0xff]  }
 0x251   : > { %5574 = vmatprep.mubr.bf16.mxu0 %v8791_v60  ;;  %5586 = vmatpush1.bf16.msra.mxu1 %v7693_v56  ;;  %v7761_v50 = vld [vmem:[#allocation7 + $0x384] ss:$16 sps:$4 sm:$0xff]   ;;  %v7756_v16 = vld [vmem:[#allocation7 + $0x180] ss:$16 sps:$4 sm:$0xff]  }
 0x252   : > { %5617 = vmatprep.mubr.bf16.mxu1 %v8793_v22  ;;  %5544 = vmatprep.subr.bf16.mxu0 %v7698_v52  ;;  %v7759_v51 = vld [vmem:[#allocation7 + $0x380] ss:$16 sps:$4 sm:$0xff]   ;;  %v7764_v53 = vld [vmem:[#allocation7 + $0x164] ss:$16 sps:$4 sm:$0xff]  }
 0x253   : > { %5587 = vmatprep.subr.bf16.mxu1 %v7701_v62  ;;  %v7767_v19 = vld [vmem:[#allocation7 + $0x364] ss:$16 sps:$4 sm:$0xff]   ;;  %v7762_v4 = vld [vmem:[#allocation7 + $0x160] ss:$16 sps:$4 sm:$0xff]  }
 0x254   : > { %5545 = vmatpush1.bf16.msra.mxu0 %v7696_v6  ;;  %v7765_v3 = vld [vmem:[#allocation7 + $0x360] ss:$16 sps:$4 sm:$0xff]   ;;  %v7770_v61 = vld [vmem:[#allocation7 + $0x144] ss:$16 sps:$4 sm:$0xff]  }
 0x255   : > { %5588 = vmatpush1.bf16.msra.mxu1 %v7699_v7  ;;  %5546 = vmatprep.subr.bf16.mxu0 %v7704_v34  ;;  %v7773_v56 = vld [vmem:[#allocation7 + $0x344] ss:$16 sps:$4 sm:$0xff]   ;;  %v7768_v57 = vld [vmem:[#allocation7 + $0x140] ss:$16 sps:$4 sm:$0xff]  }
 0x256   : > { %5589 = vmatprep.subr.bf16.mxu1 %v7707_v9  ;;  %v7771_v52 = vld [vmem:[#allocation7 + $0x340] ss:$16 sps:$4 sm:$0xff]   ;;  %v7776_v59 = vld [vmem:[#allocation7 + $0x124] ss:$16 sps:$4 sm:$0xff]  }
 0x257   : > { %v7779_v62 = vld [vmem:[#allocation7 + $0x324] ss:$16 sps:$4 sm:$0xff]   ;;  %v7774_v63 = vld [vmem:[#allocation7 + $0x120] ss:$16 sps:$4 sm:$0xff]  }
 0x258   : > { %5547 = vmatpush1.bf16.msra.mxu0 %v7702_v10  ;;  %v7777_v6 = vld [vmem:[#allocation7 + $0x320] ss:$16 sps:$4 sm:$0xff]   ;;  %v7782_v7 = vld [vmem:[#allocation7 + $0x104] ss:$16 sps:$4 sm:$0xff]  }
 0x259   : > { %5590 = vmatpush1.bf16.msra.mxu1 %v7705_v11  ;;  %5548 = vmatprep.subr.bf16.mxu0 %v7710_v58  ;;  %v7785_v34 = vld [vmem:[#allocation7 + $0x304] ss:$16 sps:$4 sm:$0xff]   ;;  %v7780_v9 = vld [vmem:[#allocation7 + $0x100] ss:$16 sps:$4 sm:$0xff]  }
 0x25a   : > { %5591 = vmatprep.subr.bf16.mxu1 %v7713_v12  ;;  %v7783_v10 = vld [vmem:[#allocation7 + $0x300] ss:$16 sps:$4 sm:$0xff]   ;;  %v7788_v11 = vld [vmem:[#allocation7 + $0x4e4] ss:$16 sps:$4 sm:$0xff]  }
 0x25b   : > { %v7848_v58 = vld [vmem:[#allocation7 + $0x6e4] ss:$16 sps:$4 sm:$0xff]   ;;  %v7786_v12 = vld [vmem:[#allocation7 + $0x4e0] ss:$16 sps:$4 sm:$0xff]  }
 0x25c   : > { %5549 = vmatpush1.bf16.msra.mxu0 %v7708_v13  ;;  %v7791_v13 = vld [vmem:[#allocation7 + $0x4c4] ss:$16 sps:$4 sm:$0xff]  }
 0x25d   : > { %5592 = vmatpush1.bf16.msra.mxu1 %v7711_v18  ;;  %5550 = vmatprep.subr.bf16.mxu0 %v7716_v14  ;;  %v7846_v18 = vld [vmem:[#allocation7 + $0x6e0] ss:$16 sps:$4 sm:$0xff]   ;;  %v7854_v14 = vld [vmem:[#allocation7 + $0x6c4] ss:$16 sps:$4 sm:$0xff]  }
 0x25e   : > { %5593 = vmatprep.subr.bf16.mxu1 %v7719_v17  ;;  %v7789_v17 = vld [vmem:[#allocation7 + $0x4c0] ss:$16 sps:$4 sm:$0xff]  }
 0x260   : > { %5551 = vmatpush1.bf16.msra.mxu0 %v7714_v35  ;;  %v7794_v35 = vld [vmem:[#allocation7 + $0x4a4] ss:$16 sps:$4 sm:$0xff]  }
 0x261   : > { %5594 = vmatpush1.bf16.msra.mxu1 %v7717_v23  ;;  %5552 = vmatprep.subr.bf16.mxu0 %v7722_v24  ;;  %v7852_v23 = vld [vmem:[#allocation7 + $0x6c0] ss:$16 sps:$4 sm:$0xff]   ;;  %v7860_v24 = vld [vmem:[#allocation7 + $0x6a4] ss:$16 sps:$4 sm:$0xff]  }
 0x262   : > { %5595 = vmatprep.subr.bf16.mxu1 %v7725_v48  ;;  %v7792_v48 = vld [vmem:[#allocation7 + $0x4a0] ss:$16 sps:$4 sm:$0xff]  }
 0x264   : > { %5553 = vmatpush1.bf16.msra.mxu0 %v7720_v26  ;;  %v7797_v26 = vld [vmem:[#allocation7 + $0x484] ss:$16 sps:$4 sm:$0xff]  }
 0x265   : > { %5596 = vmatpush1.bf16.msra.mxu1 %v7723_v27  ;;  %5554 = vmatprep.subr.bf16.mxu0 %v7728_v55  ;;  %v7858_v27 = vld [vmem:[#allocation7 + $0x6a0] ss:$16 sps:$4 sm:$0xff]   ;;  %v7866_v55 = vld [vmem:[#allocation7 + $0x684] ss:$16 sps:$4 sm:$0xff]  }
 0x266   : > { %5597 = vmatprep.subr.bf16.mxu1 %v7731_v32  ;;  %v7795_v32 = vld [vmem:[#allocation7 + $0x480] ss:$16 sps:$4 sm:$0xff]  }
 0x268   : > { %5555 = vmatpush1.bf16.msra.mxu0 %v7726_v0  ;;  %v7800_v0 = vld [vmem:[#allocation7 + $0x464] ss:$16 sps:$4 sm:$0xff]  }
 0x269   : > { %5598 = vmatpush1.bf16.msra.mxu1 %v7729_v1  ;;  %5556 = vmatprep.subr.bf16.mxu0 %v7734_v43  ;;  %v7864_v1 = vld [vmem:[#allocation7 + $0x680] ss:$16 sps:$4 sm:$0xff]   ;;  %v7872_v43 = vld [vmem:[#allocation7 + $0x664] ss:$16 sps:$4 sm:$0xff]  }
 0x26a   : > { %5599 = vmatprep.subr.bf16.mxu1 %v7737_v2  ;;  %v7798_v2 = vld [vmem:[#allocation7 + $0x460] ss:$16 sps:$4 sm:$0xff]  }
 0x26c   : > { %5557 = vmatpush1.bf16.msra.mxu0 %v7732_v33 }
 0x26d   : > { %5600 = vmatpush1.bf16.msra.mxu1 %v7735_v44  ;;  %5558 = vmatprep.subr.bf16.mxu0 %v7740_v31  ;;  %v7803_v44 = vld [vmem:[#allocation7 + $0x444] ss:$16 sps:$4 sm:$0xff]   ;;  %v7870_v31 = vld [vmem:[#allocation7 + $0x660] ss:$16 sps:$4 sm:$0xff]  }
 0x26e   : > { %5601 = vmatprep.subr.bf16.mxu1 %v7743_v41  ;;  %v7878_v41 = vld [vmem:[#allocation7 + $0x644] ss:$16 sps:$4 sm:$0xff]  }
 0x270   : > { %5559 = vmatpush2.bf16.msra.mxu0 %v7738_v36  ;;  %v8800_v33 = vpop.f32.mrf.mxu1  ;;  %v7801_v36 = vld [vmem:[#allocation7 + $0x440] ss:$16 sps:$4 sm:$0xff]  }
 0x271   : > { %5602 = vmatpush2.bf16.msra.mxu1 %v7741_v37  ;;  %5560 = vmatprep.subr.bf16.mxu0 %v7746_v25  ;;  %v8802_v37 = vpop.f32.mrf.mxu0 }
 0x272   : > { %5603 = vmatprep.subr.bf16.mxu1 %v7749_v28  ;;  %v3695_v25 = vpop.f32.mrf.mxu1  ;;  %v7806_v28 = vld [vmem:[#allocation7 + $0x424] ss:$16 sps:$4 sm:$0xff]  }
 0x274   : > { %5561 = vmatpush2.bf16.msra.mxu0 %v7744_v38  ;;  %v7876_v38 = vld [vmem:[#allocation7 + $0x640] ss:$16 sps:$4 sm:$0xff]  }
 0x275   : > { %5604 = vmatpush2.bf16.msra.mxu1 %v7747_v42  ;;  %5562 = vmatprep.subr.bf16.mxu0 %v7752_v5  ;;  %v7884_v42 = vld [vmem:[#allocation7 + $0x624] ss:$16 sps:$4 sm:$0xff]   ;;  %v978_v5 = vsub.s32 5, %v8690_v30 }
 0x276   : > { %5605 = vmatprep.subr.bf16.mxu1 %v7755_v29  ;;  %v7804_v29 = vld [vmem:[#allocation7 + $0x420] ss:$16 sps:$4 sm:$0xff]  }
 0x278   : > { %5563 = vmatpush2.bf16.msra.mxu0 %v7750_v45  ;;  %v3652_v45 = vpop.f32.mrf.mxu0 }
 0x279   : > { %5606 = vmatpush2.bf16.msra.mxu1 %v7753_v49  ;;  %5564 = vmatprep.subr.bf16.mxu0 %v7758_v46  ;;  %v8805_v49 = vpop.f32.mrf.mxu1  ;;  %v7809_v46 = vld [vmem:[#allocation7 + $0x404] ss:$16 sps:$4 sm:$0xff]  }
 0x27a   : > { %5607 = vmatprep.subr.bf16.mxu1 %v7761_v50  ;;  %v7882_v50 = vld [vmem:[#allocation7 + $0x620] ss:$16 sps:$4 sm:$0xff]  }
 0x27c   : > { %5565 = vmatpush2.bf16.msra.mxu0 %v7756_v16  ;;  %v7890_v16 = vld [vmem:[#allocation7 + $0x604] ss:$16 sps:$4 sm:$0xff]  }
 0x27d   : > { %5608 = vmatpush2.bf16.msra.mxu1 %v7759_v51  ;;  %5566 = vmatprep.subr.bf16.mxu0 %v7764_v53  ;;  %v979_v51 = vrot.slane %v8767_v21, %v978_v5  ;;  %v7807_v53 = vld [vmem:[#allocation7 + $0x400] ss:$16 sps:$4 sm:$0xff]  }
 0x27e   : > { %5609 = vmatprep.subr.bf16.mxu1 %v7767_v19  ;;  %v3654_v19 = vpop.f32.mrf.mxu0 }
 0x280   : > { %5567 = vmatpush2.bf16.msra.mxu0 %v7762_v4  ;;  %v3699_v4 = vpop.f32.mrf.mxu1 }
 0x281   : > { %5610 = vmatpush2.bf16.msra.mxu1 %v7765_v3  ;;  %5568 = vmatprep.subr.bf16.mxu0 %v7770_v61  ;;  %v7812_v3 = vld [vmem:[#allocation7 + $0x5e4] ss:$16 sps:$4 sm:$0xff]   ;;  %v7888_v61 = vld [vmem:[#allocation7 + $0x600] ss:$16 sps:$4 sm:$0xff]  }
 0x282   : > { %5611 = vmatprep.subr.bf16.mxu1 %v7773_v56  ;;  %v7896_v56 = vld [vmem:[#allocation7 + $0x7e4] ss:$16 sps:$4 sm:$0xff]  }
 0x284   : > { %5569 = vmatpush2.bf16.msra.mxu0 %v7768_v57 }
 0x285   : > { %5612 = vmatpush2.bf16.msra.mxu1 %v7771_v52  ;;  %5570 = vmatprep.subr.bf16.mxu0 %v7776_v59  ;;  %v3653_v52 = vadd.f32 %v3652_v45, %v979_v51  ;;  %v7810_v59 = vld [vmem:[#allocation7 + $0x5e0] ss:$16 sps:$4 sm:$0xff]  }
 0x286   : > { %5613 = vmatprep.subr.bf16.mxu1 %v7779_v62  ;;  %v3656_v62 = vpop.f32.mrf.mxu0  ;;  %v7822_v45 = vld [vmem:[#allocation7 + $0x560] ss:$16 sps:$4 sm:$0xff]  }
 0x288   : > { %5571 = vmatpush2.bf16.msra.mxu0 %v7774_v63  ;;  %v7815_v63 = vld [vmem:[#allocation7 + $0x5c4] ss:$16 sps:$4 sm:$0xff]  }
 0x289   : > { %5614 = vmatpush2.bf16.msra.mxu1 %v7777_v6  ;;  %5572 = vmatprep.subr.bf16.mxu0 %v7782_v7  ;;  %v7894_v6 = vld [vmem:[#allocation7 + $0x7e0] ss:$16 sps:$4 sm:$0xff]   ;;  %v7902_v7 = vld [vmem:[#allocation7 + $0x7c4] ss:$16 sps:$4 sm:$0xff]  }
 0x28a   : > { %5615 = vmatprep.subr.bf16.mxu1 %v7785_v34 }
 0x28c   : > { %5573 = vmatpush2.bf16.msra.mxu0 %v7780_v9 }
 0x28d   : > { %5616 = vmatpush2.bf16.msra.mxu1 %v7783_v10  ;;  %5628 = vmatprep.subr.bf16.mxu0 %v7788_v11  ;;  %v3696_v10 = vadd.f32 %v3695_v25, %v3653_v52  ;;  %v3657_v11 = vadd.f32 %v3656_v62, %v979_v51  ;;  %v7912_v25 = vld [vmem:[#allocation7 + $0x780] ss:$16 sps:$4 sm:$0xff]   ;;  %v7926_v51 = vld [vmem:[#allocation7 + $0x744] ss:$16 sps:$4 sm:$0xff]  }
 0x28e   : > { %5671 = vmatprep.subr.bf16.mxu1 %v7848_v58  ;;  %v7813_v58 = vld [vmem:[#allocation7 + $0x5c0] ss:$16 sps:$4 sm:$0xff]  }
 0x28f   : > { %5575 = vmatmul.mubr.bf16.vlgmr.msra.gmra.mxu0 %v8729_v15 }
 0x290   : > { %5618 = vmatmul.mubr.bf16.vlgmr.msra.gmra.mxu1 %v8771_v47  ;;  %5629 = vmatpush1.bf16.msra.mxu0 %v7786_v12  ;;  %v8808_v57 = vpop.f32.mrf.mxu1 }
 0x291   : > { %5630 = vmatprep.subr.bf16.mxu0 %v7791_v13  ;;  %5672 = vmatpush1.bf16.msra.mxu1 %v7846_v18  ;;  %v7818_v13 = vld [vmem:[#allocation7 + $0x5a4] ss:$16 sps:$4 sm:$0xff]   ;;  %v7900_v18 = vld [vmem:[#allocation7 + $0x7c0] ss:$16 sps:$4 sm:$0xff]  }
 0x292   : > { %5673 = vmatprep.subr.bf16.mxu1 %v7854_v14  ;;  %v3781_v34 = vpop.f32.mrf.mxu1 }
 0x294   : > { %5631 = vmatpush1.bf16.msra.mxu0 %v7789_v17  ;;  %v7908_v17 = vld [vmem:[#allocation7 + $0x7a4] ss:$16 sps:$4 sm:$0xff]  }
 0x295   : > { %5632 = vmatprep.subr.bf16.mxu0 %v7794_v35  ;;  %5674 = vmatpush1.bf16.msra.mxu1 %v7852_v23  ;;  %v3783_v35 = vpop.f32.mrf.mxu1 }
 0x296   : > { %5675 = vmatprep.subr.bf16.mxu1 %v7860_v24  ;;  %v3700_v24 = vadd.f32 %v3699_v4, %v3657_v11  ;;  %v7825_v4 = vld [vmem:[#allocation7 + $0x540] ss:$16 sps:$4 sm:$0xff]  }
 0x297   : > { %v7936_v11 = vld [vmem:[#allocation7 + $0x700] ss:$16 sps:$4 sm:$0xff]  }
 0x298   : > { %5633 = vmatpush1.bf16.msra.mxu0 %v7792_v48  ;;  %v7816_v48 = vld [vmem:[#allocation7 + $0x5a0] ss:$16 sps:$4 sm:$0xff]  }
 0x299   : > { %5634 = vmatprep.subr.bf16.mxu0 %v7797_v26  ;;  %5676 = vmatpush1.bf16.msra.mxu1 %v7858_v27  ;;  %v974_v26 = vsub.s32 4, %v8690_v30 }
 0x29a   : > { %5677 = vmatprep.subr.bf16.mxu1 %v7866_v55  ;;  %v7821_v55 = vld [vmem:[#allocation7 + $0x584] ss:$16 sps:$4 sm:$0xff]  }
 0x29c   : > { %5635 = vmatpush1.bf16.msra.mxu0 %v7795_v32  ;;  %v7906_v32 = vld [vmem:[#allocation7 + $0x7a0] ss:$16 sps:$4 sm:$0xff]  }
 0x29d   : > { %5636 = vmatprep.subr.bf16.mxu0 %v7800_v0  ;;  %5678 = vmatpush1.bf16.msra.mxu1 %v7864_v1 }
 0x29e   : > { %5679 = vmatprep.subr.bf16.mxu1 %v7872_v43  ;;  %v7914_v43 = vld [vmem:[#allocation7 + $0x784] ss:$16 sps:$4 sm:$0xff]  }
 0x2a0   : > { %5637 = vmatpush1.bf16.msra.mxu0 %v7798_v2  ;;  %v3785_v2 = vpop.f32.mrf.mxu1 }
 0x2a1   : > { %5638 = vmatprep.subr.bf16.mxu0 %v7803_v44  ;;  %5680 = vmatpush1.bf16.msra.mxu1 %v7870_v31  ;;  %v7819_v31 = vld [vmem:[#allocation7 + $0x580] ss:$16 sps:$4 sm:$0xff]  }
 0x2a2   : > { %5681 = vmatprep.subr.bf16.mxu1 %v7878_v41  ;;  %v975_v41 = vrot.slane %v8767_v21, %v974_v26  ;;  %v7857_v26 = vld [vmem:[#allocation7 + $0x4c] ss:$16 sps:$4 sm:$0xff]  }
 0x2a4   : > { %5639 = vmatpush1.bf16.msra.mxu0 %v7801_v36  ;;  %v7824_v36 = vld [vmem:[#allocation7 + $0x564] ss:$16 sps:$4 sm:$0xff]   ;;  %v3655_v5 = vadd.f32 %v3654_v19, %v975_v41 }
 0x2a5   : > { %5640 = vmatprep.subr.bf16.mxu0 %v7806_v28  ;;  %5682 = vmatpush1.bf16.msra.mxu1 %v7876_v38 }
 0x2a6   : > { %5683 = vmatprep.subr.bf16.mxu1 %v7884_v42  ;;  %v7920_v42 = vld [vmem:[#allocation7 + $0x764] ss:$16 sps:$4 sm:$0xff]  }
 0x2a8   : > { %5641 = vmatpush1.bf16.msra.mxu0 %v7804_v29 }
 0x2a9   : > { %5642 = vmatprep.subr.bf16.mxu0 %v7809_v46  ;;  %5684 = vmatpush1.bf16.msra.mxu1 %v7882_v50  ;;  %v3651_v46 = vadd.f32 %v8802_v37, %v975_v41  ;;  %v7827_v50 = vld [vmem:[#allocation7 + $0x544] ss:$16 sps:$4 sm:$0xff]   ;;  %v7885_v41 = vld [vmem:[#allocation7 + $0x1a8] ss:$16 sps:$4 sm:$0xff]  }
 0x2aa   : > { %5685 = vmatprep.subr.bf16.mxu1 %v7890_v16  ;;  %v7918_v16 = vld [vmem:[#allocation7 + $0x760] ss:$16 sps:$4 sm:$0xff]   ;;  %v7932_v37 = vld [vmem:[#allocation7 + $0x724] ss:$16 sps:$4 sm:$0xff]  }
 0x2ab   : > { %v3694_v19 = vadd.f32 %v8800_v33, %v3651_v46  ;;  %v7911_v46 = vld [vmem:[#allocation7 + $0x12c] ss:$16 sps:$4 sm:$0xff]  }
 0x2ac   : > { %5643 = vmatpush1.bf16.msra.mxu0 %v7807_v53  ;;  %v3698_v53 = vadd.f32 %v8805_v49, %v3655_v5  ;;  %v7930_v49 = vld [vmem:[#allocation7 + $0x720] ss:$16 sps:$4 sm:$0xff]   ;;  %v7903_v5 = vld [vmem:[#allocation7 + $0x148] ss:$16 sps:$4 sm:$0xff]  }
 0x2ad   : > { %5644 = vmatprep.subr.bf16.mxu0 %v7812_v3  ;;  %5686 = vmatpush1.bf16.msra.mxu1 %v7888_v61  ;;  %v7830_v61 = vld [vmem:[#allocation7 + $0x524] ss:$16 sps:$4 sm:$0xff]  }
 0x2ae   : > { %5687 = vmatprep.subr.bf16.mxu1 %v7896_v56  ;;  %v7924_v56 = vld [vmem:[#allocation7 + $0x740] ss:$16 sps:$4 sm:$0xff]  }
 0x2af   : > { %v8810_v9 = vpop.f32.mrf.mxu0 }
 0x2b0   : > { %5645 = vmatpush2.bf16.msra.mxu0 %v7810_v59  ;;  %v3737_v52 = vadd.f32 %v8810_v9, %v3694_v19  ;;  %v7828_v59 = vld [vmem:[#allocation7 + $0x520] ss:$16 sps:$4 sm:$0xff]   ;;  %v7944_v9 = vld [vmem:[#allocation7 + $0x2ec] ss:$16 sps:$4 sm:$0xff]   ;;  %v986_v19 = vsub.s32 7, %v8690_v30 }
 0x2b1   : > { %v3738_v12 = vpop.f32.mrf.mxu0  ;;  %5646 = vmatprep.subr.bf16.mxu0 %v7815_v63  ;;  %5688 = vmatpush2.bf16.msra.mxu1 %v7894_v6  ;;  %v7833_v63 = vld [vmem:[#allocation7 + $0x504] ss:$16 sps:$4 sm:$0xff]  }
 0x2b2   : > { %v3739_v14 = vadd.f32 %v3738_v12, %v3696_v10  ;;  %5689 = vmatprep.subr.bf16.mxu1 %v7902_v7  ;;  %v7938_v6 = vld [vmem:[#allocation7 + $0x704] ss:$16 sps:$4 sm:$0xff]   ;;  %v3780_v33 = vadd.f32 %v8808_v57, %v3737_v52  ;;  %v7831_v7 = vld [vmem:[#allocation7 + $0x500] ss:$16 sps:$4 sm:$0xff]   ;;  %v7836_v10 = vld [vmem:[#allocation7 + $0xec] ss:$16 sps:$4 sm:$0xff]  }
 0x2b3   : > { %v3740_v23 = vpop.f32.mrf.mxu0  ;;  %v7834_v12 = vld [vmem:[#allocation7 + $0xe8] ss:$16 sps:$4 sm:$0xff]  }
 0x2b4   : > { %5647 = vmatpush2.bf16.msra.mxu0 %v7813_v58  ;;  %v3782_v0 = vadd.f32 %v3781_v34, %v3739_v14  ;;  %v3741_v3 = vadd.f32 %v3740_v23, %v3698_v53  ;;  %v3964_v58 = vmax.f32 %v3780_v33, 0.0  ;;  %v7837_v57 = vld [vmem:[#allocation7 + $0xc8] ss:$16 sps:$4 sm:$0xff]   ;;  %v7842_v14 = vld [vmem:[#allocation7 + $0xac] ss:$16 sps:$4 sm:$0xff]  }
 0x2b5   : > { %v3742_v27 = vpop.f32.mrf.mxu0  ;;  %5648 = vmatprep.subr.bf16.mxu0 %v7818_v13  ;;  %5690 = vmatpush2.bf16.msra.mxu1 %v7900_v18  ;;  %v7839_v18 = vld [vmem:[#allocation7 + $0xcc] ss:$16 sps:$4 sm:$0xff]   ;;  %v7843_v23 = vld [vmem:[#allocation7 + $0x88] ss:$16 sps:$4 sm:$0xff]  }
 0x2b6   : > { %v3743_v1 = vadd.f32 %v3742_v27, %v3700_v24  ;;  %5691 = vmatprep.subr.bf16.mxu1 %v7908_v17  ;;  %v3965_v28 = vmax.f32 %v3782_v0, 0.0  ;;  %v3784_v62 = vadd.f32 %v3783_v35, %v3741_v3  ;;  %v7840_v17 = vld [vmem:[#allocation7 + $0xa8] ss:$16 sps:$4 sm:$0xff]   ;;  %v7845_v35 = vld [vmem:[#allocation7 + $0x8c] ss:$16 sps:$4 sm:$0xff]   ;;  %v982_v3 = vsub.s32 6, %v8690_v30 }
 0x2b7   : > { %v7851_v24 = vld [vmem:[#allocation7 + $0x6c] ss:$16 sps:$4 sm:$0xff]   ;;  %v7855_v27 = vld [vmem:[#allocation7 + $0x48] ss:$16 sps:$4 sm:$0xff]  }
 0x2b8   : > { %v3786_v44 = vadd.f32 %v3785_v2, %v3743_v1  ;;  %5649 = vmatpush2.bf16.msra.mxu0 %v7816_v48  ;;  %v3972_v34 = vmax.f32 %v3784_v62, 0.0  ;;  %v7849_v48 = vld [vmem:[#allocation7 + $0x68] ss:$16 sps:$4 sm:$0xff]   ;;  %v7875_v1 = vld [vmem:[#allocation7 + $0x1ec] ss:$16 sps:$4 sm:$0xff]   ;;  %v983_v62 = vrot.slane %v8767_v21, %v982_v3 }
 0x2b9   : > { %5650 = vmatprep.subr.bf16.mxu0 %v7821_v55  ;;  %5692 = vmatpush2.bf16.msra.mxu1 %v7906_v32  ;;  %v7863_v55 = vld [vmem:[#allocation7 + $0x2c] ss:$16 sps:$4 sm:$0xff]   ;;  %v7867_v0 = vld [vmem:[#allocation7 + $0x8] ss:$16 sps:$4 sm:$0xff]  }
 0x2ba   : > { %v3973_v38 = vmax.f32 %v3786_v44, 0.0  ;;  %5693 = vmatprep.subr.bf16.mxu1 %v7914_v43  ;;  %v8822_v13 = vpack.c.bf16 %v3972_v34, %v3964_v58  ;;  %v7869_v32 = vld [vmem:[#allocation7 + $0xc] ss:$16 sps:$4 sm:$0xff]   ;;  %v7873_v43 = vld [vmem:[#allocation7 + $0x1e8] ss:$16 sps:$4 sm:$0xff]  }
 0x2bb   : > { %v7881_v2 = vld [vmem:[#allocation7 + $0x1cc] ss:$16 sps:$4 sm:$0xff]   ;;  %v7879_v44 = vld [vmem:[#allocation7 + $0x1c8] ss:$16 sps:$4 sm:$0xff]  }
 0x2bc   : > { %5651 = vmatpush2.bf16.msra.mxu0 %v7819_v31  ;;  %v8814_v29 = vpack.c.bf16 %v3973_v38, %v3965_v28  ;;  %v7887_v31 = vld [vmem:[#allocation7 + $0x1ac] ss:$16 sps:$4 sm:$0xff]   ;;  %v7897_v38 = vld [vmem:[#allocation7 + $0x168] ss:$16 sps:$4 sm:$0xff]  }
 0x2bd   : > { %5652 = vmatprep.subr.bf16.mxu0 %v7824_v36  ;;  %5694 = vmatpush2.bf16.msra.mxu1 %v7912_v25  ;;  %v7893_v36 = vld [vmem:[#allocation7 + $0x18c] ss:$16 sps:$4 sm:$0xff]   ;;  %v7891_v25 = vld [vmem:[#allocation7 + $0x188] ss:$16 sps:$4 sm:$0xff]  }
 0x2be   : > { %5660 = vmatprep.mubr.bf16.mxu0 %v8814_v29  ;;  %5695 = vmatprep.subr.bf16.mxu1 %v7920_v42  ;;  %v7899_v28 = vld [vmem:[#allocation7 + $0x16c] ss:$16 sps:$4 sm:$0xff]   ;;  %v7957_v3 = vld [vmem:[#allocation7 + $0x428] ss:$16 sps:$4 sm:$0xff]  }
 0x2bf   : > { %v7905_v42 = vld [vmem:[#allocation7 + $0x14c] ss:$16 sps:$4 sm:$0xff]  }
 0x2c0   : > { %5653 = vmatpush2.bf16.msra.mxu0 %v7822_v45  ;;  %v7917_v53 = vld [vmem:[#allocation7 + $0x10c] ss:$16 sps:$4 sm:$0xff]  }
 0x2c1   : > { %5654 = vmatprep.subr.bf16.mxu0 %v7827_v50  ;;  %5696 = vmatpush2.bf16.msra.mxu1 %v7918_v16  ;;  %v7909_v16 = vld [vmem:[#allocation7 + $0x128] ss:$16 sps:$4 sm:$0xff]  }
 0x2c2   : > { %5697 = vmatprep.subr.bf16.mxu1 %v7926_v51 }
 0x2c4   : > { %5655 = vmatpush2.bf16.msra.mxu0 %v7825_v4 }
 0x2c5   : > { %5656 = vmatprep.subr.bf16.mxu0 %v7830_v61  ;;  %5698 = vmatpush2.bf16.msra.mxu1 %v7924_v56  ;;  %v7915_v61 = vld [vmem:[#allocation7 + $0x108] ss:$16 sps:$4 sm:$0xff]  }
 0x2c6   : > { %5699 = vmatprep.subr.bf16.mxu1 %v7932_v37  ;;  %v7923_v37 = vld [vmem:[#allocation7 + $0x4ec] ss:$16 sps:$4 sm:$0xff]  }
 0x2c8   : > { %5657 = vmatpush2.bf16.msra.mxu0 %v7828_v59  ;;  %v987_v59 = vrot.slane %v8767_v21, %v986_v19  ;;  %v7935_v21 = vld [vmem:[#allocation7 + $0x4ac] ss:$16 sps:$4 sm:$0xff]  }
 0x2c9   : > { %5658 = vmatprep.subr.bf16.mxu0 %v7833_v63  ;;  %5700 = vmatpush2.bf16.msra.mxu1 %v7930_v49  ;;  %v7921_v63 = vld [vmem:[#allocation7 + $0x4e8] ss:$16 sps:$4 sm:$0xff]   ;;  %v7956_v19 = vld [vmem:[#allocation7 + $0x2ac] ss:$16 sps:$4 sm:$0xff]  }
 0x2ca   : > { %5701 = vmatprep.subr.bf16.mxu1 %v7938_v6  ;;  %v7929_v6 = vld [vmem:[#allocation7 + $0x4cc] ss:$16 sps:$4 sm:$0xff]  }
 0x2cc   : > { %5659 = vmatpush2.bf16.msra.mxu0 %v7831_v7 }
 0x2cd   : > { %5714 = vmatprep.subr.bf16.mxu0 %v7836_v10  ;;  %5702 = vmatpush2.bf16.msra.mxu1 %v7936_v11 }
 0x2ce   : > { %5757 = vmatprep.subr.bf16.mxu1 %v7944_v9  ;;  %v7927_v9 = vld [vmem:[#allocation7 + $0x4c8] ss:$16 sps:$4 sm:$0xff]  }
 0x2cf   : > { %5661 = vmatmul.mubr.bf16.vlgmr.msra.gmra.mxu0 %v8822_v13 }
 0x2d0   : > { %5715 = vmatpush1.bf16.msra.mxu0 %v7834_v12  ;;  %5746 = vmatprep.mubr.bf16.mxu0 %v8791_v60  ;;  %v7861_v60 = vld [vmem:[#allocation7 + $0x28] ss:$16 sps:$4 sm:$0xff]   ;;  %v3822_v50 = vpop.f32.mrf.mxu1 }
 0x2d1   : > { %5716 = vmatprep.subr.bf16.mxu0 %v7839_v18  ;;  %v3823_v10 = vadd.f32 %v3822_v50, %v983_v62  ;;  %v7950_v50 = vld [vmem:[#allocation7 + $0x2cc] ss:$16 sps:$4 sm:$0xff]  }
 0x2d2   : > { %v3824_v4 = vpop.f32.mrf.mxu1 }
 0x2d3   : > { %v3825_v7 = vadd.f32 %v3824_v4, %v987_v59  ;;  %v7959_v4 = vld [vmem:[#allocation7 + $0x42c] ss:$16 sps:$4 sm:$0xff]  }
 0x2d4   : > { %5717 = vmatpush1.bf16.msra.mxu0 %v7837_v57  ;;  %v3826_v52 = vpop.f32.mrf.mxu1 }
 0x2d5   : > { %5718 = vmatprep.subr.bf16.mxu0 %v7842_v14  ;;  %v3827_v58 = vadd.f32 %v3826_v52, %v983_v62  ;;  %v7963_v52 = vld [vmem:[#allocation7 + $0x408] ss:$16 sps:$4 sm:$0xff]   ;;  %v7971_v62 = vld [vmem:[#allocation7 + $0x5ec] ss:$16 sps:$4 sm:$0xff]  }
 0x2d6   : > { %v3828_v33 = vpop.f32.mrf.mxu1 }
 0x2d8   : > { %5719 = vmatpush1.bf16.msra.mxu0 %v7840_v17  ;;  %v3829_v17 = vadd.f32 %v3828_v33, %v987_v59  ;;  %v7960_v59 = vld [vmem:[#allocation7 + $0x288] ss:$16 sps:$4 sm:$0xff]   ;;  %v7974_v33 = vld [vmem:[#allocation7 + $0x24c] ss:$16 sps:$4 sm:$0xff]  }
 0x2d9   : > { %5720 = vmatprep.subr.bf16.mxu0 %v7845_v35 }
 0x2dc   : > { %5721 = vmatpush1.bf16.msra.mxu0 %v7843_v23 }
 0x2dd   : > { %5722 = vmatprep.subr.bf16.mxu0 %v7851_v24 }
 0x2e0   : > { %5723 = vmatpush1.bf16.msra.mxu0 %v7849_v48 }
 0x2e1   : > { %5724 = vmatprep.subr.bf16.mxu0 %v7857_v26 }
 0x2e4   : > { %5725 = vmatpush1.bf16.msra.mxu0 %v7855_v27 }
 0x2e5   : > { %5726 = vmatprep.subr.bf16.mxu0 %v7863_v55 }
 0x2e8   : > { %5727 = vmatpush1.bf16.msra.mxu0 %v7861_v60 }
 0x2e9   : > { %5728 = vmatprep.subr.bf16.mxu0 %v7869_v32 }
 0x2ec   : > { %5729 = vmatpush1.bf16.msra.mxu0 %v7867_v0 }
 0x2ed   : > { %5730 = vmatprep.subr.bf16.mxu0 %v7875_v1 }
 0x2ef   : > { %v3865_v45 = vpop.f32.mrf.mxu0 }
 0x2f0   : > { %5731 = vmatpush2.bf16.msra.mxu0 %v7873_v43  ;;  %v3866_v57 = vadd.f32 %v3865_v45, %v3823_v10  ;;  %v7942_v45 = vld [vmem:[#allocation7 + $0x2e8] ss:$16 sps:$4 sm:$0xff]   ;;  %v7983_v10 = vld [vmem:[#allocation7 + $0x5ac] ss:$16 sps:$4 sm:$0xff]  }
 0x2f1   : > { %5732 = vmatprep.subr.bf16.mxu0 %v7881_v2  ;;  %v3867_v51 = vpop.f32.mrf.mxu0 }
 0x2f2   : > { %v3868_v12 = vadd.f32 %v3867_v51, %v3825_v7  ;;  %v7951_v51 = vld [vmem:[#allocation7 + $0x448] ss:$16 sps:$4 sm:$0xff]  }
 0x2f3   : > { %v3869_v56 = vpop.f32.mrf.mxu0  ;;  %v7975_v7 = vld [vmem:[#allocation7 + $0x5c8] ss:$16 sps:$4 sm:$0xff]  }
 0x2f4   : > { %5733 = vmatpush2.bf16.msra.mxu0 %v7879_v44  ;;  %v3870_v35 = vadd.f32 %v3869_v56, %v3827_v58  ;;  %v7939_v44 = vld [vmem:[#allocation7 + $0x488] ss:$16 sps:$4 sm:$0xff]   ;;  %v7965_v56 = vld [vmem:[#allocation7 + $0x40c] ss:$16 sps:$4 sm:$0xff]  }
 0x2f5   : > { %5734 = vmatprep.subr.bf16.mxu0 %v7887_v31  ;;  %v3871_v49 = vpop.f32.mrf.mxu0  ;;  %v7978_v58 = vld [vmem:[#allocation7 + $0x228] ss:$16 sps:$4 sm:$0xff]  }
 0x2f6   : > { %v3872_v27 = vadd.f32 %v3871_v49, %v3829_v17  ;;  %v7966_v49 = vld [vmem:[#allocation7 + $0x268] ss:$16 sps:$4 sm:$0xff]   ;;  %v7992_v17 = vld [vmem:[#allocation7 + $0x3ec] ss:$16 sps:$4 sm:$0xff]  }
 0x2f8   : > { %5735 = vmatpush2.bf16.msra.mxu0 %v7885_v41  ;;  %v7947_v41 = vld [vmem:[#allocation7 + $0x46c] ss:$16 sps:$4 sm:$0xff]  }
 0x2f9   : > { %5736 = vmatprep.subr.bf16.mxu0 %v7893_v36 }
 0x2fc   : > { %5737 = vmatpush2.bf16.msra.mxu0 %v7891_v25 }
 0x2fd   : > { %5738 = vmatprep.subr.bf16.mxu0 %v7899_v28 }
 0x300   : > { %5739 = vmatpush2.bf16.msra.mxu0 %v7897_v38 }
 0x301   : > { %5740 = vmatprep.subr.bf16.mxu0 %v7905_v42  ;;  %v7945_v42 = vld [vmem:[#allocation7 + $0x468] ss:$16 sps:$4 sm:$0xff]  }
 0x304   : > { %5741 = vmatpush2.bf16.msra.mxu0 %v7903_v5 }
 0x305   : > { %5742 = vmatprep.subr.bf16.mxu0 %v7911_v46 }
 0x308   : > { %5743 = vmatpush2.bf16.msra.mxu0 %v7909_v16  ;;  %v7953_v16 = vld [vmem:[#allocation7 + $0x44c] ss:$16 sps:$4 sm:$0xff]  }
 0x309   : > { %5744 = vmatprep.subr.bf16.mxu0 %v7917_v53  ;;  %v7948_v53 = vld [vmem:[#allocation7 + $0x2c8] ss:$16 sps:$4 sm:$0xff]  }
 0x30c   : > { %5745 = vmatpush2.bf16.msra.mxu0 %v7915_v61  ;;  %v7954_v61 = vld [vmem:[#allocation7 + $0x2a8] ss:$16 sps:$4 sm:$0xff]  }
 0x30d   : > { %5800 = vmatprep.subr.bf16.mxu0 %v7923_v37  ;;  %v7962_v37 = vld [vmem:[#allocation7 + $0x28c] ss:$16 sps:$4 sm:$0xff]  }
 0x30f   : > { %v3951_v34 = vpop.f32.mrf.mxu0  ;;  %5747 = vmatmul.mubr.bf16.vlgmr.msra.gmra.mxu0 %v8729_v15  ;;  %v7933_v15 = vld [vmem:[#allocation7 + $0x4a8] ss:$16 sps:$4 sm:$0xff]  }
 0x310   : > { %v3908_v11 = vpop.f32.mrf.mxu1  ;;  %5801 = vmatpush1.bf16.msra.mxu0 %v7921_v63  ;;  %5832 = vmatprep.mubr.bf16.mxu0 %v8814_v29  ;;  %v7941_v29 = vld [vmem:[#allocation7 + $0x48c] ss:$16 sps:$4 sm:$0xff]   ;;  %v7969_v63 = vld [vmem:[#allocation7 + $0x5e8] ss:$16 sps:$4 sm:$0xff]  }
 0x311   : > { %v3953_v18 = vpop.f32.mrf.mxu0  ;;  %5802 = vmatprep.subr.bf16.mxu0 %v7929_v6  ;;  %v3909_v24 = vadd.f32 %v3908_v11, %v3866_v57  ;;  %v7977_v6 = vld [vmem:[#allocation7 + $0x5cc] ss:$16 sps:$4 sm:$0xff]   ;;  %v7984_v57 = vld [vmem:[#allocation7 + $0x208] ss:$16 sps:$4 sm:$0xff]  }
 0x312   : > { %v3910_v14 = vpop.f32.mrf.mxu1  ;;  %v7980_v11 = vld [vmem:[#allocation7 + $0x22c] ss:$16 sps:$4 sm:$0xff]  }
 0x313   : > { %v3911_v23 = vadd.f32 %v3910_v14, %v3868_v12  ;;  %v3955_v26 = vpop.f32.mrf.mxu0  ;;  %v3952_v43 = vadd.f32 %v3951_v34, %v3909_v24  ;;  %v7972_v34 = vld [vmem:[#allocation7 + $0x248] ss:$16 sps:$4 sm:$0xff]   ;;  %v7989_v12 = vld [vmem:[#allocation7 + $0x58c] ss:$16 sps:$4 sm:$0xff]  }
 0x314   : > { %v3912_v48 = vpop.f32.mrf.mxu1  ;;  %5803 = vmatpush1.bf16.msra.mxu0 %v7927_v9  ;;  %v7981_v9 = vld [vmem:[#allocation7 + $0x5a8] ss:$16 sps:$4 sm:$0xff]   ;;  %v7995_v14 = vld [vmem:[#allocation7 + $0x56c] ss:$16 sps:$4 sm:$0xff]  }
 0x315   : > { %v3913_v55 = vadd.f32 %v3912_v48, %v3870_v35  ;;  %5804 = vmatprep.subr.bf16.mxu0 %v7935_v21  ;;  %v3954_v32 = vadd.f32 %v3953_v18, %v3911_v23  ;;  %v3957_v2 = vpop.f32.mrf.mxu0  ;;  %v3966_v38 = vmax.f32 %v3952_v43, 0.0  ;;  %v7986_v18 = vld [vmem:[#allocation7 + $0x20c] ss:$16 sps:$4 sm:$0xff]   ;;  %v7987_v21 = vld [vmem:[#allocation7 + $0x588] ss:$16 sps:$4 sm:$0xff]  }
 0x316   : > { %v3914_v60 = vpop.f32.mrf.mxu1  ;;  %v7993_v35 = vld [vmem:[#allocation7 + $0x568] ss:$16 sps:$4 sm:$0xff]   ;;  %v8001_v24 = vld [vmem:[#allocation7 + $0x54c] ss:$16 sps:$4 sm:$0xff]  }
 0x317   : > { %v3956_v0 = vadd.f32 %v3955_v26, %v3913_v55  ;;  %v3915_v1 = vadd.f32 %v3914_v60, %v3872_v27  ;;  %v3967_v25 = vmax.f32 %v3954_v32, 0.0  ;;  %v7990_v23 = vld [vmem:[#allocation7 + $0x3e8] ss:$16 sps:$4 sm:$0xff]   ;;  %v7998_v48 = vld [vmem:[#allocation7 + $0x3cc] ss:$16 sps:$4 sm:$0xff]  }
 0x318   : > { %5805 = vmatpush1.bf16.msra.mxu0 %v7933_v15  ;;  %v7999_v26 = vld [vmem:[#allocation7 + $0x548] ss:$16 sps:$4 sm:$0xff]   ;;  %v8007_v27 = vld [vmem:[#allocation7 + $0x52c] ss:$16 sps:$4 sm:$0xff]  }
 0x319   : > { %v3958_v31 = vadd.f32 %v3957_v2, %v3915_v1  ;;  %5806 = vmatprep.subr.bf16.mxu0 %v7941_v29  ;;  %v3974_v36 = vmax.f32 %v3956_v0, 0.0  ;;  %v7996_v15 = vld [vmem:[#allocation7 + $0x3c8] ss:$16 sps:$4 sm:$0xff]   ;;  %v8004_v55 = vld [vmem:[#allocation7 + $0x3ac] ss:$16 sps:$4 sm:$0xff]  }
 0x31a   : > { %v8005_v29 = vld [vmem:[#allocation7 + $0x528] ss:$16 sps:$4 sm:$0xff]   ;;  %v8013_v32 = vld [vmem:[#allocation7 + $0x50c] ss:$16 sps:$4 sm:$0xff]  }
 0x31b   : > { %v3975_v28 = vmax.f32 %v3958_v31, 0.0  ;;  %v8834_v46 = vpack.c.bf16 %v3974_v36, %v3966_v38  ;;  %v8002_v60 = vld [vmem:[#allocation7 + $0x3a8] ss:$16 sps:$4 sm:$0xff]   ;;  %v8010_v0 = vld [vmem:[#allocation7 + $0x38c] ss:$16 sps:$4 sm:$0xff]  }
 0x31c   : > { %5807 = vmatpush1.bf16.msra.mxu0 %v7939_v44  ;;  %v8011_v1 = vld [vmem:[#allocation7 + $0x508] ss:$16 sps:$4 sm:$0xff]   ;;  %v8016_v44 = vld [vmem:[#allocation7 + $0x36c] ss:$16 sps:$4 sm:$0xff]  }
 0x31d   : > { %v8832_v5 = vpack.c.bf16 %v3975_v28, %v3967_v25  ;;  %5808 = vmatprep.subr.bf16.mxu0 %v7947_v41  ;;  %v8008_v43 = vld [vmem:[#allocation7 + $0x388] ss:$16 sps:$4 sm:$0xff]   ;;  %v8074_v31 = vld [vmem:[#allocation10 + $0x70] ss:$8 sps:$4 sm:$0xff]   ;;  %v8077_v28 = vld [vmem:[#allocation10 + $0x60] ss:$8 sps:$4 sm:$0xff]  }
 0x31e   : > { %v8076_v2 = vld [vmem:[#allocation10 + $0x74] ss:$8 sps:$4 sm:$0xff]   ;;  %v8079_v36 = vld [vmem:[#allocation10 + $0x64] ss:$8 sps:$4 sm:$0xff]   ;;  %v8019_v25 = vld [vmem:[#allocation7 + $0x34c] ss:$16 sps:$4 sm:$0xff]  }
 0x31f   : > { %5703 = vmatprep.mubr.bf16.mxu1 %v8832_v5  ;;  %v8014_v41 = vld [vmem:[#allocation7 + $0x368] ss:$16 sps:$4 sm:$0xff]  }
 0x320   : > { %5704 = vmatmul.mubr.bf16.vlgmr.msra.gmra.mxu1 %v8834_v46  ;;  %5809 = vmatpush1.bf16.msra.mxu0 %v7945_v42  ;;  %v8017_v38 = vld [vmem:[#allocation7 + $0x348] ss:$16 sps:$4 sm:$0xff]  }
 0x321   : > { %5758 = vmatpush1.bf16.msra.mxu1 %v7942_v45  ;;  %5789 = vmatprep.mubr.bf16.mxu1 %v8793_v22  ;;  %v7968_v22 = vld [vmem:[#allocation7 + $0x26c] ss:$16 sps:$4 sm:$0xff]   ;;  %v8082_v42 = vld [vmem:[#allocation10 + $0x54] ss:$8 sps:$4 sm:$0xff]  }
 0x322   : > { %5759 = vmatprep.subr.bf16.mxu1 %v7950_v50  ;;  %5810 = vmatprep.subr.bf16.mxu0 %v7953_v16  ;;  %v8022_v45 = vld [vmem:[#allocation7 + $0x32c] ss:$16 sps:$4 sm:$0xff]   ;;  %v8020_v16 = vld [vmem:[#allocation7 + $0x328] ss:$16 sps:$4 sm:$0xff]  }
 0x323   : > { %v8080_v50 = vld [vmem:[#allocation10 + $0x50] ss:$8 sps:$4 sm:$0xff]  }
 0x324   : > { %5811 = vmatpush1.bf16.msra.mxu0 %v7951_v51  ;;  %v8085_v51 = vld [vmem:[#allocation10 + $0x44] ss:$8 sps:$4 sm:$0xff]  }
 0x325   : > { %5760 = vmatpush1.bf16.msra.mxu1 %v7948_v53  ;;  %5812 = vmatprep.subr.bf16.mxu0 %v7959_v4  ;;  %v8025_v53 = vld [vmem:[#allocation7 + $0x30c] ss:$16 sps:$4 sm:$0xff]  }
 0x326   : > { %5761 = vmatprep.subr.bf16.mxu1 %v7956_v19  ;;  %v8083_v4 = vld [vmem:[#allocation10 + $0x40] ss:$8 sps:$4 sm:$0xff]   ;;  %v8088_v19 = vld [vmem:[#allocation10 + $0x34] ss:$8 sps:$4 sm:$0xff]  }
 0x328   : > { %5813 = vmatpush1.bf16.msra.mxu0 %v7957_v3  ;;  %v8028_v3 = vld [vmem:[#allocation7 + $0x6ec] ss:$16 sps:$4 sm:$0xff]  }
 0x329   : > { %5762 = vmatpush1.bf16.msra.mxu1 %v7954_v61  ;;  %5814 = vmatprep.subr.bf16.mxu0 %v7965_v56  ;;  %v8086_v61 = vld [vmem:[#allocation10 + $0x30] ss:$8 sps:$4 sm:$0xff]   ;;  %v8026_v56 = vld [vmem:[#allocation7 + $0x6e8] ss:$16 sps:$4 sm:$0xff]  }
 0x32a   : > { %5763 = vmatprep.subr.bf16.mxu1 %v7962_v37  ;;  %v8031_v37 = vld [vmem:[#allocation7 + $0x6cc] ss:$16 sps:$4 sm:$0xff]  }
 0x32c   : > { %5815 = vmatpush1.bf16.msra.mxu0 %v7963_v52  ;;  %v8091_v52 = vld [vmem:[#allocation10 + $0x24] ss:$8 sps:$4 sm:$0xff]  }
 0x32d   : > { %5764 = vmatpush1.bf16.msra.mxu1 %v7960_v59  ;;  %5816 = vmatprep.subr.bf16.mxu0 %v7971_v62  ;;  %v8089_v59 = vld [vmem:[#allocation10 + $0x20] ss:$8 sps:$4 sm:$0xff]   ;;  %v8029_v62 = vld [vmem:[#allocation7 + $0x6c8] ss:$16 sps:$4 sm:$0xff]  }
 0x32e   : > { %5765 = vmatprep.subr.bf16.mxu1 %v7968_v22  ;;  %v8094_v22 = vld [vmem:[#allocation10 + $0x14] ss:$8 sps:$4 sm:$0xff]  }
 0x330   : > { %5817 = vmatpush2.bf16.msra.mxu0 %v7969_v63  ;;  %v8034_v63 = vld [vmem:[#allocation7 + $0x6ac] ss:$16 sps:$4 sm:$0xff]  }
 0x331   : > { %5766 = vmatpush1.bf16.msra.mxu1 %v7966_v49  ;;  %5818 = vmatprep.subr.bf16.mxu0 %v7977_v6  ;;  %v8092_v49 = vld [vmem:[#allocation10 + $0x10] ss:$8 sps:$4 sm:$0xff]   ;;  %v8032_v6 = vld [vmem:[#allocation7 + $0x6a8] ss:$16 sps:$4 sm:$0xff]  }
 0x332   : > { %5767 = vmatprep.subr.bf16.mxu1 %v7974_v33  ;;  %v8097_v33 = vld [vmem:[#allocation10 + $0x4] ss:$8 sps:$4 sm:$0xff]  }
 0x334   : > { %5819 = vmatpush2.bf16.msra.mxu0 %v7975_v7  ;;  %v8037_v7 = vld [vmem:[#allocation7 + $0x68c] ss:$16 sps:$4 sm:$0xff]  }
 0x335   : > { %5768 = vmatpush1.bf16.msra.mxu1 %v7972_v34  ;;  %5820 = vmatprep.subr.bf16.mxu0 %v7983_v10  ;;  %v8035_v34 = vld [vmem:[#allocation7 + $0x688] ss:$16 sps:$4 sm:$0xff]  }
 0x336   : > { %5769 = vmatprep.subr.bf16.mxu1 %v7980_v11  ;;  %v8100_v10 = vld [vmem:[#allocation10 + $0xf4] ss:$8 sps:$4 sm:$0xff]   ;;  %v8098_v11 = vld [vmem:[#allocation10 + $0xf0] ss:$8 sps:$4 sm:$0xff]  }
 0x338   : > { %5821 = vmatpush2.bf16.msra.mxu0 %v7981_v9  ;;  %v8038_v9 = vld [vmem:[#allocation7 + $0x668] ss:$16 sps:$4 sm:$0xff]  }
 0x339   : > { %5770 = vmatpush1.bf16.msra.mxu1 %v7978_v58  ;;  %5822 = vmatprep.subr.bf16.mxu0 %v7989_v12  ;;  %v8103_v58 = vld [vmem:[#allocation10 + $0xe4] ss:$8 sps:$4 sm:$0xff]   ;;  %v8043_v12 = vld [vmem:[#allocation7 + $0x64c] ss:$16 sps:$4 sm:$0xff]  }
 0x33a   : > { %5771 = vmatprep.subr.bf16.mxu1 %v7986_v18  ;;  %v8101_v18 = vld [vmem:[#allocation10 + $0xe0] ss:$8 sps:$4 sm:$0xff]  }
 0x33c   : > { %5823 = vmatpush2.bf16.msra.mxu0 %v7987_v21  ;;  %v8041_v21 = vld [vmem:[#allocation7 + $0x648] ss:$16 sps:$4 sm:$0xff]  }
 0x33d   : > { %5772 = vmatpush1.bf16.msra.mxu1 %v7984_v57  ;;  %5824 = vmatprep.subr.bf16.mxu0 %v7995_v14  ;;  %v8106_v57 = vld [vmem:[#allocation10 + $0xd4] ss:$8 sps:$4 sm:$0xff]   ;;  %v8046_v14 = vld [vmem:[#allocation7 + $0x62c] ss:$16 sps:$4 sm:$0xff]  }
 0x33e   : > { %5773 = vmatprep.subr.bf16.mxu1 %v7992_v17  ;;  %v8104_v17 = vld [vmem:[#allocation10 + $0xd0] ss:$8 sps:$4 sm:$0xff]  }
 0x340   : > { %5825 = vmatpush2.bf16.msra.mxu0 %v7993_v35  ;;  %v8044_v35 = vld [vmem:[#allocation7 + $0x628] ss:$16 sps:$4 sm:$0xff]  }
 0x341   : > { %5774 = vmatpush2.bf16.msra.mxu1 %v7990_v23  ;;  %5826 = vmatprep.subr.bf16.mxu0 %v8001_v24  ;;  %v8109_v23 = vld [vmem:[#allocation10 + $0xc4] ss:$8 sps:$4 sm:$0xff]   ;;  %v8049_v24 = vld [vmem:[#allocation7 + $0x60c] ss:$16 sps:$4 sm:$0xff]  }
 0x342   : > { %5775 = vmatprep.subr.bf16.mxu1 %v7998_v48  ;;  %v8107_v48 = vld [vmem:[#allocation10 + $0xc0] ss:$8 sps:$4 sm:$0xff]  }
 0x344   : > { %5827 = vmatpush2.bf16.msra.mxu0 %v7999_v26  ;;  %v8047_v26 = vld [vmem:[#allocation7 + $0x608] ss:$16 sps:$4 sm:$0xff]  }
 0x345   : > { %5776 = vmatpush2.bf16.msra.mxu1 %v7996_v15  ;;  %5828 = vmatprep.subr.bf16.mxu0 %v8007_v27  ;;  %v8112_v15 = vld [vmem:[#allocation10 + $0xb4] ss:$8 sps:$4 sm:$0xff]   ;;  %v8052_v27 = vld [vmem:[#allocation7 + $0x7ec] ss:$16 sps:$4 sm:$0xff]  }
 0x346   : > { %5777 = vmatprep.subr.bf16.mxu1 %v8004_v55  ;;  %v8110_v55 = vld [vmem:[#allocation10 + $0xb0] ss:$8 sps:$4 sm:$0xff]  }
 0x348   : > { %5829 = vmatpush2.bf16.msra.mxu0 %v8005_v29  ;;  %v8050_v29 = vld [vmem:[#allocation7 + $0x7e8] ss:$16 sps:$4 sm:$0xff]  }
 0x349   : > { %5778 = vmatpush2.bf16.msra.mxu1 %v8002_v60  ;;  %5830 = vmatprep.subr.bf16.mxu0 %v8013_v32  ;;  %v8115_v60 = vld [vmem:[#allocation10 + $0xa4] ss:$8 sps:$4 sm:$0xff]   ;;  %v8055_v32 = vld [vmem:[#allocation7 + $0x7cc] ss:$16 sps:$4 sm:$0xff]  }
 0x34a   : > { %5779 = vmatprep.subr.bf16.mxu1 %v8010_v0  ;;  %v8113_v0 = vld [vmem:[#allocation10 + $0xa0] ss:$8 sps:$4 sm:$0xff]  }
 0x34c   : > { %5831 = vmatpush2.bf16.msra.mxu0 %v8011_v1  ;;  %v8053_v1 = vld [vmem:[#allocation7 + $0x7c8] ss:$16 sps:$4 sm:$0xff]  }
 0x34d   : > { %5780 = vmatpush2.bf16.msra.mxu1 %v8008_v43  ;;  %6294 = vmatprep.subr.bf16.mxu0 %v8076_v2  ;;  %v8118_v43 = vld [vmem:[#allocation10 + $0x94] ss:$8 sps:$4 sm:$0xff]   ;;  %v8058_v2 = vld [vmem:[#allocation7 + $0x7ac] ss:$16 sps:$4 sm:$0xff]  }
 0x34e   : > { %5781 = vmatprep.subr.bf16.mxu1 %v8016_v44  ;;  %v8116_v44 = vld [vmem:[#allocation10 + $0x90] ss:$8 sps:$4 sm:$0xff]  }
 0x34f   : > { %5833 = vmatmul.mubr.bf16.vlgmr.msra.gmra.mxu0 %v8822_v13  ;;  %v8023_v13 = vld [vmem:[#allocation7 + $0x308] ss:$16 sps:$4 sm:$0xff]  }
 0x350   : > { %6295 = vmatpush1.bf16.msra.mxu0 %v8074_v31  ;;  %v8056_v31 = vld [vmem:[#allocation7 + $0x7a8] ss:$16 sps:$4 sm:$0xff]  }
 0x351   : > { %5782 = vmatpush2.bf16.msra.mxu1 %v8014_v41  ;;  %6296 = vmatprep.subr.bf16.mxu0 %v8079_v36  ;;  %v8121_v41 = vld [vmem:[#allocation10 + $0x84] ss:$8 sps:$4 sm:$0xff]   ;;  %v8061_v36 = vld [vmem:[#allocation7 + $0x78c] ss:$16 sps:$4 sm:$0xff]  }
 0x352   : > { %5783 = vmatprep.subr.bf16.mxu1 %v8019_v25  ;;  %v8119_v25 = vld [vmem:[#allocation10 + $0x80] ss:$8 sps:$4 sm:$0xff]  }
 0x354   : > { %6297 = vmatpush1.bf16.msra.mxu0 %v8077_v28  ;;  %v8059_v28 = vld [vmem:[#allocation7 + $0x788] ss:$16 sps:$4 sm:$0xff]  }
 0x355   : > { %5784 = vmatpush2.bf16.msra.mxu1 %v8017_v38  ;;  %6298 = vmatprep.subr.bf16.mxu0 %v8082_v42  ;;  %v8064_v38 = vld [vmem:[#allocation7 + $0x76c] ss:$16 sps:$4 sm:$0xff]   ;;  %v8062_v42 = vld [vmem:[#allocation7 + $0x768] ss:$16 sps:$4 sm:$0xff]  }
 0x356   : > { %5785 = vmatprep.subr.bf16.mxu1 %v8022_v45  ;;  %v8067_v45 = vld [vmem:[#allocation7 + $0x74c] ss:$16 sps:$4 sm:$0xff]  }
 0x358   : > { %6299 = vmatpush1.bf16.msra.mxu0 %v8080_v50  ;;  %v8065_v50 = vld [vmem:[#allocation7 + $0x748] ss:$16 sps:$4 sm:$0xff]  }
 0x359   : > { %5786 = vmatpush2.bf16.msra.mxu1 %v8020_v16  ;;  %6300 = vmatprep.subr.bf16.mxu0 %v8085_v51  ;;  %v8070_v16 = vld [vmem:[#allocation7 + $0x72c] ss:$16 sps:$4 sm:$0xff]   ;;  %v8068_v51 = vld [vmem:[#allocation7 + $0x728] ss:$16 sps:$4 sm:$0xff]  }
 0x35a   : > { %5787 = vmatprep.subr.bf16.mxu1 %v8025_v53  ;;  %v8073_v53 = vld [vmem:[#allocation7 + $0x70c] ss:$16 sps:$4 sm:$0xff]  }
 0x35c   : > { %6301 = vmatpush1.bf16.msra.mxu0 %v8083_v4  ;;  %v8071_v4 = vld [vmem:[#allocation7 + $0x708] ss:$16 sps:$4 sm:$0xff]  }
 0x35d   : > { %5788 = vmatpush2.bf16.msra.mxu1 %v8023_v13  ;;  %6302 = vmatprep.subr.bf16.mxu0 %v8088_v19  ;;  %v8122_v13 = vld [vmem:[#allocation10 + $0x170] ss:$8 sps:$4 sm:$0xff]   ;;  %v8124_v19 = vld [vmem:[#allocation10 + $0x174] ss:$8 sps:$4 sm:$0xff]  }
 0x35e   : > { %5843 = vmatprep.subr.bf16.mxu1 %v8028_v3  ;;  %v8127_v3 = vld [vmem:[#allocation10 + $0x164] ss:$8 sps:$4 sm:$0xff]  }
 0x360   : > { %5790 = vmatmul.mubr.bf16.vlgmr.msra.gmra.mxu1 %v8771_v47  ;;  %6303 = vmatpush1.bf16.msra.mxu0 %v8086_v61  ;;  %v8095_v47 = vld [vmem:[#allocation10] ss:$8 sps:$4 sm:$0xff]  }
 0x361   : > { %5844 = vmatpush1.bf16.msra.mxu1 %v8026_v56  ;;  %5875 = vmatprep.mubr.bf16.mxu1 %v8832_v5  ;;  %v8040_v5 = vld [vmem:[#allocation7 + $0x66c] ss:$16 sps:$4 sm:$0xff]   ;;  %v8130_v56 = vld [vmem:[#allocation10 + $0x154] ss:$8 sps:$4 sm:$0xff]  }
 0x362   : > { %5845 = vmatprep.subr.bf16.mxu1 %v8031_v37  ;;  %6304 = vmatprep.subr.bf16.mxu0 %v8091_v52  ;;  %v8125_v61 = vld [vmem:[#allocation10 + $0x160] ss:$8 sps:$4 sm:$0xff]   ;;  %v8128_v37 = vld [vmem:[#allocation10 + $0x150] ss:$8 sps:$4 sm:$0xff]   ;;  %v8133_v52 = vld [vmem:[#allocation10 + $0x144] ss:$8 sps:$4 sm:$0xff]  }
 0x364   : > { %6305 = vmatpush1.bf16.msra.mxu0 %v8089_v59  ;;  %v8131_v59 = vld [vmem:[#allocation10 + $0x140] ss:$8 sps:$4 sm:$0xff]  }
 0x365   : > { %5846 = vmatpush1.bf16.msra.mxu1 %v8029_v62  ;;  %6306 = vmatprep.subr.bf16.mxu0 %v8094_v22  ;;  %v8136_v62 = vld [vmem:[#allocation10 + $0x134] ss:$8 sps:$4 sm:$0xff]   ;;  %v8134_v22 = vld [vmem:[#allocation10 + $0x130] ss:$8 sps:$4 sm:$0xff]  }
 0x366   : > { %5847 = vmatprep.subr.bf16.mxu1 %v8034_v63  ;;  %v8137_v63 = vld [vmem:[#allocation10 + $0x120] ss:$8 sps:$4 sm:$0xff]  }
 0x368   : > { %6307 = vmatpush1.bf16.msra.mxu0 %v8092_v49  ;;  %v8142_v49 = vld [vmem:[#allocation10 + $0x114] ss:$8 sps:$4 sm:$0xff]  }
 0x369   : > { %5848 = vmatpush1.bf16.msra.mxu1 %v8032_v6  ;;  %6308 = vmatprep.subr.bf16.mxu0 %v8097_v33  ;;  %v8140_v6 = vld [vmem:[#allocation10 + $0x110] ss:$8 sps:$4 sm:$0xff]   ;;  %v8145_v33 = vld [vmem:[#allocation10 + $0x104] ss:$8 sps:$4 sm:$0xff]  }
 0x36a   : > { %5849 = vmatprep.subr.bf16.mxu1 %v8037_v7  ;;  %v8143_v7 = vld [vmem:[#allocation10 + $0x100] ss:$8 sps:$4 sm:$0xff]  }
 0x36c   : > { %6309 = vmatpush1.bf16.msra.mxu0 %v8095_v47  ;;  %v8148_v47 = vld [vmem:[#allocation10 + $0x1f4] ss:$8 sps:$4 sm:$0xff]  }
 0x36d   : > { %5850 = vmatpush1.bf16.msra.mxu1 %v8035_v34  ;;  %6310 = vmatprep.subr.bf16.mxu0 %v8100_v10  ;;  %v8146_v34 = vld [vmem:[#allocation10 + $0x1f0] ss:$8 sps:$4 sm:$0xff]   ;;  %v8151_v10 = vld [vmem:[#allocation10 + $0x1e4] ss:$8 sps:$4 sm:$0xff]  }
 0x36e   : > { %5851 = vmatprep.subr.bf16.mxu1 %v8040_v5  ;;  %v5576_v5 = vpop.f32.mrf.mxu0 }
 0x370   : > { %6311 = vmatpush2.bf16.msra.mxu0 %v8098_v11  ;;  %v8149_v11 = vld [vmem:[#allocation10 + $0x1e0] ss:$8 sps:$4 sm:$0xff]  }
 0x371   : > { %5852 = vmatpush1.bf16.msra.mxu1 %v8038_v9  ;;  %6312 = vmatprep.subr.bf16.mxu0 %v8103_v58  ;;  %v8154_v9 = vld [vmem:[#allocation10 + $0x1d4] ss:$8 sps:$4 sm:$0xff]   ;;  %v5578_v58 = vpop.f32.mrf.mxu0 }
 0x372   : > { %5853 = vmatprep.subr.bf16.mxu1 %v8043_v12  ;;  %v8152_v12 = vld [vmem:[#allocation10 + $0x1d0] ss:$8 sps:$4 sm:$0xff]  }
 0x374   : > { %6313 = vmatpush2.bf16.msra.mxu0 %v8101_v18  ;;  %v8157_v18 = vld [vmem:[#allocation10 + $0x1c4] ss:$8 sps:$4 sm:$0xff]  }
 0x375   : > { %5854 = vmatpush1.bf16.msra.mxu1 %v8041_v21  ;;  %6314 = vmatprep.subr.bf16.mxu0 %v8106_v57  ;;  %v5580_v21 = vpop.f32.mrf.mxu0  ;;  %v5619_v57 = vpop.f32.mrf.mxu1 }
 0x376   : > { %5855 = vmatprep.subr.bf16.mxu1 %v8046_v14  ;;  %v8155_v14 = vld [vmem:[#allocation10 + $0x1c0] ss:$8 sps:$4 sm:$0xff]  }
 0x378   : > { %6315 = vmatpush2.bf16.msra.mxu0 %v8104_v17  ;;  %v8160_v17 = vld [vmem:[#allocation10 + $0x1b4] ss:$8 sps:$4 sm:$0xff]  }
 0x379   : > { %5856 = vmatpush1.bf16.msra.mxu1 %v8044_v35  ;;  %6316 = vmatprep.subr.bf16.mxu0 %v8109_v23  ;;  %v5582_v35 = vpop.f32.mrf.mxu0  ;;  %v5621_v23 = vpop.f32.mrf.mxu1 }
 0x37a   : > { %5857 = vmatprep.subr.bf16.mxu1 %v8049_v24 }
 0x37c   : > { %6317 = vmatpush2.bf16.msra.mxu0 %v8107_v48  ;;  %v8158_v48 = vld [vmem:[#allocation10 + $0x1b0] ss:$8 sps:$4 sm:$0xff]  }
 0x37d   : > { %5858 = vmatpush1.bf16.msra.mxu1 %v8047_v26  ;;  %6318 = vmatprep.subr.bf16.mxu0 %v8112_v15  ;;  %v8843_v26 = vld [vmem:[#allocation8] sm:$0xf] }
 0x37e   : > { %5859 = vmatprep.subr.bf16.mxu1 %v8052_v27  ;;  %v4249_v15 = vrot.slane %v8843_v26, %v8764_v40  ;;  %v4245_v27 = vrot.slane %v8843_v26, %v8693_v39 }
 0x380   : > { %6319 = vmatpush2.bf16.msra.mxu0 %v8110_v55  ;;  %v5623_v55 = vpop.f32.mrf.mxu1 }
 0x381   : > { %5860 = vmatpush2.bf16.msra.mxu1 %v8050_v29  ;;  %6320 = vmatprep.subr.bf16.mxu0 %v8115_v60  ;;  %v5579_v60 = vadd.f32 %v5578_v58, %v4249_v15  ;;  %v8177_v58 = vld [vmem:[%s8924_s7 + $0x20] sm:$0xff]  }
 0x382   : > { %5861 = vmatprep.subr.bf16.mxu1 %v8055_v32  ;;  %v5581_v32 = vadd.f32 %v5580_v21, %v4245_v27 }
 0x384   : > { %6321 = vmatpush2.bf16.msra.mxu0 %v8113_v0  ;;  %v5577_v0 = vadd.f32 %v5576_v5, %v4245_v27  ;;  %v8174_v5 = vld [vmem:[%s8924_s7 + $0x68] sm:$0xff]  }
 0x385   : > { %5862 = vmatpush2.bf16.msra.mxu1 %v8053_v1  ;;  %6322 = vmatprep.subr.bf16.mxu0 %v8118_v43  ;;  %v5625_v1 = vpop.f32.mrf.mxu1 }
 0x386   : > { %5863 = vmatprep.subr.bf16.mxu1 %v8058_v2  ;;  %v5583_v2 = vadd.f32 %v5582_v35, %v4249_v15  ;;  %v4253_v15 = vrot.slane %v8843_v26, %v966_v8 }
 0x388   : > { %6323 = vmatpush2.bf16.msra.mxu0 %v8116_v44 }
 0x389   : > { %5864 = vmatpush2.bf16.msra.mxu1 %v8056_v31  ;;  %6324 = vmatprep.subr.bf16.mxu0 %v8121_v41  ;;  %v8163_v31 = vld [vmem:[#allocation10 + $0x1a4] ss:$8 sps:$4 sm:$0xff]   ;;  %v5622_v41 = vadd.f32 %v5621_v23, %v5579_v60 }
 0x38a   : > { %5865 = vmatprep.subr.bf16.mxu1 %v8061_v36  ;;  %v5624_v36 = vadd.f32 %v5623_v55, %v5581_v32 }
 0x38c   : > { %6325 = vmatpush2.bf16.msra.mxu0 %v8119_v25  ;;  %v8161_v25 = vld [vmem:[#allocation10 + $0x1a0] ss:$8 sps:$4 sm:$0xff]  }
 0x38d   : > { %5866 = vmatpush2.bf16.msra.mxu1 %v8059_v28  ;;  %v5620_v28 = vadd.f32 %v5619_v57, %v5577_v0 }
 0x38e   : > { %5867 = vmatprep.subr.bf16.mxu1 %v8064_v38 }
 0x38f   : > { %v5662_v24 = vpop.f32.mrf.mxu0 }
 0x391   : > { %5868 = vmatpush2.bf16.msra.mxu1 %v8062_v42  ;;  %v5664_v29 = vpop.f32.mrf.mxu0 }
 0x392   : > { %5869 = vmatprep.subr.bf16.mxu1 %v8067_v45  ;;  %v5626_v45 = vadd.f32 %v5625_v1, %v5583_v2 }
 0x393   : > { %v5666_v43 = vpop.f32.mrf.mxu0 }
 0x395   : > { %5870 = vmatpush2.bf16.msra.mxu1 %v8065_v50  ;;  %v5668_v38 = vpop.f32.mrf.mxu0  ;;  %v5665_v50 = vadd.f32 %v5664_v29, %v5622_v41 }
 0x396   : > { %5871 = vmatprep.subr.bf16.mxu1 %v8070_v16  ;;  %v5667_v16 = vadd.f32 %v5666_v43, %v5624_v36 }
 0x399   : > { %5872 = vmatpush2.bf16.msra.mxu1 %v8068_v51  ;;  %v5663_v51 = vadd.f32 %v5662_v24, %v5620_v28 }
 0x39a   : > { %5873 = vmatprep.subr.bf16.mxu1 %v8073_v53 }
 0x39d   : > { %5874 = vmatpush2.bf16.msra.mxu1 %v8071_v4  ;;  %v8166_v4 = vld [vmem:[#allocation10 + $0x194] ss:$8 sps:$4 sm:$0xff]  }
 0x39e   : > { %6337 = vmatprep.subr.bf16.mxu1 %v8124_v19 }
 0x3a0   : > { %5876 = vmatmul.mubr.bf16.vlgmr.msra.gmra.mxu1 %v8834_v46  ;;  %v8139_v46 = vld [vmem:[#allocation10 + $0x124] ss:$8 sps:$4 sm:$0xff]  }
 0x3a1   : > { %6338 = vmatpush1.bf16.msra.mxu1 %v8122_v13  ;;  %v5669_v13 = vadd.f32 %v5668_v38, %v5626_v45 }
 0x3a2   : > { %6339 = vmatprep.subr.bf16.mxu1 %v8127_v3 }
 0x3a5   : > { %6340 = vmatpush1.bf16.msra.mxu1 %v8125_v61  ;;  %v8164_v61 = vld [vmem:[#allocation10 + $0x190] ss:$8 sps:$4 sm:$0xff]  }
 0x3a6   : > { %6341 = vmatprep.subr.bf16.mxu1 %v8130_v56 }
 0x3a9   : > { %6342 = vmatpush1.bf16.msra.mxu1 %v8128_v37 }
 0x3aa   : > { %6343 = vmatprep.subr.bf16.mxu1 %v8133_v52 }
 0x3ad   : > { %6344 = vmatpush1.bf16.msra.mxu1 %v8131_v59 }
 0x3ae   : > { %6345 = vmatprep.subr.bf16.mxu1 %v8136_v62  ;;  %v8169_v62 = vld [vmem:[#allocation10 + $0x184] ss:$8 sps:$4 sm:$0xff]  }
 0x3b1   : > { %6346 = vmatpush1.bf16.msra.mxu1 %v8134_v22 }
 0x3b2   : > { %6347 = vmatprep.subr.bf16.mxu1 %v8139_v46 }
 0x3b5   : > { %6348 = vmatpush1.bf16.msra.mxu1 %v8137_v63  ;;  %v8167_v63 = vld [vmem:[#allocation10 + $0x180] ss:$8 sps:$4 sm:$0xff]  }
 0x3b6   : > { %6349 = vmatprep.subr.bf16.mxu1 %v8142_v49 }
 0x3b9   : > { %6350 = vmatpush1.bf16.msra.mxu1 %v8140_v6 }
 0x3ba   : > { %6351 = vmatprep.subr.bf16.mxu1 %v8145_v33 }
 0x3bd   : > { %6352 = vmatpush1.bf16.msra.mxu1 %v8143_v7  ;;  %v8170_v7 = vld [vmem:[%s8924_s7 + $0x78] sm:$0xff]  }
 0x3be   : > { %6353 = vmatprep.subr.bf16.mxu1 %v8148_v47  ;;  %v8171_v47 = vld [vmem:[%s8924_s7 + $0x38] sm:$0xff]   ;;  %7559 = vmatprep.subr.bf16.mxu0 %v8170_v7 }
 0x3c1   : > { %6354 = vmatpush2.bf16.msra.mxu1 %v8146_v34  ;;  %v8172_v34 = vld [vmem:[%s8924_s7 + $0x70] sm:$0xff]  }
 0x3c2   : > { %6355 = vmatprep.subr.bf16.mxu1 %v8151_v10  ;;  %v8173_v10 = vld [vmem:[%s8924_s7 + $0x30] sm:$0xff]  }
 0x3c5   : > { %6356 = vmatpush2.bf16.msra.mxu1 %v8149_v11  ;;  %v8175_v11 = vld [vmem:[%s8924_s7 + $0x28] sm:$0xff]  }
 0x3c6   : > { %6357 = vmatprep.subr.bf16.mxu1 %v8154_v9  ;;  %v8176_v9 = vld [vmem:[%s8924_s7 + $0x60] sm:$0xff]  }
 0x3c9   : > { %6358 = vmatpush2.bf16.msra.mxu1 %v8152_v12  ;;  %v8178_v12 = vld [vmem:[%s8924_s7 + $0x58] sm:$0xff]  }
 0x3ca   : > { %6359 = vmatprep.subr.bf16.mxu1 %v8157_v18  ;;  %v8179_v18 = vld [vmem:[%s8924_s7 + $0x18] sm:$0xff]  }
 0x3cd   : > { %6360 = vmatpush2.bf16.msra.mxu1 %v8155_v14 }
 0x3ce   : > { %6361 = vmatprep.subr.bf16.mxu1 %v8160_v17 }
 0x3cf   : > { %v5748_v21 = vpop.f32.mrf.mxu0 }
 0x3d0   : > { %v5749_v32 = vadd.f32 %v5748_v21, %v4253_v15 }
 0x3d1   : > { %6362 = vmatpush2.bf16.msra.mxu1 %v8158_v48  ;;  %v5750_v57 = vpop.f32.mrf.mxu0  ;;  %v4257_v48 = vrot.slane %v8843_v26, %v970_v54 }
 0x3d2   : > { %6363 = vmatprep.subr.bf16.mxu1 %v8163_v31 }
 0x3d3   : > { %v5752_v14 = vpop.f32.mrf.mxu0  ;;  %v5751_v29 = vadd.f32 %v5750_v57, %v4257_v48 }
 0x3d4   : > { %v5753_v60 = vadd.f32 %v5752_v14, %v4253_v15 }
 0x3d5   : > { %6364 = vmatpush2.bf16.msra.mxu1 %v8161_v25  ;;  %v5754_v35 = vpop.f32.mrf.mxu0 }
 0x3d6   : > { %6365 = vmatprep.subr.bf16.mxu1 %v8166_v4  ;;  %v5755_v1 = vadd.f32 %v5754_v35, %v4257_v48 }
 0x3d9   : > { %6366 = vmatpush2.bf16.msra.mxu1 %v8164_v61 }
 0x3da   : > { %6367 = vmatprep.subr.bf16.mxu1 %v8169_v62  ;;  %v8183_v62 = vld [vmem:[%s8924_s7 + $0x8] sm:$0xff]  }
 0x3dd   : > { %6368 = vmatpush2.bf16.msra.mxu1 %v8167_v63 }
 0x3e0   : > { %v5705_v44 = vpop.f32.mrf.mxu1 }
 0x3e1   : > { %v5706_v56 = vadd.f32 %v5705_v44, %v5663_v51 }
 0x3e2   : > { %v5707_v42 = vpop.f32.mrf.mxu1 }
 0x3e3   : > { %v5708_v19 = vadd.f32 %v5707_v42, %v5665_v50  ;;  %v5886_v49 = vmax.f32 %v5706_v56, 0.0 }
 0x3e4   : > { %v5709_v53 = vpop.f32.mrf.mxu1 }
 0x3e5   : > { %v5710_v3 = vadd.f32 %v5709_v53, %v5667_v16  ;;  %v5887_v22 = vmax.f32 %v5708_v19, 0.0 }
 0x3e6   : > { %v5711_v37 = vpop.f32.mrf.mxu1 }
 0x3e7   : > { %v5712_v52 = vadd.f32 %v5711_v37, %v5669_v13  ;;  %v5890_v59 = vmax.f32 %v5710_v3, 0.0  ;;  %v8180_v37 = vld [vmem:[%s8924_s7 + $0x50] sm:$0xff]  }
 0x3e9   : > { %v5891_v46 = vmax.f32 %v5712_v52, 0.0  ;;  %v5894_v33 = vpack.c.bf16 %v5890_v59, %v5886_v49  ;;  %v8181_v52 = vld [vmem:[%s8924_s7 + $0x10] sm:$0xff]   ;;  %v8182_v59 = vld [vmem:[%s8924_s7 + $0x48] sm:$0xff]  }
 0x3eb   : > { %v5895_v6 = vpack.c.bf16 %v5891_v46, %v5887_v22  ;;  %v8184_v22 = vld [vmem:[%s8924_s7 + $0x40] sm:$0xff]  }
 0x3ec   : > { %v8185_v46 = vld [vmem:[%s8924_s7] sm:$0xff]  }
 0x3ed   : > { %6326 = vmatprep.mubr.bf16.mxu0 %v5895_v6  ;;  %v5962_v6 = vld [vmem:[#allocation11] sm:$0x3] }
 0x3ee   : > { %6327 = vmatmul.mubr.bf16.vlgmr.msra.gmra.mxu0 %v5894_v33  ;;  %v5971_v7 = vrot.slane %v5962_v6, %v8764_v40 }
 0x3ef   : > { %7560 = vmatpush3.bf16.msra.mxu0 %v8171_v47  ;;  %v5967_v47 = vrot.slane %v5962_v6, %v8693_v39 }
 0x3f0   : > { %7561 = vmatprep.subr.bf16.mxu0 %v8172_v34 }
 0x3f3   : > { %7562 = vmatpush3.bf16.msra.mxu0 %v8173_v10 }
 0x3f4   : > { %7563 = vmatprep.subr.bf16.mxu0 %v8174_v5 }
 0x3f7   : > { %7564 = vmatpush3.bf16.msra.mxu0 %v8175_v11 }
 0x3f8   : > { %7565 = vmatprep.subr.bf16.mxu0 %v8176_v9 }
 0x3fb   : > { %7566 = vmatpush3.bf16.msra.mxu0 %v8177_v58 }
 0x3fc   : > { %7567 = vmatprep.subr.bf16.mxu0 %v8178_v12 }
 0x3ff   : > { %7568 = vmatpush3.bf16.msra.mxu0 %v8179_v18 }
 0x400   : > { %7569 = vmatprep.subr.bf16.mxu0 %v8180_v37 }
 0x403   : > { %7570 = vmatpush3.bf16.msra.mxu0 %v8181_v52 }
 0x404   : > { %7571 = vmatprep.subr.bf16.mxu0 %v8182_v59 }
 0x407   : > { %7572 = vmatpush3.bf16.msra.mxu0 %v8183_v62 }
 0x408   : > { %7573 = vmatprep.subr.bf16.mxu0 %v8184_v22 }
 0x40b   : > { %7574 = vmatpush3.bf16.msra.mxu0 %v8185_v46 }
 0x40f   : > { %v5834_v24 = vpop.f32.mrf.mxu0 }
 0x411   : > { %v5836_v55 = vpop.f32.mrf.mxu0 }
 0x413   : > { %v5838_v44 = vpop.f32.mrf.mxu0 }
 0x415   : > { %v5840_v38 = vpop.f32.mrf.mxu0 }
 0x420   : > { %v5791_v17 = vpop.f32.mrf.mxu1 }
 0x421   : > { %v5792_v31 = vadd.f32 %v5791_v17, %v5749_v32 }
 0x422   : > { %v5793_v23 = vpop.f32.mrf.mxu1 }
 0x423   : > { %v5794_v43 = vadd.f32 %v5793_v23, %v5751_v29  ;;  %v5835_v42 = vadd.f32 %v5834_v24, %v5792_v31 }
 0x424   : > { %v5795_v27 = vpop.f32.mrf.mxu1 }
 0x425   : > { %v5796_v2 = vadd.f32 %v5795_v27, %v5753_v60  ;;  %v5837_v28 = vadd.f32 %v5836_v55, %v5794_v43  ;;  %v6583_v55 = vld [vmem:[#allocation2] sm:$0x1] }
 0x426   : > { %v5797_v0 = vpop.f32.mrf.mxu1  ;;  %6586 = vperm.xlu1 %7678, %v6583_v55  }
 0x427   : > { %v5798_v36 = vadd.f32 %v5797_v0, %v5755_v1  ;;  %v5839_v54 = vadd.f32 %v5838_v44, %v5796_v2  ;;  %v7539_v0 = vld [vmem:[#allocation13] ss:$0 sm:$0xff] }
 0x429   : > { %v5841_v50 = vadd.f32 %v5840_v38, %v5798_v36 }
 0x460   : > { %v5877_v41 = vpop.f32.mrf.mxu1 }
 0x461   : > { %v5878_v16 = vadd.f32 %v5877_v41, %v5835_v42 }
 0x462   : > { %v5879_v25 = vpop.f32.mrf.mxu1 }
 0x463   : > { %v5880_v8 = vadd.f32 %v5879_v25, %v5837_v28  ;;  %v5888_v3 = vmax.f32 %v5878_v16, 0.0  ;;  %v7556_v28 = vld [vmem:[#allocation14] ss:$0 sm:$0xff] }
 0x464   : > { %v5881_v45 = vpop.f32.mrf.mxu1 }
 0x465   : > { %v5882_v26 = vadd.f32 %v5881_v45, %v5839_v54  ;;  %v5889_v13 = vmax.f32 %v5880_v8, 0.0 }
 0x466   : > { %v5883_v51 = vpop.f32.mrf.mxu1 }
 0x467   : > { %v5884_v53 = vadd.f32 %v5883_v51, %v5841_v50  ;;  %v5892_v4 = vmax.f32 %v5882_v26, 0.0 }
 0x469   : > { %v5893_v19 = vmax.f32 %v5884_v53, 0.0  ;;  %v5896_v56 = vpack.c.bf16 %v5892_v4, %v5888_v3 }
 0x46b   : > { %v5897_v61 = vpack.c.bf16 %v5893_v19, %v5889_v13  ;;  %v6600_v19 = vand.u32 127, %v956_v20 }
 0x46d   : > { %6369 = vmatprep.mubr.bf16.mxu1 %v5897_v61  ;;  %v6605_v3 = vadd.s32 4294967288, %v6600_v19  ;;  %v6603_v61 = vsub.s32 %v6600_v19, %v8690_v30 }
 0x46e   : > { %6370 = vmatmul.mubr.bf16.vlgmr.msra.gmra.mxu1 %v5896_v56 }
 0x46f   : > { %v6608_v56 = vsub.s32 %v6605_v3, %v8690_v30 }
 0x4a1   : > { %v6587_v50 = vpop.permute.xlu1 %6586 }
 0x4a2   : > { %v6592_v16 = vrot.slane %v6587_v50, %v8693_v39 }
 0x4ae   : > { %v6328_v63 = vpop.f32.mrf.mxu0 }
 0x4af   : > { %v6329_v58 = vadd.f32 %v6328_v63, %v5967_v47 }
 0x4b0   : > { %v6330_v49 = vpop.f32.mrf.mxu0 }
 0x4b1   : > { %v6331_v11 = vadd.f32 %v6330_v49, %v5971_v7 }
 0x4b2   : > { %v6332_v33 = vpop.f32.mrf.mxu0 }
 0x4b3   : > { %v6333_v9 = vadd.f32 %v6332_v33, %v5967_v47 }
 0x4b4   : > { %v6334_v10 = vpop.f32.mrf.mxu0 }
 0x4b5   : > { %v6335_v18 = vadd.f32 %v6334_v10, %v5971_v7 }
 0x52e   : > { %v6371_v34 = vpop.f32.mrf.mxu1 }
 0x52f   : > { %v6372_v14 = vadd.f32 %v6371_v34, %v6329_v58 }
 0x530   : > { %v6373_v5 = vpop.f32.mrf.mxu1 }
 0x531   : > { %v6374_v21 = vadd.f32 %v6373_v5, %v6331_v11  ;;  %v6380_v15 = vmax.f32 %v6372_v14, 0.0 }
 0x532   : > { %v6375_v12 = vpop.f32.mrf.mxu1 }
 0x533   : > { %v6376_v57 = vadd.f32 %v6375_v12, %v6333_v9  ;;  %v6381_v24 = vmax.f32 %v6374_v21, 0.0 }
 0x534   : > { %v6377_v17 = vpop.f32.mrf.mxu1 }
 0x535   : > { %v6378_v35 = vadd.f32 %v6377_v17, %v6335_v18  ;;  %v6382_v23 = vmax.f32 %v6376_v57, 0.0 }
 0x537   : > { %v6383_v48 = vmax.f32 %v6378_v35, 0.0  ;;  %v6384_v27 = vpack.c.bf16 %v6382_v23, %v6380_v15 }
 0x539   : > { %v6385_v40 = vpack.c.bf16 %v6383_v48, %v6381_v24 }
 0x53b   : > { %6553 = vmatprep.mubr.bf16.mxu0 %v6385_v40 }
 0x53c   : > { %6554 = vmatmul.mubr.bf16.vlgmr.msra.gmra.mxu0 %v6384_v27 }
 0x5fc   : > { %v7575_v29 = vpop.f32.mrf.mxu0 }
 0x5fe   : > { %v7576_v60 = vpop.f32.mrf.mxu0 }
 0x5ff   : > { %v7577_v32 = vadd.f32 %v7576_v60, %v7575_v29 }
 0x600   : > { %v7578_v1 = vpop.f32.mrf.mxu0 }
 0x601   : > { %v6556_v2 = vadd.f32 %v7577_v32, %v7539_v0 }
 0x602   : > { %v7579_v43 = vpop.f32.mrf.mxu0 }
 0x603   : > { %v7580_v44 = vadd.f32 %v7579_v43, %v7578_v1  ;;  %v6562_v41 = vmax.f32 %v6556_v2, 0.0 }
 0x605   : > { %v6559_v31 = vadd.f32 %v7580_v44, %v7539_v0 }
 0x607   : > { %v6563_v36 = vmax.f32 %v6559_v31, 0.0 }
 0x609   : > { %v6564_v25 = vpack.c.bf16 %v6563_v36, %v6562_v41 }
 0x60b   : > { %v6565_v54 = vunpack.c.l.bf16 %v6564_v25  ;;  %v6566_v38 = vunpack.c.h.bf16 %v6564_v25 }
 0x60d   : > { %v6574_v42 = vmul.f32 %v7556_v28, %v6565_v54  ;;  %v6575_v8 = vmul.f32 %v7556_v28, %v6566_v38 }
 0x60f   : > { %v6577_v45 = vsel %vm6576_vm0, %v6574_v42, 0.0  ;;  %v6580_v26 = vsel %vm6576_vm0, %v6575_v8, 0.0 }
 0x610   : > { %6578 = vadd.xlane.f32.xlu0 %v6577_v45 }
 0x614   : > { %6581 = vadd.xlane.f32.xlu0 %v6580_v26 }
 0x699   : > { %v6579_v51 = vpop.xlane.xlu0 %6578 }
 0x69a   : > { %v6593_v53 = vadd.f32 %v6592_v16, %v6579_v51 }
 0x69c   : > { %8186 = vtanh.f32 %v6593_v53 }
 0x69d   : > { %v6582_v4 = vpop.xlane.xlu0 %6581 }
 0x69e   : > { %v6594_v13 = vadd.f32 %v6592_v16, %v6582_v4 }
 0x6a0   : > { %8188 = vtanh.f32 %v6594_v13 }
 0x6a9   : > { %v8187_v37 = vpop.eup %8186 }
 0x6aa   : > { %v6604_v59 = vrot.slane %v8187_v37, %v6603_v61 }
 0x6ad   : > { %v8189_v52 = vpop.eup %8188 }
 0x6ae   : > { %v6609_v39 = vrot.slane %v8189_v52, %v6608_v56 }
 0x6b0   : > { %v6611_v62 = vsel %vm6610_vm1, %v6609_v39, %v6604_v59 }
 0x6b1   : > { %6614 = vst.msk [vmem:[%s496_s24] sm:$0x1] %vm6613_vm2, %v6611_v62 }
 0x6b2 PF: > { %s28_s19 = sadd.s32 1, %s8435_s19  }
 0x6b3   : > { %p25_p13 = scmp.ge.s32.totalorder %s28_s19, 4  }
 0x6b5   :  { %27 = sbr.rel (!%p25_p13) target bundleno = 8 (0x8), region = 127 }
 0x6ba   :  { %6632 = vsyncpa [#allocation4], 1 }
 0x6bb   :  { %6634 = vsyncpa [#allocation4 + $0x1], 1 }
 0x6bc   :  { %6635 = vsyncpa [#allocation6], 1 }
 0x6bd   :  { %6636 = vsyncpa [#allocation9], 1 }
 0x6be   :  { %6637 = vsyncpa [#allocation12], 1 }
 0x6bf   :  { %6638 = vsyncpa [#allocation15], 1 }

</bundles_post_ra>
